<compile_context>
chip_gen: v7x
topology: tpu7x:2x2x1
jax: 0.10.0
libtpu: 0.0.40
codegen_flags: <defaults>
</compile_context>

<pallas_src>
import jax
import jax.numpy as jnp
import numpy as np
from jax.experimental import pallas as pl
from jax.experimental.pallas import tpu as pltpu

HIDDEN = 256          # model hidden size (bidirectional output width)
H = HIDDEN // 2       # per-direction hidden = 128
G = 4 * H             # per-direction gate width = 512
LATENT = 32
COND = 8


def _sigmoid(x):
    # one EUP tanh + one FMA instead of exp + full-precision divide (VPU)
    return 0.5 * jnp.tanh(0.5 * x) + 0.5


def encoder_bilstm_kernel(
    x_ref,        # (2T, 512) bf16 interleaved block-diagonal rows:
                  #   row 2i   = [emb[i]   | 0         ]  (forward, t = i)
                  #   row 2i+1 = [0        | emb[T-1-i]]   (backward, t = T-1-i)
    h0cat_ref,    # (1, 40)   f32  [h0 latent part | tense condition embedding]
    c0_ref,       # (2, 128)  f32  row0 = c0_fwd, row1 = c0_bwd
    wc2h_ref,     # (40, 256) f32  cond2hidden weight (transposed)
    bc2h_ref,     # (1, 256)  f32
    wih_ref,      # (512, 512) bf16 [[W_ih_f^T], [W_ih_b^T]]
    b2_ref,       # (2, 512)  f32  row0 = b_ih_f+b_hh_f, row1 = b_ih_b+b_hh_b
    whh_ref,      # (256, 512) bf16 [[W_hh_f^T], [W_hh_b^T]]
    bdmask_ref,   # (2, 256)  f32  block-diagonal placement mask for recurrent LHS
    wmv_ref,      # (256, 64) f32  [hidden2mean^T | hidden2logv^T]
    bmv_ref,      # (1, 64)   f32
    out_ref,      # (T, 256)  f32
    hn_ref,       # (2, 128)
    cn_ref,       # (2, 128)
    mean_ref, logv_ref, std_ref,   # (1, 32)
    gx_scr,       # (2T, 512) f32 scratch: per-step (fwd, bwd) gate row pairs
):
    T = out_ref.shape[0]

    # h0 = cond2hidden([h0_part | cond]) -> (1, 256), restacked as (2, 128).
    h0full = (jnp.dot(h0cat_ref[...], wc2h_ref[...],
                      preferred_element_type=jnp.float32) + bc2h_ref[...])
    h = jnp.concatenate([h0full[:, 0:H], h0full[:, H:2 * H]], axis=0)   # (2,128)
    c = c0_ref[...]                                                     # (2,128)

    # Fused input projection for all timesteps & both directions (one MXU
    # matmul); bias folded in here so the serial loop sees a single add.
    b2 = b2_ref[...]
    gx = jnp.dot(x_ref[...], wih_ref[...], preferred_element_type=jnp.float32)
    gx_scr[...] = gx + jnp.concatenate([b2] * T, axis=0)

    bdmask = bdmask_ref[...]          # (2, 256) -- hoisted out of the loop

    outs_f = []
    outs_b = []
    # Fully unrolled (T small & static): every slice below is static.
    for i in range(T):
        # One dense (2,256)@(256,512) bf16 MXU matmul serves both directions:
        # the block-diagonal LHS keeps fwd/bwd gates in the SAME 512 columns.
        # NOTE: the recurrent LHS is cast to bf16 each step (MXU-native);
        # rounding compounds slowly with T but stays within 2e-2 for small T.
        # TODO(synk): make W_hh weight-stationary via pltpu.matmul_push_rhs /
        # matmul_acc_lhs / matmul_pop so the 256 KB RHS is not re-streamed on
        # every serial step (staging-register tiling is chip-generation
        # specific: 256x256 on v6e/v7x vs 128x128 on v5e).
        h_bd = (jnp.concatenate([h, h], axis=1) * bdmask).astype(jnp.bfloat16)
        g_hh = jnp.dot(h_bd, whh_ref[...], preferred_element_type=jnp.float32)
        gates = gx_scr[2 * i:2 * i + 2, :] + g_hh           # (2, 512) dense
        i_g = _sigmoid(gates[:, 0:H])
        f_g = _sigmoid(gates[:, H:2 * H])
        g_g = jnp.tanh(gates[:, 2 * H:3 * H])
        o_g = _sigmoid(gates[:, 3 * H:4 * H])
        c = f_g * c + i_g * g_g                             # (2, 128) f32
        h = o_g * jnp.tanh(c)                               # (2, 128) f32
        outs_f.append(h[0:1, :])
        outs_b.append(h[1:2, :])

    # Dense, lane-aligned output stores (no per-step masked single-row vst).
    out_ref[:, 0:H] = jnp.concatenate(outs_f, axis=0)
    out_ref[:, H:2 * H] = jnp.concatenate(outs_b[::-1], axis=0)

    hn_ref[...] = h
    cn_ref[...] = c

    # Fused heads: [mean | logv] = [h_f | h_b] @ [Wm^T | Wv^T] + [bm | bv]
    heads = (jnp.dot(h[0:1, :], wmv_ref[0:H, :], preferred_element_type=jnp.float32)
             + jnp.dot(h[1:2, :], wmv_ref[H:2 * H, :], preferred_element_type=jnp.float32)
             + bmv_ref[...])
    logv = heads[:, LATENT:2 * LATENT]
    mean_ref[...] = heads[:, 0:LATENT]
    logv_ref[...] = logv
    std_ref[...] = jnp.exp(0.5 * logv)


def encoder_bilstm_forward_batched(params, input_ids, h0_part, c0, condition):
    """Runs the encoder on a batch of sequences with ONE pallas_call.

    input_ids: (B, T) int32, h0_part: (B, 1, LATENT), c0: (B, 2, H),
    condition: (B,) int32. Weights stay VMEM-resident across the batch grid.
    """
    B, T = input_ids.shape
    # Embedding gathers = plain-JAX glue (nn.Embedding / tense_embedding).
    # TODO(synk): for long sequences, move the gather in-kernel via
    # PrefetchScalarGridSpec + per-row DMA against the HBM embedding table.
    emb = params["embedding"][input_ids]                          # (B,T,256) bf16
    emb_rev = emb[:, ::-1, :]
    zpad = jnp.zeros_like(emb)
    # Interleaved block-diagonal rows: 2i = [emb[i] | 0], 2i+1 = [0 | emb[T-1-i]].
    x_bd = jnp.stack([jnp.concatenate([emb, zpad], axis=-1),
                      jnp.concatenate([zpad, emb_rev], axis=-1)],
                     axis=2).reshape(B, 2 * T, 2 * HIDDEN)        # (B,2T,512) bf16

    cond = params["tense_embedding"][condition].astype(jnp.float32).reshape(B, 1, COND)
    h0cat = jnp.concatenate(
        [h0_part.reshape(B, 1, LATENT).astype(jnp.float32), cond], axis=-1)
    c0 = c0.reshape(B, 2, H).astype(jnp.float32)

    def seq_spec(*dims):            # per-sequence block, batch dim squeezed
        n = len(dims)
        return pl.BlockSpec((None,) + dims, lambda b: (b,) + (0,) * n)

    def fix_spec(*dims):            # weight: whole array, constant index map
        n = len(dims)               # -> fetched once, VMEM-resident over grid
        return pl.BlockSpec(dims, lambda b: (0,) * n)

    out_shapes = (
        jax.ShapeDtypeStruct((B, T, HIDDEN), jnp.float32),   # outputs
        jax.ShapeDtypeStruct((B, 2, H), jnp.float32),        # hn
        jax.ShapeDtypeStruct((B, 2, H), jnp.float32),        # cn
        jax.ShapeDtypeStruct((B, 1, LATENT), jnp.float32),   # mean
        jax.ShapeDtypeStruct((B, 1, LATENT), jnp.float32),   # logv
        jax.ShapeDtypeStruct((B, 1, LATENT), jnp.float32),   # std
    )
    outputs, hn, cn, mean, logv, std = pl.pallas_call(
        encoder_bilstm_kernel,
        out_shape=out_shapes,
        grid=(B,),
        in_specs=[
            seq_spec(2 * T, 2 * HIDDEN),          # x_bd
            seq_spec(1, LATENT + COND),           # h0cat
            seq_spec(2, H),                       # c0
            fix_spec(LATENT + COND, HIDDEN),      # cond2hidden_w_t
            fix_spec(1, HIDDEN),                  # cond2hidden_b
            fix_spec(2 * HIDDEN, G),              # wih_bd
            fix_spec(2, G),                       # b2
            fix_spec(HIDDEN, G),                  # whh_bd
            fix_spec(2, HIDDEN),                  # bd_mask
            fix_spec(HIDDEN, 2 * LATENT),         # wmv
            fix_spec(1, 2 * LATENT),              # bmv
        ],
        out_specs=(
            seq_spec(T, HIDDEN),
            seq_spec(2, H),
            seq_spec(2, H),
            seq_spec(1, LATENT),
            seq_spec(1, LATENT),
            seq_spec(1, LATENT),
        ),
        scratch_shapes=[pltpu.VMEM((2 * T, G), jnp.float32)],
        compiler_params=pltpu.CompilerParams(
            dimension_semantics=("parallel",)),   # batch shards across TCs (v7x)
    )(x_bd, h0cat, c0,
      params["cond2hidden_w_t"], params["cond2hidden_b"],
      params["wih_bd"], params["b2"], params["whh_bd"], params["bd_mask"],
      params["wmv"], params["bmv"])
    return mean, logv, std, outputs, hn, cn


def encoder_bilstm_forward(params, input_ids, hidden, condition):
    """Single-sequence forward matching the PyTorch module's output shapes."""
    T = int(input_ids.shape[0])
    h0_part, c0 = hidden
    cond = jnp.atleast_1d(jnp.asarray(condition, dtype=jnp.int32))
    mean, logv, std, outputs, hn, cn = encoder_bilstm_forward_batched(
        params,
        input_ids.reshape(1, T),
        h0_part.reshape(1, 1, LATENT),
        c0.reshape(1, 2, H),
        cond)
    return (mean.reshape(1, LATENT), logv.reshape(1, LATENT),
            std.reshape(1, LATENT), outputs.reshape(T, 1, HIDDEN),
            (hn.reshape(2, 1, H), cn.reshape(2, 1, H)))


def init_params(key, vocab_size):
    ks = jax.random.split(key, 16)

    def u(k, shape, bound):
        return jax.random.uniform(k, shape, jnp.float32, -bound, bound)

    sh = 1.0 / np.sqrt(H)
    s256 = 1.0 / np.sqrt(HIDDEN)
    s40 = 1.0 / np.sqrt(LATENT + COND)

    params = {}
    # Big matmul operands live as bf16 (MXU-native); the pure-JAX reference
    # uses the same bf16-rounded values upcast to f32.
    params["embedding"] = jax.random.normal(
        ks[0], (vocab_size, HIDDEN), jnp.float32).astype(jnp.bfloat16)
    params["tense_embedding"] = jax.random.normal(ks[1], (4, COND), jnp.float32)

    # PyTorch LSTM layout: W_ih (4H, 256), W_hh (4H, H), gate order [i, f, g, o]
    w_ih_f = u(ks[2], (G, HIDDEN), sh)
    w_hh_f = u(ks[3], (G, H), sh)
    b_ih_f = u(ks[4], (G,), sh)
    b_hh_f = u(ks[5], (G,), sh)
    w_ih_b = u(ks[6], (G, HIDDEN), sh)
    w_hh_b = u(ks[7], (G, H), sh)
    b_ih_b = u(ks[8], (G,), sh)
    b_hh_b = u(ks[9], (G,), sh)
    # Row-stacked transposed layouts for the block-diagonal-LHS matmuls.
    params["wih_bd"] = jnp.concatenate(
        [w_ih_f.T, w_ih_b.T], axis=0).astype(jnp.bfloat16)          # (512, 512)
    params["whh_bd"] = jnp.concatenate(
        [w_hh_f.T, w_hh_b.T], axis=0).astype(jnp.bfloat16)          # (256, 512)
    params["b2"] = jnp.stack(
        [b_ih_f + b_hh_f, b_ih_b + b_hh_b], axis=0)                 # (2, 512) f32
    # block-diagonal placement mask for the per-step recurrent LHS
    params["bd_mask"] = jnp.concatenate(
        [jnp.concatenate([jnp.ones((1, H)), jnp.zeros((1, H))], axis=1),
         jnp.concatenate([jnp.zeros((1, H)), jnp.ones((1, H))], axis=1)],
        axis=0).astype(jnp.float32)                                 # (2, 256)

    wm = u(ks[10], (LATENT, HIDDEN), s256)
    bm = u(ks[11], (LATENT,), s256)
    wv = u(ks[12], (LATENT, HIDDEN), s256)
    bv = u(ks[13], (LATENT,), s256)
    wc = u(ks[14], (HIDDEN, LATENT + COND), s40)
    bc = u(ks[15], (HIDDEN,), s40)
    params["wmv"] = jnp.concatenate([wm.T, wv.T], axis=1)           # (256, 64)
    params["bmv"] = jnp.concatenate([bm, bv]).reshape(1, 2 * LATENT)
    params["cond2hidden_w_t"] = wc.T                                # (40, 256)
    params["cond2hidden_b"] = bc.reshape(1, HIDDEN)
    return params


def reference_forward(params, input_ids, hidden, condition):
    """Pure-JAX single-sequence reference replicating PyTorch semantics (f32)."""
    T = int(input_ids.shape[0])
    emb = params["embedding"][input_ids].reshape(T, HIDDEN).astype(jnp.float32)
    cond = params["tense_embedding"][condition].reshape(1, COND)
    h0_part, c0 = hidden
    h0cat = jnp.concatenate([h0_part.reshape(1, LATENT), cond], axis=1)
    h0full = h0cat @ params["cond2hidden_w_t"] + params["cond2hidden_b"]
    h_f, h_b = h0full[:, :H], h0full[:, H:]
    c0 = c0.reshape(2, H)
    c_f, c_b = c0[0:1], c0[1:2]

    wih = params["wih_bd"].astype(jnp.float32)       # (512, 512)
    whh = params["whh_bd"].astype(jnp.float32)       # (256, 512)
    b2 = params["b2"]                                # (2, 512)
    wih_f, wih_b = wih[:HIDDEN], wih[HIDDEN:]
    whh_f, whh_b = whh[:H], whh[H:]
    b_f, b_b = b2[0:1], b2[1:2]

    def cell(x, h, c, wi, wh, b):
        gates = x @ wi + h @ wh + b
        i, f, g, o = jnp.split(gates, 4, axis=1)
        c = jax.nn.sigmoid(f) * c + jax.nn.sigmoid(i) * jnp.tanh(g)
        h = jax.nn.sigmoid(o) * jnp.tanh(c)
        return h, c

    outs_f = []
    for t in range(T):
        h_f, c_f = cell(emb[t:t + 1], h_f, c_f, wih_f, whh_f, b_f)
        outs_f.append(h_f)
    outs_b = [None] * T
    for t in range(T - 1, -1, -1):
        h_b, c_b = cell(emb[t:t + 1], h_b, c_b, wih_b, whh_b, b_b)
        outs_b[t] = h_b
    outputs = jnp.concatenate(
        [jnp.concatenate(outs_f, 0), jnp.concatenate(outs_b, 0)], axis=1)
    hn_flat = jnp.concatenate([h_f, h_b], axis=1)
    heads = hn_flat @ params["wmv"] + params["bmv"]
    mean, logv = heads[:, :LATENT], heads[:, LATENT:]
    std = jnp.exp(0.5 * logv)
    return (mean, logv, std, outputs.reshape(T, 1, HIDDEN),
            (jnp.concatenate([h_f, h_b], 0).reshape(2, 1, H),
             jnp.concatenate([c_f, c_b], 0).reshape(2, 1, H)))


if __name__ == "__main__":
    key = jax.random.PRNGKey(0)
    kp, ki, kh, kc = jax.random.split(key, 4)

    vocab = 50
    T = 8            # seq_len
    B = 2            # small batch to exercise the grid / weight residency
    conditions = jnp.array([1, 3], dtype=jnp.int32)

    params = init_params(kp, vocab)
    input_ids = jax.random.randint(ki, (B, T), 0, vocab, dtype=jnp.int32)
    h0_part = 0.1 * jax.random.normal(kh, (B, 1, LATENT), jnp.float32)
    c0 = 0.1 * jax.random.normal(kc, (B, 2, H), jnp.float32)

    mean, logv, std, outputs, hn, cn = encoder_bilstm_forward_batched(
        params, input_ids, h0_part, c0, conditions)
    jax.block_until_ready((mean, logv, std, outputs, hn, cn))

    # Per-sequence sanity check against the pure-JAX reference.
    for b in range(B):
        r_mean, r_logv, r_std, r_out, (r_hn, r_cn) = reference_forward(
            params, input_ids[b], (h0_part[b], c0[b]), conditions[b])
        np.testing.assert_allclose(np.asarray(outputs[b]),
                                   np.asarray(r_out.reshape(T, HIDDEN)),
                                   rtol=2e-2, atol=2e-2)
        np.testing.assert_allclose(np.asarray(hn[b]),
                                   np.asarray(r_hn.reshape(2, H)),
                                   rtol=2e-2, atol=2e-2)
        np.testing.assert_allclose(np.asarray(cn[b]),
                                   np.asarray(r_cn.reshape(2, H)),
                                   rtol=2e-2, atol=2e-2)
        np.testing.assert_allclose(np.asarray(mean[b]), np.asarray(r_mean),
                                   rtol=2e-2, atol=2e-2)
        np.testing.assert_allclose(np.asarray(std[b]), np.asarray(r_std),
                                   rtol=2e-2, atol=2e-2)

    # Single-sequence wrapper (PyTorch-shaped outputs), exercised once.
    m1, lv1, s1, out1, (hn1, cn1) = encoder_bilstm_forward(
        params, input_ids[0], (h0_part[0], c0[0]), int(conditions[0]))
    jax.block_until_ready((m1, lv1, s1, out1, hn1, cn1))

    print("KERNEL_OK")
</pallas_src>

<mosaic_0001>
module attributes {stable_mosaic.version = 11 : i64} {
  func.func @encoder_bilstm_kernel(%arg0: i32, %arg1: memref<1x16x512xbf16, #tpu.memory_space<vmem>>, %arg2: memref<1x1x40xf32, #tpu.memory_space<vmem>>, %arg3: memref<1x2x128xf32, #tpu.memory_space<vmem>>, %arg4: memref<40x256xf32, #tpu.memory_space<vmem>>, %arg5: memref<1x256xf32, #tpu.memory_space<vmem>>, %arg6: memref<512x512xbf16, #tpu.memory_space<vmem>>, %arg7: memref<2x512xf32, #tpu.memory_space<vmem>>, %arg8: memref<256x512xbf16, #tpu.memory_space<vmem>>, %arg9: memref<2x256xf32, #tpu.memory_space<vmem>>, %arg10: memref<256x64xf32, #tpu.memory_space<vmem>>, %arg11: memref<1x64xf32, #tpu.memory_space<vmem>>, %arg12: memref<1x8x256xf32, #tpu.memory_space<vmem>>, %arg13: memref<1x2x128xf32, #tpu.memory_space<vmem>>, %arg14: memref<1x2x128xf32, #tpu.memory_space<vmem>>, %arg15: memref<1x1x32xf32, #tpu.memory_space<vmem>>, %arg16: memref<1x1x32xf32, #tpu.memory_space<vmem>>, %arg17: memref<1x1x32xf32, #tpu.memory_space<vmem>>, %arg18: memref<16x512xf32, #tpu.memory_space<vmem>>) attributes {dimension_semantics = [#tpu.dimension_semantics<parallel>], iteration_bounds = array<i64: 2>, scalar_prefetch = 0 : i64, scratch_operands = 1 : i64, tpu.core_type = #tpu.core_type<tc>, window_params = [{transform_indices = @transform_0, window_bounds = array<i64: 1, 16, 512>}, {transform_indices = @transform_1, window_bounds = array<i64: 1, 1, 40>}, {transform_indices = @transform_2, window_bounds = array<i64: 1, 2, 128>}, {pipeline_mode = #tpu.pipeline_mode<synchronous>, transform_indices = @transform_3, window_bounds = array<i64: 40, 256>}, {pipeline_mode = #tpu.pipeline_mode<synchronous>, transform_indices = @transform_4, window_bounds = array<i64: 1, 256>}, {pipeline_mode = #tpu.pipeline_mode<synchronous>, transform_indices = @transform_5, window_bounds = array<i64: 512, 512>}, {pipeline_mode = #tpu.pipeline_mode<synchronous>, transform_indices = @transform_6, window_bounds = array<i64: 2, 512>}, {pipeline_mode = #tpu.pipeline_mode<synchronous>, transform_indices = @transform_7, window_bounds = array<i64: 256, 512>}, {pipeline_mode = #tpu.pipeline_mode<synchronous>, transform_indices = @transform_8, window_bounds = array<i64: 2, 256>}, {pipeline_mode = #tpu.pipeline_mode<synchronous>, transform_indices = @transform_9, window_bounds = array<i64: 256, 64>}, {pipeline_mode = #tpu.pipeline_mode<synchronous>, transform_indices = @transform_10, window_bounds = array<i64: 1, 64>}, {transform_indices = @transform_11, window_bounds = array<i64: 1, 8, 256>}, {transform_indices = @transform_12, window_bounds = array<i64: 1, 2, 128>}, {transform_indices = @transform_13, window_bounds = array<i64: 1, 2, 128>}, {transform_indices = @transform_14, window_bounds = array<i64: 1, 1, 32>}, {transform_indices = @transform_15, window_bounds = array<i64: 1, 1, 32>}, {transform_indices = @transform_16, window_bounds = array<i64: 1, 1, 32>}]} {
    %c0 = arith.constant 0 : index
    %c0_0 = arith.constant 0 : index
    %c0_1 = arith.constant 0 : index
    %0 = vector.load %arg2[%c0, %c0_0, %c0_1] : memref<1x1x40xf32, #tpu.memory_space<vmem>>, vector<1x1x40xf32>
    %1 = vector.shape_cast %0 : vector<1x1x40xf32> to vector<1x40xf32>
    %c0_2 = arith.constant 0 : index
    %c0_3 = arith.constant 0 : index
    %2 = vector.load %arg4[%c0_2, %c0_3] : memref<40x256xf32, #tpu.memory_space<vmem>>, vector<40x256xf32>
    %cst = arith.constant dense<0.000000e+00> : vector<1x256xf32>
    %3 = tpu.matmul %1, %2, %cst {dimension_numbers = #tpu.dot_dimension_numbers<[1], [0], [0], [1], [0, 0, 1, 1], [], []>} : vector<1x40xf32>, vector<40x256xf32>, vector<1x256xf32> -> vector<1x256xf32>
    %c0_4 = arith.constant 0 : index
    %c0_5 = arith.constant 0 : index
    %4 = vector.load %arg5[%c0_4, %c0_5] : memref<1x256xf32, #tpu.memory_space<vmem>>, vector<1x256xf32>
    %5 = arith.addf %3, %4 : vector<1x256xf32>
    %6 = vector.extract_strided_slice %5 {offsets = [0, 0], sizes = [1, 128], strides = [1, 1]} : vector<1x256xf32> to vector<1x128xf32>
    %7 = vector.extract_strided_slice %5 {offsets = [0, 128], sizes = [1, 128], strides = [1, 1]} : vector<1x256xf32> to vector<1x128xf32>
    %8 = tpu.concatenate %6, %7 in 0 : vector<1x128xf32>, vector<1x128xf32> -> vector<2x128xf32>
    %c0_6 = arith.constant 0 : index
    %c0_7 = arith.constant 0 : index
    %c0_8 = arith.constant 0 : index
    %9 = vector.load %arg3[%c0_6, %c0_7, %c0_8] : memref<1x2x128xf32, #tpu.memory_space<vmem>>, vector<1x2x128xf32>
    %10 = vector.shape_cast %9 : vector<1x2x128xf32> to vector<2x128xf32>
    %c0_9 = arith.constant 0 : index
    %c0_10 = arith.constant 0 : index
    %11 = vector.load %arg7[%c0_9, %c0_10] : memref<2x512xf32, #tpu.memory_space<vmem>>, vector<2x512xf32>
    %c0_11 = arith.constant 0 : index
    %c0_12 = arith.constant 0 : index
    %c0_13 = arith.constant 0 : index
    %12 = vector.load %arg1[%c0_11, %c0_12, %c0_13] : memref<1x16x512xbf16, #tpu.memory_space<vmem>>, vector<1x16x512xbf16>
    %13 = vector.shape_cast %12 : vector<1x16x512xbf16> to vector<16x512xbf16>
    %c0_14 = arith.constant 0 : index
    %c0_15 = arith.constant 0 : index
    %14 = vector.load %arg6[%c0_14, %c0_15] : memref<512x512xbf16, #tpu.memory_space<vmem>>, vector<512x512xbf16>
    %cst_16 = arith.constant dense<0.000000e+00> : vector<16x512xf32>
    %15 = tpu.matmul %13, %14, %cst_16 {dimension_numbers = #tpu.dot_dimension_numbers<[1], [0], [0], [1], [0, 0, 1, 1], [], []>} : vector<16x512xbf16>, vector<512x512xbf16>, vector<16x512xf32> -> vector<16x512xf32>
    %16 = tpu.concatenate %11, %11, %11, %11, %11, %11, %11, %11 in 0 : vector<2x512xf32>, vector<2x512xf32>, vector<2x512xf32>, vector<2x512xf32>, vector<2x512xf32>, vector<2x512xf32>, vector<2x512xf32>, vector<2x512xf32> -> vector<16x512xf32>
    %17 = arith.addf %15, %16 : vector<16x512xf32>
    %c0_17 = arith.constant 0 : index
    %c0_18 = arith.constant 0 : index
    %18 = vector.load %arg18[%c0_17, %c0_18] : memref<16x512xf32, #tpu.memory_space<vmem>>, vector<16x512xf32>
    tpu.vector_store %arg18[%c0_17, %c0_18], %17 {strides = array<i32>} : memref<16x512xf32, #tpu.memory_space<vmem>>, vector<16x512xf32>,
    %c0_19 = arith.constant 0 : index
    %c0_20 = arith.constant 0 : index
    %19 = vector.load %arg9[%c0_19, %c0_20] : memref<2x256xf32, #tpu.memory_space<vmem>>, vector<2x256xf32>
    %20 = tpu.concatenate %8, %8 in 1 : vector<2x128xf32>, vector<2x128xf32> -> vector<2x256xf32>
    %21 = arith.mulf %20, %19 : vector<2x256xf32>
    %22 = arith.truncf %21 : vector<2x256xf32> to vector<2x256xbf16>
    %c0_21 = arith.constant 0 : index
    %c0_22 = arith.constant 0 : index
    %23 = vector.load %arg8[%c0_21, %c0_22] : memref<256x512xbf16, #tpu.memory_space<vmem>>, vector<256x512xbf16>
    %cst_23 = arith.constant dense<0.000000e+00> : vector<2x512xf32>
    %24 = tpu.matmul %22, %23, %cst_23 {dimension_numbers = #tpu.dot_dimension_numbers<[1], [0], [0], [1], [0, 0, 1, 1], [], []>} : vector<2x256xbf16>, vector<256x512xbf16>, vector<2x512xf32> -> vector<2x512xf32>
    %c0_24 = arith.constant 0 : index
    %c0_25 = arith.constant 0 : index
    %25 = vector.load %arg18[%c0_24, %c0_25] : memref<16x512xf32, #tpu.memory_space<vmem>>, vector<2x512xf32>
    %26 = arith.addf %25, %24 : vector<2x512xf32>
    %27 = vector.extract_strided_slice %26 {offsets = [0, 0], sizes = [2, 128], strides = [1, 1]} : vector<2x512xf32> to vector<2x128xf32>
    %cst_26 = arith.constant 5.000000e-01 : f32
    %28 = vector.broadcast %cst_26 : f32 to vector<2x128xf32>
    %29 = arith.mulf %28, %27 : vector<2x128xf32>
    %30 = math.tanh %29 : vector<2x128xf32>
    %cst_27 = arith.constant 5.000000e-01 : f32
    %31 = vector.broadcast %cst_27 : f32 to vector<2x128xf32>
    %32 = arith.mulf %31, %30 : vector<2x128xf32>
    %cst_28 = arith.constant 5.000000e-01 : f32
    %33 = vector.broadcast %cst_28 : f32 to vector<2x128xf32>
    %34 = arith.addf %32, %33 : vector<2x128xf32>
    %35 = vector.extract_strided_slice %26 {offsets = [0, 128], sizes = [2, 128], strides = [1, 1]} : vector<2x512xf32> to vector<2x128xf32>
    %cst_29 = arith.constant 5.000000e-01 : f32
    %36 = vector.broadcast %cst_29 : f32 to vector<2x128xf32>
    %37 = arith.mulf %36, %35 : vector<2x128xf32>
    %38 = math.tanh %37 : vector<2x128xf32>
    %cst_30 = arith.constant 5.000000e-01 : f32
    %39 = vector.broadcast %cst_30 : f32 to vector<2x128xf32>
    %40 = arith.mulf %39, %38 : vector<2x128xf32>
    %cst_31 = arith.constant 5.000000e-01 : f32
    %41 = vector.broadcast %cst_31 : f32 to vector<2x128xf32>
    %42 = arith.addf %40, %41 : vector<2x128xf32>
    %43 = vector.extract_strided_slice %26 {offsets = [0, 256], sizes = [2, 128], strides = [1, 1]} : vector<2x512xf32> to vector<2x128xf32>
    %44 = math.tanh %43 : vector<2x128xf32>
    %45 = vector.extract_strided_slice %26 {offsets = [0, 384], sizes = [2, 128], strides = [1, 1]} : vector<2x512xf32> to vector<2x128xf32>
    %cst_32 = arith.constant 5.000000e-01 : f32
    %46 = vector.broadcast %cst_32 : f32 to vector<2x128xf32>
    %47 = arith.mulf %46, %45 : vector<2x128xf32>
    %48 = math.tanh %47 : vector<2x128xf32>
    %cst_33 = arith.constant 5.000000e-01 : f32
    %49 = vector.broadcast %cst_33 : f32 to vector<2x128xf32>
    %50 = arith.mulf %49, %48 : vector<2x128xf32>
    %cst_34 = arith.constant 5.000000e-01 : f32
    %51 = vector.broadcast %cst_34 : f32 to vector<2x128xf32>
    %52 = arith.addf %50, %51 : vector<2x128xf32>
    %53 = arith.mulf %42, %10 : vector<2x128xf32>
    %54 = arith.mulf %34, %44 : vector<2x128xf32>
    %55 = arith.addf %53, %54 : vector<2x128xf32>
    %56 = math.tanh %55 : vector<2x128xf32>
    %57 = arith.mulf %52, %56 : vector<2x128xf32>
    %58 = vector.extract_strided_slice %57 {offsets = [0, 0], sizes = [1, 128], strides = [1, 1]} : vector<2x128xf32> to vector<1x128xf32>
    %59 = vector.extract_strided_slice %57 {offsets = [1, 0], sizes = [1, 128], strides = [1, 1]} : vector<2x128xf32> to vector<1x128xf32>
    %60 = tpu.concatenate %57, %57 in 1 : vector<2x128xf32>, vector<2x128xf32> -> vector<2x256xf32>
    %61 = arith.mulf %60, %19 : vector<2x256xf32>
    %62 = arith.truncf %61 : vector<2x256xf32> to vector<2x256xbf16>
    %c0_35 = arith.constant 0 : index
    %c0_36 = arith.constant 0 : index
    %63 = vector.load %arg8[%c0_35, %c0_36] : memref<256x512xbf16, #tpu.memory_space<vmem>>, vector<256x512xbf16>
    %cst_37 = arith.constant dense<0.000000e+00> : vector<2x512xf32>
    %64 = tpu.matmul %62, %63, %cst_37 {dimension_numbers = #tpu.dot_dimension_numbers<[1], [0], [0], [1], [0, 0, 1, 1], [], []>} : vector<2x256xbf16>, vector<256x512xbf16>, vector<2x512xf32> -> vector<2x512xf32>
    %c2 = arith.constant 2 : index
    %c0_38 = arith.constant 0 : index
    %65 = vector.load %arg18[%c2, %c0_38] : memref<16x512xf32, #tpu.memory_space<vmem>>, vector<2x512xf32>
    %66 = arith.addf %65, %64 : vector<2x512xf32>
    %67 = vector.extract_strided_slice %66 {offsets = [0, 0], sizes = [2, 128], strides = [1, 1]} : vector<2x512xf32> to vector<2x128xf32>
    %cst_39 = arith.constant 5.000000e-01 : f32
    %68 = vector.broadcast %cst_39 : f32 to vector<2x128xf32>
    %69 = arith.mulf %68, %67 : vector<2x128xf32>
    %70 = math.tanh %69 : vector<2x128xf32>
    %cst_40 = arith.constant 5.000000e-01 : f32
    %71 = vector.broadcast %cst_40 : f32 to vector<2x128xf32>
    %72 = arith.mulf %71, %70 : vector<2x128xf32>
    %cst_41 = arith.constant 5.000000e-01 : f32
    %73 = vector.broadcast %cst_41 : f32 to vector<2x128xf32>
    %74 = arith.addf %72, %73 : vector<2x128xf32>
    %75 = vector.extract_strided_slice %66 {offsets = [0, 128], sizes = [2, 128], strides = [1, 1]} : vector<2x512xf32> to vector<2x128xf32>
    %cst_42 = arith.constant 5.000000e-01 : f32
    %76 = vector.broadcast %cst_42 : f32 to vector<2x128xf32>
    %77 = arith.mulf %76, %75 : vector<2x128xf32>
    %78 = math.tanh %77 : vector<2x128xf32>
    %cst_43 = arith.constant 5.000000e-01 : f32
    %79 = vector.broadcast %cst_43 : f32 to vector<2x128xf32>
    %80 = arith.mulf %79, %78 : vector<2x128xf32>
    %cst_44 = arith.constant 5.000000e-01 : f32
    %81 = vector.broadcast %cst_44 : f32 to vector<2x128xf32>
    %82 = arith.addf %80, %81 : vector<2x128xf32>
    %83 = vector.extract_strided_slice %66 {offsets = [0, 256], sizes = [2, 128], strides = [1, 1]} : vector<2x512xf32> to vector<2x128xf32>
    %84 = math.tanh %83 : vector<2x128xf32>
    %85 = vector.extract_strided_slice %66 {offsets = [0, 384], sizes = [2, 128], strides = [1, 1]} : vector<2x512xf32> to vector<2x128xf32>
    %cst_45 = arith.constant 5.000000e-01 : f32
    %86 = vector.broadcast %cst_45 : f32 to vector<2x128xf32>
    %87 = arith.mulf %86, %85 : vector<2x128xf32>
    %88 = math.tanh %87 : vector<2x128xf32>
    %cst_46 = arith.constant 5.000000e-01 : f32
    %89 = vector.broadcast %cst_46 : f32 to vector<2x128xf32>
    %90 = arith.mulf %89, %88 : vector<2x128xf32>
    %cst_47 = arith.constant 5.000000e-01 : f32
    %91 = vector.broadcast %cst_47 : f32 to vector<2x128xf32>
    %92 = arith.addf %90, %91 : vector<2x128xf32>
    %93 = arith.mulf %82, %55 : vector<2x128xf32>
    %94 = arith.mulf %74, %84 : vector<2x128xf32>
    %95 = arith.addf %93, %94 : vector<2x128xf32>
    %96 = math.tanh %95 : vector<2x128xf32>
    %97 = arith.mulf %92, %96 : vector<2x128xf32>
    %98 = vector.extract_strided_slice %97 {offsets = [0, 0], sizes = [1, 128], strides = [1, 1]} : vector<2x128xf32> to vector<1x128xf32>
    %99 = vector.extract_strided_slice %97 {offsets = [1, 0], sizes = [1, 128], strides = [1, 1]} : vector<2x128xf32> to vector<1x128xf32>
    %100 = tpu.concatenate %97, %97 in 1 : vector<2x128xf32>, vector<2x128xf32> -> vector<2x256xf32>
    %101 = arith.mulf %100, %19 : vector<2x256xf32>
    %102 = arith.truncf %101 : vector<2x256xf32> to vector<2x256xbf16>
    %c0_48 = arith.constant 0 : index
    %c0_49 = arith.constant 0 : index
    %103 = vector.load %arg8[%c0_48, %c0_49] : memref<256x512xbf16, #tpu.memory_space<vmem>>, vector<256x512xbf16>
    %cst_50 = arith.constant dense<0.000000e+00> : vector<2x512xf32>
    %104 = tpu.matmul %102, %103, %cst_50 {dimension_numbers = #tpu.dot_dimension_numbers<[1], [0], [0], [1], [0, 0, 1, 1], [], []>} : vector<2x256xbf16>, vector<256x512xbf16>, vector<2x512xf32> -> vector<2x512xf32>
    %c4 = arith.constant 4 : index
    %c0_51 = arith.constant 0 : index
    %105 = vector.load %arg18[%c4, %c0_51] : memref<16x512xf32, #tpu.memory_space<vmem>>, vector<2x512xf32>
    %106 = arith.addf %105, %104 : vector<2x512xf32>
    %107 = vector.extract_strided_slice %106 {offsets = [0, 0], sizes = [2, 128], strides = [1, 1]} : vector<2x512xf32> to vector<2x128xf32>
    %cst_52 = arith.constant 5.000000e-01 : f32
    %108 = vector.broadcast %cst_52 : f32 to vector<2x128xf32>
    %109 = arith.mulf %108, %107 : vector<2x128xf32>
    %110 = math.tanh %109 : vector<2x128xf32>
    %cst_53 = arith.constant 5.000000e-01 : f32
    %111 = vector.broadcast %cst_53 : f32 to vector<2x128xf32>
    %112 = arith.mulf %111, %110 : vector<2x128xf32>
    %cst_54 = arith.constant 5.000000e-01 : f32
    %113 = vector.broadcast %cst_54 : f32 to vector<2x128xf32>
    %114 = arith.addf %112, %113 : vector<2x128xf32>
    %115 = vector.extract_strided_slice %106 {offsets = [0, 128], sizes = [2, 128], strides = [1, 1]} : vector<2x512xf32> to vector<2x128xf32>
    %cst_55 = arith.constant 5.000000e-01 : f32
    %116 = vector.broadcast %cst_55 : f32 to vector<2x128xf32>
    %117 = arith.mulf %116, %115 : vector<2x128xf32>
    %118 = math.tanh %117 : vector<2x128xf32>
    %cst_56 = arith.constant 5.000000e-01 : f32
    %119 = vector.broadcast %cst_56 : f32 to vector<2x128xf32>
    %120 = arith.mulf %119, %118 : vector<2x128xf32>
    %cst_57 = arith.constant 5.000000e-01 : f32
    %121 = vector.broadcast %cst_57 : f32 to vector<2x128xf32>
    %122 = arith.addf %120, %121 : vector<2x128xf32>
    %123 = vector.extract_strided_slice %106 {offsets = [0, 256], sizes = [2, 128], strides = [1, 1]} : vector<2x512xf32> to vector<2x128xf32>
    %124 = math.tanh %123 : vector<2x128xf32>
    %125 = vector.extract_strided_slice %106 {offsets = [0, 384], sizes = [2, 128], strides = [1, 1]} : vector<2x512xf32> to vector<2x128xf32>
    %cst_58 = arith.constant 5.000000e-01 : f32
    %126 = vector.broadcast %cst_58 : f32 to vector<2x128xf32>
    %127 = arith.mulf %126, %125 : vector<2x128xf32>
    %128 = math.tanh %127 : vector<2x128xf32>
    %cst_59 = arith.constant 5.000000e-01 : f32
    %129 = vector.broadcast %cst_59 : f32 to vector<2x128xf32>
    %130 = arith.mulf %129, %128 : vector<2x128xf32>
    %cst_60 = arith.constant 5.000000e-01 : f32
    %131 = vector.broadcast %cst_60 : f32 to vector<2x128xf32>
    %132 = arith.addf %130, %131 : vector<2x128xf32>
    %133 = arith.mulf %122, %95 : vector<2x128xf32>
    %134 = arith.mulf %114, %124 : vector<2x128xf32>
    %135 = arith.addf %133, %134 : vector<2x128xf32>
    %136 = math.tanh %135 : vector<2x128xf32>
    %137 = arith.mulf %132, %136 : vector<2x128xf32>
    %138 = vector.extract_strided_slice %137 {offsets = [0, 0], sizes = [1, 128], strides = [1, 1]} : vector<2x128xf32> to vector<1x128xf32>
    %139 = vector.extract_strided_slice %137 {offsets = [1, 0], sizes = [1, 128], strides = [1, 1]} : vector<2x128xf32> to vector<1x128xf32>
    %140 = tpu.concatenate %137, %137 in 1 : vector<2x128xf32>, vector<2x128xf32> -> vector<2x256xf32>
    %141 = arith.mulf %140, %19 : vector<2x256xf32>
    %142 = arith.truncf %141 : vector<2x256xf32> to vector<2x256xbf16>
    %c0_61 = arith.constant 0 : index
    %c0_62 = arith.constant 0 : index
    %143 = vector.load %arg8[%c0_61, %c0_62] : memref<256x512xbf16, #tpu.memory_space<vmem>>, vector<256x512xbf16>
    %cst_63 = arith.constant dense<0.000000e+00> : vector<2x512xf32>
    %144 = tpu.matmul %142, %143, %cst_63 {dimension_numbers = #tpu.dot_dimension_numbers<[1], [0], [0], [1], [0, 0, 1, 1], [], []>} : vector<2x256xbf16>, vector<256x512xbf16>, vector<2x512xf32> -> vector<2x512xf32>
    %c6 = arith.constant 6 : index
    %c0_64 = arith.constant 0 : index
    %145 = vector.load %arg18[%c6, %c0_64] : memref<16x512xf32, #tpu.memory_space<vmem>>, vector<2x512xf32>
    %146 = arith.addf %145, %144 : vector<2x512xf32>
    %147 = vector.extract_strided_slice %146 {offsets = [0, 0], sizes = [2, 128], strides = [1, 1]} : vector<2x512xf32> to vector<2x128xf32>
    %cst_65 = arith.constant 5.000000e-01 : f32
    %148 = vector.broadcast %cst_65 : f32 to vector<2x128xf32>
    %149 = arith.mulf %148, %147 : vector<2x128xf32>
    %150 = math.tanh %149 : vector<2x128xf32>
    %cst_66 = arith.constant 5.000000e-01 : f32
    %151 = vector.broadcast %cst_66 : f32 to vector<2x128xf32>
    %152 = arith.mulf %151, %150 : vector<2x128xf32>
    %cst_67 = arith.constant 5.000000e-01 : f32
    %153 = vector.broadcast %cst_67 : f32 to vector<2x128xf32>
    %154 = arith.addf %152, %153 : vector<2x128xf32>
    %155 = vector.extract_strided_slice %146 {offsets = [0, 128], sizes = [2, 128], strides = [1, 1]} : vector<2x512xf32> to vector<2x128xf32>
    %cst_68 = arith.constant 5.000000e-01 : f32
    %156 = vector.broadcast %cst_68 : f32 to vector<2x128xf32>
    %157 = arith.mulf %156, %155 : vector<2x128xf32>
    %158 = math.tanh %157 : vector<2x128xf32>
    %cst_69 = arith.constant 5.000000e-01 : f32
    %159 = vector.broadcast %cst_69 : f32 to vector<2x128xf32>
    %160 = arith.mulf %159, %158 : vector<2x128xf32>
    %cst_70 = arith.constant 5.000000e-01 : f32
    %161 = vector.broadcast %cst_70 : f32 to vector<2x128xf32>
    %162 = arith.addf %160, %161 : vector<2x128xf32>
    %163 = vector.extract_strided_slice %146 {offsets = [0, 256], sizes = [2, 128], strides = [1, 1]} : vector<2x512xf32> to vector<2x128xf32>
    %164 = math.tanh %163 : vector<2x128xf32>
    %165 = vector.extract_strided_slice %146 {offsets = [0, 384], sizes = [2, 128], strides = [1, 1]} : vector<2x512xf32> to vector<2x128xf32>
    %cst_71 = arith.constant 5.000000e-01 : f32
    %166 = vector.broadcast %cst_71 : f32 to vector<2x128xf32>
    %167 = arith.mulf %166, %165 : vector<2x128xf32>
    %168 = math.tanh %167 : vector<2x128xf32>
    %cst_72 = arith.constant 5.000000e-01 : f32
    %169 = vector.broadcast %cst_72 : f32 to vector<2x128xf32>
    %170 = arith.mulf %169, %168 : vector<2x128xf32>
    %cst_73 = arith.constant 5.000000e-01 : f32
    %171 = vector.broadcast %cst_73 : f32 to vector<2x128xf32>
    %172 = arith.addf %170, %171 : vector<2x128xf32>
    %173 = arith.mulf %162, %135 : vector<2x128xf32>
    %174 = arith.mulf %154, %164 : vector<2x128xf32>
    %175 = arith.addf %173, %174 : vector<2x128xf32>
    %176 = math.tanh %175 : vector<2x128xf32>
    %177 = arith.mulf %172, %176 : vector<2x128xf32>
    %178 = vector.extract_strided_slice %177 {offsets = [0, 0], sizes = [1, 128], strides = [1, 1]} : vector<2x128xf32> to vector<1x128xf32>
    %179 = vector.extract_strided_slice %177 {offsets = [1, 0], sizes = [1, 128], strides = [1, 1]} : vector<2x128xf32> to vector<1x128xf32>
    %180 = tpu.concatenate %177, %177 in 1 : vector<2x128xf32>, vector<2x128xf32> -> vector<2x256xf32>
    %181 = arith.mulf %180, %19 : vector<2x256xf32>
    %182 = arith.truncf %181 : vector<2x256xf32> to vector<2x256xbf16>
    %c0_74 = arith.constant 0 : index
    %c0_75 = arith.constant 0 : index
    %183 = vector.load %arg8[%c0_74, %c0_75] : memref<256x512xbf16, #tpu.memory_space<vmem>>, vector<256x512xbf16>
    %cst_76 = arith.constant dense<0.000000e+00> : vector<2x512xf32>
    %184 = tpu.matmul %182, %183, %cst_76 {dimension_numbers = #tpu.dot_dimension_numbers<[1], [0], [0], [1], [0, 0, 1, 1], [], []>} : vector<2x256xbf16>, vector<256x512xbf16>, vector<2x512xf32> -> vector<2x512xf32>
    %c8 = arith.constant 8 : index
    %c0_77 = arith.constant 0 : index
    %185 = vector.load %arg18[%c8, %c0_77] : memref<16x512xf32, #tpu.memory_space<vmem>>, vector<2x512xf32>
    %186 = arith.addf %185, %184 : vector<2x512xf32>
    %187 = vector.extract_strided_slice %186 {offsets = [0, 0], sizes = [2, 128], strides = [1, 1]} : vector<2x512xf32> to vector<2x128xf32>
    %cst_78 = arith.constant 5.000000e-01 : f32
    %188 = vector.broadcast %cst_78 : f32 to vector<2x128xf32>
    %189 = arith.mulf %188, %187 : vector<2x128xf32>
    %190 = math.tanh %189 : vector<2x128xf32>
    %cst_79 = arith.constant 5.000000e-01 : f32
    %191 = vector.broadcast %cst_79 : f32 to vector<2x128xf32>
    %192 = arith.mulf %191, %190 : vector<2x128xf32>
    %cst_80 = arith.constant 5.000000e-01 : f32
    %193 = vector.broadcast %cst_80 : f32 to vector<2x128xf32>
    %194 = arith.addf %192, %193 : vector<2x128xf32>
    %195 = vector.extract_strided_slice %186 {offsets = [0, 128], sizes = [2, 128], strides = [1, 1]} : vector<2x512xf32> to vector<2x128xf32>
    %cst_81 = arith.constant 5.000000e-01 : f32
    %196 = vector.broadcast %cst_81 : f32 to vector<2x128xf32>
    %197 = arith.mulf %196, %195 : vector<2x128xf32>
    %198 = math.tanh %197 : vector<2x128xf32>
    %cst_82 = arith.constant 5.000000e-01 : f32
    %199 = vector.broadcast %cst_82 : f32 to vector<2x128xf32>
    %200 = arith.mulf %199, %198 : vector<2x128xf32>
    %cst_83 = arith.constant 5.000000e-01 : f32
    %201 = vector.broadcast %cst_83 : f32 to vector<2x128xf32>
    %202 = arith.addf %200, %201 : vector<2x128xf32>
    %203 = vector.extract_strided_slice %186 {offsets = [0, 256], sizes = [2, 128], strides = [1, 1]} : vector<2x512xf32> to vector<2x128xf32>
    %204 = math.tanh %203 : vector<2x128xf32>
    %205 = vector.extract_strided_slice %186 {offsets = [0, 384], sizes = [2, 128], strides = [1, 1]} : vector<2x512xf32> to vector<2x128xf32>
    %cst_84 = arith.constant 5.000000e-01 : f32
    %206 = vector.broadcast %cst_84 : f32 to vector<2x128xf32>
    %207 = arith.mulf %206, %205 : vector<2x128xf32>
    %208 = math.tanh %207 : vector<2x128xf32>
    %cst_85 = arith.constant 5.000000e-01 : f32
    %209 = vector.broadcast %cst_85 : f32 to vector<2x128xf32>
    %210 = arith.mulf %209, %208 : vector<2x128xf32>
    %cst_86 = arith.constant 5.000000e-01 : f32
    %211 = vector.broadcast %cst_86 : f32 to vector<2x128xf32>
    %212 = arith.addf %210, %211 : vector<2x128xf32>
    %213 = arith.mulf %202, %175 : vector<2x128xf32>
    %214 = arith.mulf %194, %204 : vector<2x128xf32>
    %215 = arith.addf %213, %214 : vector<2x128xf32>
    %216 = math.tanh %215 : vector<2x128xf32>
    %217 = arith.mulf %212, %216 : vector<2x128xf32>
    %218 = vector.extract_strided_slice %217 {offsets = [0, 0], sizes = [1, 128], strides = [1, 1]} : vector<2x128xf32> to vector<1x128xf32>
    %219 = vector.extract_strided_slice %217 {offsets = [1, 0], sizes = [1, 128], strides = [1, 1]} : vector<2x128xf32> to vector<1x128xf32>
    %220 = tpu.concatenate %217, %217 in 1 : vector<2x128xf32>, vector<2x128xf32> -> vector<2x256xf32>
    %221 = arith.mulf %220, %19 : vector<2x256xf32>
    %222 = arith.truncf %221 : vector<2x256xf32> to vector<2x256xbf16>
    %c0_87 = arith.constant 0 : index
    %c0_88 = arith.constant 0 : index
    %223 = vector.load %arg8[%c0_87, %c0_88] : memref<256x512xbf16, #tpu.memory_space<vmem>>, vector<256x512xbf16>
    %cst_89 = arith.constant dense<0.000000e+00> : vector<2x512xf32>
    %224 = tpu.matmul %222, %223, %cst_89 {dimension_numbers = #tpu.dot_dimension_numbers<[1], [0], [0], [1], [0, 0, 1, 1], [], []>} : vector<2x256xbf16>, vector<256x512xbf16>, vector<2x512xf32> -> vector<2x512xf32>
    %c10 = arith.constant 10 : index
    %c0_90 = arith.constant 0 : index
    %225 = vector.load %arg18[%c10, %c0_90] : memref<16x512xf32, #tpu.memory_space<vmem>>, vector<2x512xf32>
    %226 = arith.addf %225, %224 : vector<2x512xf32>
    %227 = vector.extract_strided_slice %226 {offsets = [0, 0], sizes = [2, 128], strides = [1, 1]} : vector<2x512xf32> to vector<2x128xf32>
    %cst_91 = arith.constant 5.000000e-01 : f32
    %228 = vector.broadcast %cst_91 : f32 to vector<2x128xf32>
    %229 = arith.mulf %228, %227 : vector<2x128xf32>
    %230 = math.tanh %229 : vector<2x128xf32>
    %cst_92 = arith.constant 5.000000e-01 : f32
    %231 = vector.broadcast %cst_92 : f32 to vector<2x128xf32>
    %232 = arith.mulf %231, %230 : vector<2x128xf32>
    %cst_93 = arith.constant 5.000000e-01 : f32
    %233 = vector.broadcast %cst_93 : f32 to vector<2x128xf32>
    %234 = arith.addf %232, %233 : vector<2x128xf32>
    %235 = vector.extract_strided_slice %226 {offsets = [0, 128], sizes = [2, 128], strides = [1, 1]} : vector<2x512xf32> to vector<2x128xf32>
    %cst_94 = arith.constant 5.000000e-01 : f32
    %236 = vector.broadcast %cst_94 : f32 to vector<2x128xf32>
    %237 = arith.mulf %236, %235 : vector<2x128xf32>
    %238 = math.tanh %237 : vector<2x128xf32>
    %cst_95 = arith.constant 5.000000e-01 : f32
    %239 = vector.broadcast %cst_95 : f32 to vector<2x128xf32>
    %240 = arith.mulf %239, %238 : vector<2x128xf32>
    %cst_96 = arith.constant 5.000000e-01 : f32
    %241 = vector.broadcast %cst_96 : f32 to vector<2x128xf32>
    %242 = arith.addf %240, %241 : vector<2x128xf32>
    %243 = vector.extract_strided_slice %226 {offsets = [0, 256], sizes = [2, 128], strides = [1, 1]} : vector<2x512xf32> to vector<2x128xf32>
    %244 = math.tanh %243 : vector<2x128xf32>
    %245 = vector.extract_strided_slice %226 {offsets = [0, 384], sizes = [2, 128], strides = [1, 1]} : vector<2x512xf32> to vector<2x128xf32>
    %cst_97 = arith.constant 5.000000e-01 : f32
    %246 = vector.broadcast %cst_97 : f32 to vector<2x128xf32>
    %247 = arith.mulf %246, %245 : vector<2x128xf32>
    %248 = math.tanh %247 : vector<2x128xf32>
    %cst_98 = arith.constant 5.000000e-01 : f32
    %249 = vector.broadcast %cst_98 : f32 to vector<2x128xf32>
    %250 = arith.mulf %249, %248 : vector<2x128xf32>
    %cst_99 = arith.constant 5.000000e-01 : f32
    %251 = vector.broadcast %cst_99 : f32 to vector<2x128xf32>
    %252 = arith.addf %250, %251 : vector<2x128xf32>
    %253 = arith.mulf %242, %215 : vector<2x128xf32>
    %254 = arith.mulf %234, %244 : vector<2x128xf32>
    %255 = arith.addf %253, %254 : vector<2x128xf32>
    %256 = math.tanh %255 : vector<2x128xf32>
    %257 = arith.mulf %252, %256 : vector<2x128xf32>
    %258 = vector.extract_strided_slice %257 {offsets = [0, 0], sizes = [1, 128], strides = [1, 1]} : vector<2x128xf32> to vector<1x128xf32>
    %259 = vector.extract_strided_slice %257 {offsets = [1, 0], sizes = [1, 128], strides = [1, 1]} : vector<2x128xf32> to vector<1x128xf32>
    %260 = tpu.concatenate %257, %257 in 1 : vector<2x128xf32>, vector<2x128xf32> -> vector<2x256xf32>
    %261 = arith.mulf %260, %19 : vector<2x256xf32>
    %262 = arith.truncf %261 : vector<2x256xf32> to vector<2x256xbf16>
    %c0_100 = arith.constant 0 : index
    %c0_101 = arith.constant 0 : index
    %263 = vector.load %arg8[%c0_100, %c0_101] : memref<256x512xbf16, #tpu.memory_space<vmem>>, vector<256x512xbf16>
    %cst_102 = arith.constant dense<0.000000e+00> : vector<2x512xf32>
    %264 = tpu.matmul %262, %263, %cst_102 {dimension_numbers = #tpu.dot_dimension_numbers<[1], [0], [0], [1], [0, 0, 1, 1], [], []>} : vector<2x256xbf16>, vector<256x512xbf16>, vector<2x512xf32> -> vector<2x512xf32>
    %c12 = arith.constant 12 : index
    %c0_103 = arith.constant 0 : index
    %265 = vector.load %arg18[%c12, %c0_103] : memref<16x512xf32, #tpu.memory_space<vmem>>, vector<2x512xf32>
    %266 = arith.addf %265, %264 : vector<2x512xf32>
    %267 = vector.extract_strided_slice %266 {offsets = [0, 0], sizes = [2, 128], strides = [1, 1]} : vector<2x512xf32> to vector<2x128xf32>
    %cst_104 = arith.constant 5.000000e-01 : f32
    %268 = vector.broadcast %cst_104 : f32 to vector<2x128xf32>
    %269 = arith.mulf %268, %267 : vector<2x128xf32>
    %270 = math.tanh %269 : vector<2x128xf32>
    %cst_105 = arith.constant 5.000000e-01 : f32
    %271 = vector.broadcast %cst_105 : f32 to vector<2x128xf32>
    %272 = arith.mulf %271, %270 : vector<2x128xf32>
    %cst_106 = arith.constant 5.000000e-01 : f32
    %273 = vector.broadcast %cst_106 : f32 to vector<2x128xf32>
    %274 = arith.addf %272, %273 : vector<2x128xf32>
    %275 = vector.extract_strided_slice %266 {offsets = [0, 128], sizes = [2, 128], strides = [1, 1]} : vector<2x512xf32> to vector<2x128xf32>
    %cst_107 = arith.constant 5.000000e-01 : f32
    %276 = vector.broadcast %cst_107 : f32 to vector<2x128xf32>
    %277 = arith.mulf %276, %275 : vector<2x128xf32>
    %278 = math.tanh %277 : vector<2x128xf32>
    %cst_108 = arith.constant 5.000000e-01 : f32
    %279 = vector.broadcast %cst_108 : f32 to vector<2x128xf32>
    %280 = arith.mulf %279, %278 : vector<2x128xf32>
    %cst_109 = arith.constant 5.000000e-01 : f32
    %281 = vector.broadcast %cst_109 : f32 to vector<2x128xf32>
    %282 = arith.addf %280, %281 : vector<2x128xf32>
    %283 = vector.extract_strided_slice %266 {offsets = [0, 256], sizes = [2, 128], strides = [1, 1]} : vector<2x512xf32> to vector<2x128xf32>
    %284 = math.tanh %283 : vector<2x128xf32>
    %285 = vector.extract_strided_slice %266 {offsets = [0, 384], sizes = [2, 128], strides = [1, 1]} : vector<2x512xf32> to vector<2x128xf32>
    %cst_110 = arith.constant 5.000000e-01 : f32
    %286 = vector.broadcast %cst_110 : f32 to vector<2x128xf32>
    %287 = arith.mulf %286, %285 : vector<2x128xf32>
    %288 = math.tanh %287 : vector<2x128xf32>
    %cst_111 = arith.constant 5.000000e-01 : f32
    %289 = vector.broadcast %cst_111 : f32 to vector<2x128xf32>
    %290 = arith.mulf %289, %288 : vector<2x128xf32>
    %cst_112 = arith.constant 5.000000e-01 : f32
    %291 = vector.broadcast %cst_112 : f32 to vector<2x128xf32>
    %292 = arith.addf %290, %291 : vector<2x128xf32>
    %293 = arith.mulf %282, %255 : vector<2x128xf32>
    %294 = arith.mulf %274, %284 : vector<2x128xf32>
    %295 = arith.addf %293, %294 : vector<2x128xf32>
    %296 = math.tanh %295 : vector<2x128xf32>
    %297 = arith.mulf %292, %296 : vector<2x128xf32>
    %298 = vector.extract_strided_slice %297 {offsets = [0, 0], sizes = [1, 128], strides = [1, 1]} : vector<2x128xf32> to vector<1x128xf32>
    %299 = vector.extract_strided_slice %297 {offsets = [1, 0], sizes = [1, 128], strides = [1, 1]} : vector<2x128xf32> to vector<1x128xf32>
    %300 = tpu.concatenate %297, %297 in 1 : vector<2x128xf32>, vector<2x128xf32> -> vector<2x256xf32>
    %301 = arith.mulf %300, %19 : vector<2x256xf32>
    %302 = arith.truncf %301 : vector<2x256xf32> to vector<2x256xbf16>
    %c0_113 = arith.constant 0 : index
    %c0_114 = arith.constant 0 : index
    %303 = vector.load %arg8[%c0_113, %c0_114] : memref<256x512xbf16, #tpu.memory_space<vmem>>, vector<256x512xbf16>
    %cst_115 = arith.constant dense<0.000000e+00> : vector<2x512xf32>
    %304 = tpu.matmul %302, %303, %cst_115 {dimension_numbers = #tpu.dot_dimension_numbers<[1], [0], [0], [1], [0, 0, 1, 1], [], []>} : vector<2x256xbf16>, vector<256x512xbf16>, vector<2x512xf32> -> vector<2x512xf32>
    %c14 = arith.constant 14 : index
    %c0_116 = arith.constant 0 : index
    %305 = vector.load %arg18[%c14, %c0_116] : memref<16x512xf32, #tpu.memory_space<vmem>>, vector<2x512xf32>
    %306 = arith.addf %305, %304 : vector<2x512xf32>
    %307 = vector.extract_strided_slice %306 {offsets = [0, 0], sizes = [2, 128], strides = [1, 1]} : vector<2x512xf32> to vector<2x128xf32>
    %cst_117 = arith.constant 5.000000e-01 : f32
    %308 = vector.broadcast %cst_117 : f32 to vector<2x128xf32>
    %309 = arith.mulf %308, %307 : vector<2x128xf32>
    %310 = math.tanh %309 : vector<2x128xf32>
    %cst_118 = arith.constant 5.000000e-01 : f32
    %311 = vector.broadcast %cst_118 : f32 to vector<2x128xf32>
    %312 = arith.mulf %311, %310 : vector<2x128xf32>
    %cst_119 = arith.constant 5.000000e-01 : f32
    %313 = vector.broadcast %cst_119 : f32 to vector<2x128xf32>
    %314 = arith.addf %312, %313 : vector<2x128xf32>
    %315 = vector.extract_strided_slice %306 {offsets = [0, 128], sizes = [2, 128], strides = [1, 1]} : vector<2x512xf32> to vector<2x128xf32>
    %cst_120 = arith.constant 5.000000e-01 : f32
    %316 = vector.broadcast %cst_120 : f32 to vector<2x128xf32>
    %317 = arith.mulf %316, %315 : vector<2x128xf32>
    %318 = math.tanh %317 : vector<2x128xf32>
    %cst_121 = arith.constant 5.000000e-01 : f32
    %319 = vector.broadcast %cst_121 : f32 to vector<2x128xf32>
    %320 = arith.mulf %319, %318 : vector<2x128xf32>
    %cst_122 = arith.constant 5.000000e-01 : f32
    %321 = vector.broadcast %cst_122 : f32 to vector<2x128xf32>
    %322 = arith.addf %320, %321 : vector<2x128xf32>
    %323 = vector.extract_strided_slice %306 {offsets = [0, 256], sizes = [2, 128], strides = [1, 1]} : vector<2x512xf32> to vector<2x128xf32>
    %324 = math.tanh %323 : vector<2x128xf32>
    %325 = vector.extract_strided_slice %306 {offsets = [0, 384], sizes = [2, 128], strides = [1, 1]} : vector<2x512xf32> to vector<2x128xf32>
    %cst_123 = arith.constant 5.000000e-01 : f32
    %326 = vector.broadcast %cst_123 : f32 to vector<2x128xf32>
    %327 = arith.mulf %326, %325 : vector<2x128xf32>
    %328 = math.tanh %327 : vector<2x128xf32>
    %cst_124 = arith.constant 5.000000e-01 : f32
    %329 = vector.broadcast %cst_124 : f32 to vector<2x128xf32>
    %330 = arith.mulf %329, %328 : vector<2x128xf32>
    %cst_125 = arith.constant 5.000000e-01 : f32
    %331 = vector.broadcast %cst_125 : f32 to vector<2x128xf32>
    %332 = arith.addf %330, %331 : vector<2x128xf32>
    %333 = arith.mulf %322, %295 : vector<2x128xf32>
    %334 = arith.mulf %314, %324 : vector<2x128xf32>
    %335 = arith.addf %333, %334 : vector<2x128xf32>
    %336 = math.tanh %335 : vector<2x128xf32>
    %337 = arith.mulf %332, %336 : vector<2x128xf32>
    %338 = vector.extract_strided_slice %337 {offsets = [0, 0], sizes = [1, 128], strides = [1, 1]} : vector<2x128xf32> to vector<1x128xf32>
    %339 = vector.extract_strided_slice %337 {offsets = [1, 0], sizes = [1, 128], strides = [1, 1]} : vector<2x128xf32> to vector<1x128xf32>
    %340 = tpu.concatenate %58, %98, %138, %178, %218, %258, %298, %338 in 0 : vector<1x128xf32>, vector<1x128xf32>, vector<1x128xf32>, vector<1x128xf32>, vector<1x128xf32>, vector<1x128xf32>, vector<1x128xf32>, vector<1x128xf32> -> vector<8x128xf32>
    %c0_126 = arith.constant 0 : index
    %c0_127 = arith.constant 0 : index
    %c0_128 = arith.constant 0 : index
    %341 = vector.load %arg12[%c0_126, %c0_127, %c0_128] : memref<1x8x256xf32, #tpu.memory_space<vmem>>, vector<1x8x128xf32>
    %342 = vector.shape_cast %341 : vector<1x8x128xf32> to vector<8x128xf32>
    %343 = vector.shape_cast %340 : vector<8x128xf32> to vector<1x8x128xf32>
    tpu.vector_store %arg12[%c0_126, %c0_127, %c0_128], %343 {strides = array<i32>} : memref<1x8x256xf32, #tpu.memory_space<vmem>>, vector<1x8x128xf32>,
    %344 = tpu.concatenate %339, %299, %259, %219, %179, %139, %99, %59 in 0 : vector<1x128xf32>, vector<1x128xf32>, vector<1x128xf32>, vector<1x128xf32>, vector<1x128xf32>, vector<1x128xf32>, vector<1x128xf32>, vector<1x128xf32> -> vector<8x128xf32>
    %c0_129 = arith.constant 0 : index
    %c0_130 = arith.constant 0 : index
    %c128 = arith.constant 128 : index
    %345 = vector.load %arg12[%c0_129, %c0_130, %c128] : memref<1x8x256xf32, #tpu.memory_space<vmem>>, vector<1x8x128xf32>
    %346 = vector.shape_cast %345 : vector<1x8x128xf32> to vector<8x128xf32>
    %347 = vector.shape_cast %344 : vector<8x128xf32> to vector<1x8x128xf32>
    tpu.vector_store %arg12[%c0_129, %c0_130, %c128], %347 {strides = array<i32>} : memref<1x8x256xf32, #tpu.memory_space<vmem>>, vector<1x8x128xf32>,
    %c0_131 = arith.constant 0 : index
    %c0_132 = arith.constant 0 : index
    %c0_133 = arith.constant 0 : index
    %348 = vector.load %arg13[%c0_131, %c0_132, %c0_133] : memref<1x2x128xf32, #tpu.memory_space<vmem>>, vector<1x2x128xf32>
    %349 = vector.shape_cast %348 : vector<1x2x128xf32> to vector<2x128xf32>
    %350 = vector.shape_cast %337 : vector<2x128xf32> to vector<1x2x128xf32>
    tpu.vector_store %arg13[%c0_131, %c0_132, %c0_133], %350 {strides = array<i32>} : memref<1x2x128xf32, #tpu.memory_space<vmem>>, vector<1x2x128xf32>,
    %c0_134 = arith.constant 0 : index
    %c0_135 = arith.constant 0 : index
    %c0_136 = arith.constant 0 : index
    %351 = vector.load %arg14[%c0_134, %c0_135, %c0_136] : memref<1x2x128xf32, #tpu.memory_space<vmem>>, vector<1x2x128xf32>
    %352 = vector.shape_cast %351 : vector<1x2x128xf32> to vector<2x128xf32>
    %353 = vector.shape_cast %335 : vector<2x128xf32> to vector<1x2x128xf32>
    tpu.vector_store %arg14[%c0_134, %c0_135, %c0_136], %353 {strides = array<i32>} : memref<1x2x128xf32, #tpu.memory_space<vmem>>, vector<1x2x128xf32>,
    %354 = vector.extract_strided_slice %337 {offsets = [0, 0], sizes = [1, 128], strides = [1, 1]} : vector<2x128xf32> to vector<1x128xf32>
    %c0_137 = arith.constant 0 : index
    %c0_138 = arith.constant 0 : index
    %355 = vector.load %arg10[%c0_137, %c0_138] : memref<256x64xf32, #tpu.memory_space<vmem>>, vector<128x64xf32>
    %cst_139 = arith.constant dense<0.000000e+00> : vector<1x64xf32>
    %356 = tpu.matmul %354, %355, %cst_139 {dimension_numbers = #tpu.dot_dimension_numbers<[1], [0], [0], [1], [0, 0, 1, 1], [], []>} : vector<1x128xf32>, vector<128x64xf32>, vector<1x64xf32> -> vector<1x64xf32>
    %357 = vector.extract_strided_slice %337 {offsets = [1, 0], sizes = [1, 128], strides = [1, 1]} : vector<2x128xf32> to vector<1x128xf32>
    %c128_140 = arith.constant 128 : index
    %c0_141 = arith.constant 0 : index
    %358 = vector.load %arg10[%c128_140, %c0_141] : memref<256x64xf32, #tpu.memory_space<vmem>>, vector<128x64xf32>
    %cst_142 = arith.constant dense<0.000000e+00> : vector<1x64xf32>
    %359 = tpu.matmul %357, %358, %cst_142 {dimension_numbers = #tpu.dot_dimension_numbers<[1], [0], [0], [1], [0, 0, 1, 1], [], []>} : vector<1x128xf32>, vector<128x64xf32>, vector<1x64xf32> -> vector<1x64xf32>
    %360 = arith.addf %356, %359 : vector<1x64xf32>
    %c0_143 = arith.constant 0 : index
    %c0_144 = arith.constant 0 : index
    %361 = vector.load %arg11[%c0_143, %c0_144] : memref<1x64xf32, #tpu.memory_space<vmem>>, vector<1x64xf32>
    %362 = arith.addf %360, %361 : vector<1x64xf32>
    %363 = vector.extract_strided_slice %362 {offsets = [0, 32], sizes = [1, 32], strides = [1, 1]} : vector<1x64xf32> to vector<1x32xf32>
    %364 = vector.extract_strided_slice %362 {offsets = [0, 0], sizes = [1, 32], strides = [1, 1]} : vector<1x64xf32> to vector<1x32xf32>
    %c0_145 = arith.constant 0 : index
    %c0_146 = arith.constant 0 : index
    %c0_147 = arith.constant 0 : index
    %365 = vector.load %arg15[%c0_145, %c0_146, %c0_147] : memref<1x1x32xf32, #tpu.memory_space<vmem>>, vector<1x1x32xf32>
    %366 = vector.shape_cast %365 : vector<1x1x32xf32> to vector<1x32xf32>
    %367 = vector.shape_cast %364 : vector<1x32xf32> to vector<1x1x32xf32>
    tpu.vector_store %arg15[%c0_145, %c0_146, %c0_147], %367 {strides = array<i32>} : memref<1x1x32xf32, #tpu.memory_space<vmem>>, vector<1x1x32xf32>,
    %c0_148 = arith.constant 0 : index
    %c0_149 = arith.constant 0 : index
    %c0_150 = arith.constant 0 : index
    %368 = vector.load %arg16[%c0_148, %c0_149, %c0_150] : memref<1x1x32xf32, #tpu.memory_space<vmem>>, vector<1x1x32xf32>
    %369 = vector.shape_cast %368 : vector<1x1x32xf32> to vector<1x32xf32>
    %370 = vector.shape_cast %363 : vector<1x32xf32> to vector<1x1x32xf32>
    tpu.vector_store %arg16[%c0_148, %c0_149, %c0_150], %370 {strides = array<i32>} : memref<1x1x32xf32, #tpu.memory_space<vmem>>, vector<1x1x32xf32>,
    %cst_151 = arith.constant 5.000000e-01 : f32
    %371 = vector.broadcast %cst_151 : f32 to vector<1x32xf32>
    %372 = arith.mulf %371, %363 : vector<1x32xf32>
    %373 = math.exp %372 : vector<1x32xf32>
    %c0_152 = arith.constant 0 : index
    %c0_153 = arith.constant 0 : index
    %c0_154 = arith.constant 0 : index
    %374 = vector.load %arg17[%c0_152, %c0_153, %c0_154] : memref<1x1x32xf32, #tpu.memory_space<vmem>>, vector<1x1x32xf32>
    %375 = vector.shape_cast %374 : vector<1x1x32xf32> to vector<1x32xf32>
    %376 = vector.shape_cast %373 : vector<1x32xf32> to vector<1x1x32xf32>
    tpu.vector_store %arg17[%c0_152, %c0_153, %c0_154], %376 {strides = array<i32>} : memref<1x1x32xf32, #tpu.memory_space<vmem>>, vector<1x1x32xf32>,
    return
  }
  func.func @transform_0(%arg0: i32) -> (i32, i32, i32) {
    %c0_i32 = arith.constant 0 : i32
    %c0_i32_0 = arith.constant 0 : i32
    %c0_i32_1 = arith.constant 0 : i32
    return %arg0, %c0_i32, %c0_i32_0 : i32, i32, i32
  }
  func.func @transform_1(%arg0: i32) -> (i32, i32, i32) {
    %c0_i32 = arith.constant 0 : i32
    %c0_i32_0 = arith.constant 0 : i32
    %c0_i32_1 = arith.constant 0 : i32
    return %arg0, %c0_i32, %c0_i32_0 : i32, i32, i32
  }
  func.func @transform_2(%arg0: i32) -> (i32, i32, i32) {
    %c0_i32 = arith.constant 0 : i32
    %c0_i32_0 = arith.constant 0 : i32
    %c0_i32_1 = arith.constant 0 : i32
    return %arg0, %c0_i32, %c0_i32_0 : i32, i32, i32
  }
  func.func @transform_3(%arg0: i32) -> (i32, i32) {
    %c0_i32 = arith.constant 0 : i32
    %c0_i32_0 = arith.constant 0 : i32
    %c0_i32_1 = arith.constant 0 : i32
    return %c0_i32, %c0_i32_0 : i32, i32
  }
  func.func @transform_4(%arg0: i32) -> (i32, i32) {
    %c0_i32 = arith.constant 0 : i32
    %c0_i32_0 = arith.constant 0 : i32
    %c0_i32_1 = arith.constant 0 : i32
    return %c0_i32, %c0_i32_0 : i32, i32
  }
  func.func @transform_5(%arg0: i32) -> (i32, i32) {
    %c0_i32 = arith.constant 0 : i32
    %c0_i32_0 = arith.constant 0 : i32
    %c0_i32_1 = arith.constant 0 : i32
    return %c0_i32, %c0_i32_0 : i32, i32
  }
  func.func @transform_6(%arg0: i32) -> (i32, i32) {
    %c0_i32 = arith.constant 0 : i32
    %c0_i32_0 = arith.constant 0 : i32
    %c0_i32_1 = arith.constant 0 : i32
    return %c0_i32, %c0_i32_0 : i32, i32
  }
  func.func @transform_7(%arg0: i32) -> (i32, i32) {
    %c0_i32 = arith.constant 0 : i32
    %c0_i32_0 = arith.constant 0 : i32
    %c0_i32_1 = arith.constant 0 : i32
    return %c0_i32, %c0_i32_0 : i32, i32
  }
  func.func @transform_8(%arg0: i32) -> (i32, i32) {
    %c0_i32 = arith.constant 0 : i32
    %c0_i32_0 = arith.constant 0 : i32
    %c0_i32_1 = arith.constant 0 : i32
    return %c0_i32, %c0_i32_0 : i32, i32
  }
  func.func @transform_9(%arg0: i32) -> (i32, i32) {
    %c0_i32 = arith.constant 0 : i32
    %c0_i32_0 = arith.constant 0 : i32
    %c0_i32_1 = arith.constant 0 : i32
    return %c0_i32, %c0_i32_0 : i32, i32
  }
  func.func @transform_10(%arg0: i32) -> (i32, i32) {
    %c0_i32 = arith.constant 0 : i32
    %c0_i32_0 = arith.constant 0 : i32
    %c0_i32_1 = arith.constant 0 : i32
    return %c0_i32, %c0_i32_0 : i32, i32
  }
  func.func @transform_11(%arg0: i32) -> (i32, i32, i32) {
    %c0_i32 = arith.constant 0 : i32
    %c0_i32_0 = arith.constant 0 : i32
    %c0_i32_1 = arith.constant 0 : i32
    return %arg0, %c0_i32, %c0_i32_0 : i32, i32, i32
  }
  func.func @transform_12(%arg0: i32) -> (i32, i32, i32) {
    %c0_i32 = arith.constant 0 : i32
    %c0_i32_0 = arith.constant 0 : i32
    %c0_i32_1 = arith.constant 0 : i32
    return %arg0, %c0_i32, %c0_i32_0 : i32, i32, i32
  }
  func.func @transform_13(%arg0: i32) -> (i32, i32, i32) {
    %c0_i32 = arith.constant 0 : i32
    %c0_i32_0 = arith.constant 0 : i32
    %c0_i32_1 = arith.constant 0 : i32
    return %arg0, %c0_i32, %c0_i32_0 : i32, i32, i32
  }
  func.func @transform_14(%arg0: i32) -> (i32, i32, i32) {
    %c0_i32 = arith.constant 0 : i32
    %c0_i32_0 = arith.constant 0 : i32
    %c0_i32_1 = arith.constant 0 : i32
    return %arg0, %c0_i32, %c0_i32_0 : i32, i32, i32
  }
  func.func @transform_15(%arg0: i32) -> (i32, i32, i32) {
    %c0_i32 = arith.constant 0 : i32
    %c0_i32_0 = arith.constant 0 : i32
    %c0_i32_1 = arith.constant 0 : i32
    return %arg0, %c0_i32, %c0_i32_0 : i32, i32, i32
  }
  func.func @transform_16(%arg0: i32) -> (i32, i32, i32) {
    %c0_i32 = arith.constant 0 : i32
    %c0_i32_0 = arith.constant 0 : i32
    %c0_i32_1 = arith.constant 0 : i32
    return %arg0, %c0_i32, %c0_i32_0 : i32, i32, i32
  }
}

</mosaic_0001>

<bundles_post_ra>
// kernel: tpu_custom_call.1
= control target key start
LH: loop header
LB: loop body
LE: loop exit
PB: predicated region body
PF: predicated region fallthrough
CT: control target
= control target key end

     0   :  { %s6542_s0 = inlined_call_operand.vmem [shape: bf16[2,16,512], index: 0, kind: input, shape index: {}]   ;;  %s6543_s1 = inlined_call_operand.vmem [shape: f32[2,1,40], index: 1, kind: input, shape index: {}]   ;;  %s6544_s2 = inlined_call_operand.vmem [shape: f32[2,2,128], index: 2, kind: input, shape index: {}]   ;;  %s6545_s3 = inlined_call_operand.vmem [shape: f32[40,256], index: 3, kind: input, shape index: {}]   ;;  %s6546_s4 = inlined_call_operand.vmem [shape: f32[1,256], index: 4, kind: input, shape index: {}]   ;;  %s6547_s5 = inlined_call_operand.hbm [shape: bf16[512,512], index: 5, kind: input, shape index: {}]   ;;  %s6548_s6 = inlined_call_operand.vmem [shape: f32[2,512], index: 6, kind: input, shape index: {}]   ;;  %s6549_s7 = inlined_call_operand.hbm [shape: bf16[256,512], index: 7, kind: input, shape index: {}]   ;;  %s6550_s8 = inlined_call_operand.vmem [shape: f32[2,256], index: 8, kind: input, shape index: {}]   ;;  %s6551_s9 = inlined_call_operand.vmem [shape: f32[256,64], index: 9, kind: input, shape index: {}]   ;;  %s6552_s10 = inlined_call_operand.vmem [shape: f32[1,64], index: 10, kind: input, shape index: {}]   ;;  %s6553_s11 = inlined_call_operand.hbm [shape: f32[2,8,256], index: 11, kind: output, shape index: {0}]   ;;  %s6554_s12 = inlined_call_operand.hbm [shape: f32[2,2,128], index: 12, kind: output, shape index: {1}]   ;;  %s6555_s13 = inlined_call_operand.hbm [shape: f32[2,2,128], index: 13, kind: output, shape index: {2}]   ;;  %s6556_s14 = inlined_call_operand.hbm [shape: f32[2,1,32], index: 14, kind: output, shape index: {3}]   ;;  %s6557_s15 = inlined_call_operand.hbm [shape: f32[2,1,32], index: 15, kind: output, shape index: {4}]   ;;  %s6558_s16 = inlined_call_operand.hbm [shape: f32[2,1,32], index: 16, kind: output, shape index: {5}]  }
   0x1   :  { %6695 = sst [smem:[#allocation63_spill]] %s6542_s0 }
   0x2   :  { %6696 = sst [smem:[#allocation64_spill]] %s6543_s1 }
   0x3   :  { %6697 = sst [smem:[#allocation65_spill]] %s6544_s2 }
   0x4   :  { %6698 = sst [smem:[#allocation66_spill]] %s6545_s3 }
   0x5   :  { %6699 = sst [smem:[#allocation67_spill]] %s6553_s11 }
   0x6   :  { %6700 = sst [smem:[#allocation68_spill]] %s6557_s15 }
   0x7   :  { %6701 = sst [smem:[#allocation69_spill]] %s6558_s16 }
   0x8   :  { %22 = vsyncpa [#allocation4], 0 }
   0x9   :  { %23 = vsyncpa [#allocation7], 0 }
   0xa   :  { %24 = vsyncpa [#allocation5], 0 }
   0xb   :  { %26 = vsyncpa [#allocation5 + $0x1], 0 }
   0xc   :  { %27 = vsyncpa [#allocation10], 0 }
   0xd   :  { %29 = vsyncpa [#allocation10 + $0x1], 0 }
   0xe   :  { %30 = vsyncpa [#allocation13], 0 }
   0xf   :  { %32 = vsyncpa [#allocation13 + $0x1], 0 }
  0x10   :  { %33 = vsyncpa [#allocation16], 0 }
  0x11   :  { %35 = vsyncpa [#allocation16 + $0x1], 0  ;;  %s5090_s21 = smov 0   ;;  %s5092_s22 = smov 0  }
  0x12   :  { %s5094_s23 = smov 0   ;;  %s5096_s24 = smov 0  }
  0x13 LB: > { %6702 = sst [smem:[#allocation23_spill]] %s4976_s21  ;;  %s5111_s25 = sadd.s32 4294967295, %s4988_s24   ;;  %s4988_s24 = sphi %s5096_s24, %s6937_s24   ;;  %s4984_s23 = sphi %s5094_s23, %s6939_s23   ;;  %s4980_s22 = sphi %s5092_s22, %s6941_s22   ;;  %s4976_s21 = sphi %s5090_s21, %s6940_s21  }
  0x14   : > { %6703 = sst [smem:[#allocation24_spill]] %s4984_s23  ;;  %s6559_s26 = sadd.s32 4294967294, %s4988_s24  }
  0x15   : > { %6704 = sst [smem:[#allocation25_spill]] %s4988_s24  ;;  %s5115_s27 = sadd.s32 1, %s4988_s24  }
  0x16   : > { %6705 = sst [smem:[#allocation26_spill]] %s5115_s27  ;;  %s294_s28 = sadd.s32 1, %s4984_s23 }
  0x17   : > { %s291_s29 = ssub.s32 %s4988_s24, %s5115_s27  ;;  %p304_p0 = scmp.ne.s32.totalorder %s4984_s23, %s4980_s22 }
  0x18   : > { %p292_p1 = scmp.eq.s32.totalorder %s291_s29, 0  ;;  %p305_p2 = scmp.eq.s32.totalorder %s5111_s25, 1 }
  0x19   : > { %p310_p3 = scmp.ne.s32.totalorder %s4980_s22, %s4976_s21  ;;  %p311_p4 = scmp.eq.s32.totalorder %s6559_s26, 1 }
  0x1a   : > { %s5128_s30 = scalar_select %p292_p1, %s4984_s23, %s294_s28  }
  0x1b   : > { %p5130_p5 = por %p305_p2, %p304_p0  ;;  %p5134_p6 = por %p311_p4, %p310_p3 }
  0x1c   : > { %6706 = sst [smem:[#allocation27_spill]] %s5128_s30  ;;  %p3775_p7 = scmp.ge.s32.totalorder %s4988_s24, 1 }
  0x1d   : > { %s6707_s0 = scalar_select %p5130_p5, 1, 0 }
  0x1e   : > { %s6708_s17 = scalar_select %p5134_p6, 1, 0 }
  0x1f   : > { %p448_p8 = scmp.lt.s32.totalorder %s4988_s24, 3  ;;  %p6567_p9 = scmp.eq.s32.totalorder %s5111_s25, 0 }
  0x20   : > { %6709 = sst [smem:[#allocation28_spill]] %s6708_s17  ;;  %s4990_s19 = smov [#allocation3]  }
  0x21   : > { %p5141_p10 = pnand %p3775_p7, %p448_p8  ;;  %s466_s20 = sshll.u32 %s4990_s19, 4  ;;  %s467_s20 = int_to_ptr.vmem [resolvable:$true] %s466_s20 }
  0x22   : > { %s4991_s29 = smov [#allocation6]   ;;  %s4710_s27 = scalar_lea.hbm %s6547_s5, 16384 }
  0x23   : > { %s6710_s18 = scalar_select %p5141_p10, 1, 0 }
  0x24   : > { %p4195_p11 = pneg %p5141_p10  ;;  %s482_s26 = sshll.u32 %s4991_s29, 4  ;;  %s5153_s26 = int_to_ptr.vmem [resolvable:$true] %s482_s26 }
  0x25   : > { %p4711_p13 = scmp.ne.s32.totalorder %s6547_s5, %s4710_s27  ;;  %p4717_p3 = scmp.lt.u32.totalorder %s4710_s27, %s6547_s5 }
  0x26   : > { %p5149_p12 = pnand %p6567_p9, %p4195_p11 }
  0x28   : > { %p4712_p0 = pneg %p5149_p12 }
  0x2a   : > { %p4713_p1 = pnand %p4712_p0, %p4711_p13 }
  0x2c   : > { %p4714_p2 = pneg %p4713_p1 }
  0x2e   : > { %p4719_p4 = pnand %p4717_p3, %p4714_p2 }
  0x30   : > { %4722 = shalt.err (!%p4719_p4)
}
  0x31   : > { %s4723_s29 = scalar_lea.vmem %s467_s20, 16384  ;;  %p4731_p9 = scmp.lt.s32.totalorder %s467_s20, %s467_s20 }
  0x32   : > { %p4724_p7 = scmp.ne.s32.totalorder %s467_s20, %s4723_s29  ;;  %p4732_p6 = scmp.lt.s32.totalorder %s4723_s29, %s4723_s29 }
  0x34   : > { %p4726_p8 = pnand %p4724_p7, %p4712_p0  ;;  %p4733_p5 = por %p4732_p6, %p4731_p9 }
  0x36   : > { %p4727_p11 = pneg %p4726_p8 }
  0x38   : > { %p4734_p10 = pnand %p4733_p5, %p4727_p11 }
  0x3a   : > { %4737 = shalt.err (!%p4734_p10)
}
  0x3b   : > { %s4992_s23 = smov 256   ;;  %s4993_s30 = smov 16  }
  0x3c   : > { %4198 = dma.hbm_to_vmem [thread:$0]  (!%p5149_p12), %s6547_s5, 16384, %s467_s20, [#allocation4], %s4992_s23, %s4992_s23, %s4993_s30  }
  0x3d   : > { %s4738_s19 = scalar_lea.hbm %s6549_s7, 8192 }
  0x3e   : > { %p4739_p13 = scmp.ne.s32.totalorder %s6549_s7, %s4738_s19  ;;  %p4745_p9 = scmp.lt.u32.totalorder %s4738_s19, %s6549_s7 }
  0x40   : > { %p4741_p5 = pnand %p4739_p13, %p4712_p0 }
  0x42   : > { %p4742_p6 = pneg %p4741_p5 }
  0x44   : > { %p4747_p10 = pnand %p4745_p9, %p4742_p6 }
  0x46   : > { %4750 = shalt.err (!%p4747_p10)
}
  0x47   : > { %s4751_s20 = scalar_lea.vmem %s5153_s26, 8192  ;;  %p4759_p4 = scmp.lt.s32.totalorder %s5153_s26, %s5153_s26 }
  0x48   : > { %p4752_p1 = scmp.ne.s32.totalorder %s5153_s26, %s4751_s20  ;;  %p4760_p7 = scmp.lt.s32.totalorder %s4751_s20, %s4751_s20 }
  0x4a   : > { %p4754_p2 = pnand %p4752_p1, %p4712_p0  ;;  %p4761_p8 = por %p4760_p7, %p4759_p4 }
  0x4c   : > { %p4755_p3 = pneg %p4754_p2 }
  0x4e   : > { %p4762_p11 = pnand %p4761_p8, %p4755_p3 }
  0x50   : > { %4765 = shalt.err (!%p4762_p11)
}
  0x51   : > { %4201 = dma.hbm_to_vmem [thread:$0]  (!%p5149_p12), %s6549_s7, 8192, %s5153_s26, [#allocation7], %s4992_s23, %s4992_s23, %s4993_s30  }
  0x52   : > { %p6712_p13 = scmp.ne.s32.totalorder %s6710_s18, 0 }
  0x54   : > { %528 = sbr.rel (%p6712_p13) target bundleno = 2810 (0xafa), region = 64 }
  0x5b   : > { %p6713_p5 = scmp.eq.s32.totalorder %s5111_s25, 0 }
  0x5d   : > { %4951 = dma.done.wait (%p6713_p5), [#allocation4], 16384   ;;  %p6714_p0 = pmov %p6713_p5 }
  0x5f   : > { %4953 = vsyncadd (%p6714_p0), [#allocation4], 4294950912  ;;  %p6715_p6 = pmov %p6714_p0 }
  0x60   : > { %p6716_p9 = pmov %p6714_p0 }
  0x61   : > { %4955 = dma.done.wait (%p6715_p6), [#allocation7], 8192  }
  0x62   : > { %4957 = vsyncadd (%p6716_p9), [#allocation7], 4294959104  ;;  %v6573_v0 = vmov 0.0   ;;  %s6717_s3 = sld [smem:[#allocation66_spill]]  ;;  %p611_p12 = scmp.lt.s32.totalorder %s5111_s25, 1  ;;  %vm646_vm0 = vcmask 326656  }
  0x63   : > { %714 = vmatprep.mubr.f32.mxu0 %v6573_v0  ;;  %v4267_v4 = vld [vmem:[#allocation3 + $0x4] ss:$16 sps:$4 sm:$0xff]   ;;  %v4269_v7 = vld [vmem:[#allocation3] ss:$16 sps:$4 sm:$0xff]   ;;  %s6718_s1 = sld [smem:[#allocation64_spill]]  ;;  %s6719_s20 = sld [smem:[#allocation63_spill]] }
  0x64   : > { %1574 = vmatprep.subr.bf16.mxu1 %v4267_v4  ;;  %v4270_v12 = vld [vmem:[#allocation3 + $0x24] ss:$16 sps:$4 sm:$0xff]   ;;  %s5241_s26 = scalar_select %p611_p12, %s5111_s25, 1  ;;  %v4272_v16 = vld [vmem:[#allocation3 + $0x20] ss:$16 sps:$4 sm:$0xff]   ;;  %vm724_vm1 = vcmask 1040384  }
  0x65   : > { %1575 = vmatpush1.bf16.msra.mxu1 %v4269_v7  ;;  %v4273_v17 = vld [vmem:[#allocation3 + $0x44] ss:$16 sps:$4 sm:$0xff]   ;;  %v4275_v20 = vld [vmem:[#allocation3 + $0x40] ss:$16 sps:$4 sm:$0xff]   ;;  %v4278_v22 = vld [vmem:[#allocation3 + $0xc] ss:$16 sps:$4 sm:$0xff]  }
  0x66   : > { %1576 = vmatprep.subr.bf16.mxu1 %v4270_v12  ;;  %v4279_v21 = vld [vmem:[#allocation3 + $0x64] ss:$16 sps:$4 sm:$0xff]   ;;  %v4276_v24 = vld [vmem:[#allocation3 + $0x8] ss:$16 sps:$4 sm:$0xff]   ;;  %v4281_v25 = vld [vmem:[#allocation3 + $0x60] ss:$16 sps:$4 sm:$0xff]  }
  0x67   : > { %v4284_v26 = vld [vmem:[#allocation3 + $0x2c] ss:$16 sps:$4 sm:$0xff]   ;;  %v4285_v27 = vld [vmem:[#allocation3 + $0x84] ss:$16 sps:$4 sm:$0xff]   ;;  %v4282_v28 = vld [vmem:[#allocation3 + $0x28] ss:$16 sps:$4 sm:$0xff]  }
  0x68   : > { %v625_v1 = vld [vmem:[%s6717_s3 + $0x8] sm:$0xff]  ;;  %v627_v2 = vld [vmem:[%s6717_s3 + $0x18] sm:$0xff]  ;;  %v624_v5 = vld [vmem:[%s6717_s3] sm:$0xff]  ;;  %s3997_s17 = sshll.u32 %s5241_s26, 5  ;;  %vm899_vm2 = vcmask 1041408   ;;  %vm904_vm3 = vcmask 1043456  }
  0x69   : > { %v4103_v3 = vpack.c.bf16 %v627_v2, %v625_v1  ;;  %v626_v6 = vld [vmem:[%s6717_s3 + $0x10] sm:$0xff]  ;;  %v629_v8 = vld [vmem:[%s6717_s3 + $0x28] sm:$0xff]  ;;  %v631_v10 = vld [vmem:[%s6717_s3 + $0x38] sm:$0xff]  ;;  %1577 = vmatpush1.bf16.msra.mxu1 %v4272_v16  ;;  %s618_s27 = scalar_lea.vmem %s6718_s1, %s5241_s26  ;;  %s5257_s11 = scalar_lea.vmem %s6719_s20, %s3997_s17  ;;  %vm909_vm4 = vcmask 1045504   ;;  %vm3207_vm5 = vcmask 1042432   ;;  %vm3210_vm6 = vcmask 1044480  }
  0x6a   : > { %v4105_v9 = vpack.c.bf16 %v626_v6, %v624_v5  ;;  %v4107_v11 = vpack.c.bf16 %v631_v10, %v629_v8  ;;  %v628_v13 = vld [vmem:[%s6717_s3 + $0x20] sm:$0xff]  ;;  %v630_v14 = vld [vmem:[%s6717_s3 + $0x30] sm:$0xff]  ;;  %v633_v18 = vld [vmem:[%s6717_s3 + $0x48] sm:$0xff]  ;;  %1578 = vmatprep.subr.bf16.mxu1 %v4273_v17  ;;  %s3787_s21 = sshll.u32 %s5241_s26, 1  ;;  %s6765_s2 = sld [smem:[#allocation65_spill]]  ;;  %vm4997_vm7 = vmmov 0  }
  0x6b   : > { %4104 = vmatprep.subr.bf16.mxu0 %v4103_v3  ;;  %v4109_v15 = vpack.c.bf16 %v630_v14, %v628_v13  ;;  %v632_v19 = vld [vmem:[%s6717_s3 + $0x40] sm:$0xff]  ;;  %v4290_v30 = vld [vmem:[#allocation3 + $0x4c] ss:$16 sps:$4 sm:$0xff]   ;;  %v4288_v32 = vld [vmem:[#allocation3 + $0x48] ss:$16 sps:$4 sm:$0xff]   ;;  %vm3213_vm8 = vcmask 1046528  }
  0x6c   : > { %4106 = vmatpush1.bf16.msra.mxu0 %v4105_v9  ;;  %v623_v23 = vld [vmem:[%s618_s27] sm:$0x1]  ;;  %v4291_v31 = vld [vmem:[#allocation3 + $0xa4] ss:$16 sps:$4 sm:$0xff]   ;;  %v4296_v34 = vld [vmem:[#allocation3 + $0x6c] ss:$16 sps:$4 sm:$0xff]  }
  0x6d   : > { %4108 = vmatprep.subr.bf16.mxu0 %v4107_v11  ;;  %1579 = vmatpush1.bf16.msra.mxu1 %v4275_v20  ;;  %v4287_v29 = vld [vmem:[#allocation3 + $0x80] ss:$16 sps:$4 sm:$0xff]   ;;  %v4297_v35 = vld [vmem:[#allocation3 + $0xc4] ss:$16 sps:$4 sm:$0xff]   ;;  %v4294_v36 = vld [vmem:[#allocation3 + $0x68] ss:$16 sps:$4 sm:$0xff]  }
  0x6e   : > { %1580 = vmatprep.subr.bf16.mxu1 %v4279_v21  ;;  %v4293_v33 = vld [vmem:[#allocation3 + $0xa0] ss:$16 sps:$4 sm:$0xff]   ;;  %v4302_v38 = vld [vmem:[#allocation3 + $0x8c] ss:$16 sps:$4 sm:$0xff]   ;;  %v4303_v39 = vld [vmem:[#allocation3 + $0xe4] ss:$16 sps:$4 sm:$0xff]  }
  0x6f   : > { %v4299_v37 = vld [vmem:[#allocation3 + $0xc0] ss:$16 sps:$4 sm:$0xff]   ;;  %v4300_v40 = vld [vmem:[#allocation3 + $0x88] ss:$16 sps:$4 sm:$0xff]   ;;  %v4308_v42 = vld [vmem:[#allocation3 + $0xac] ss:$16 sps:$4 sm:$0xff]  }
  0x70   : > { %4110 = vmatpush1.bf16.msra.mxu0 %v4109_v15  ;;  %v4305_v41 = vld [vmem:[#allocation3 + $0xe0] ss:$16 sps:$4 sm:$0xff]   ;;  %v4309_v43 = vld [vmem:[#allocation3 + $0x104] ss:$16 sps:$4 sm:$0xff]   ;;  %v4306_v44 = vld [vmem:[#allocation3 + $0xa8] ss:$16 sps:$4 sm:$0xff]   ;;  %s622_s17 = scalar_lea.vmem %s6765_s2, %s3787_s21 }
  0x71   : > { %658 = vmatprep.subr.mxu0 %v633_v18  ;;  %1581 = vmatpush1.bf16.msra.mxu1 %v4281_v25  ;;  %v4311_v45 = vld [vmem:[#allocation3 + $0x100] ss:$16 sps:$4 sm:$0xff]   ;;  %v4314_v46 = vld [vmem:[#allocation3 + $0xcc] ss:$16 sps:$4 sm:$0xff]   ;;  %v4315_v47 = vld [vmem:[#allocation3 + $0x124] ss:$16 sps:$4 sm:$0xff]  }
  0x72   : > { %1582 = vmatprep.subr.bf16.mxu1 %v4285_v27  ;;  %v4312_v48 = vld [vmem:[#allocation3 + $0xc8] ss:$16 sps:$4 sm:$0xff]   ;;  %v4317_v49 = vld [vmem:[#allocation3 + $0x120] ss:$16 sps:$4 sm:$0xff]   ;;  %v4320_v50 = vld [vmem:[#allocation3 + $0xec] ss:$16 sps:$4 sm:$0xff]  }
  0x73   : > { %v4321_v51 = vld [vmem:[#allocation3 + $0x144] ss:$16 sps:$4 sm:$0xff]   ;;  %v4318_v52 = vld [vmem:[#allocation3 + $0xe8] ss:$16 sps:$4 sm:$0xff]   ;;  %v4323_v53 = vld [vmem:[#allocation3 + $0x140] ss:$16 sps:$4 sm:$0xff]  }
  0x74   : > { %659 = vmatpush1.msra.mxu0 %v632_v19  ;;  %v4326_v54 = vld [vmem:[#allocation3 + $0x10c] ss:$16 sps:$4 sm:$0xff]   ;;  %v4327_v55 = vld [vmem:[#allocation3 + $0x164] ss:$16 sps:$4 sm:$0xff]   ;;  %v4324_v56 = vld [vmem:[#allocation3 + $0x108] ss:$16 sps:$4 sm:$0xff]  }
  0x75   : > { %3788 = vmatmul.mubr.msk.f32.vlgmr.msra.gmra.mrb[0].mxu0 %vm646_vm0, %v623_v23  ;;  %1660 = vmatprep.subr.bf16.mxu0 %v4278_v22  ;;  %v4329_v57 = vld [vmem:[#allocation3 + $0x160] ss:$16 sps:$4 sm:$0xff]   ;;  %v4332_v58 = vld [vmem:[#allocation3 + $0x12c] ss:$16 sps:$4 sm:$0xff]   ;;  %v4359_v59 = vld [vmem:[%s5257_s11 + $0x4] ss:$16 sps:$4 sm:$0xff]  }
  0x76   : > { %1661 = vmatpush1.bf16.msra.mxu0 %v4276_v24  ;;  %1583 = vmatpush1.bf16.msra.mxu1 %v4287_v29  ;;  %v4333_v60 = vld [vmem:[#allocation3 + $0x184] ss:$16 sps:$4 sm:$0xff]   ;;  %v4330_v61 = vld [vmem:[#allocation3 + $0x128] ss:$16 sps:$4 sm:$0xff]   ;;  %v4335_v62 = vld [vmem:[#allocation3 + $0x180] ss:$16 sps:$4 sm:$0xff]  }
  0x77   : > { %1662 = vmatprep.subr.bf16.mxu0 %v4284_v26  ;;  %1584 = vmatprep.subr.bf16.mxu1 %v4291_v31  ;;  %v4338_v63 = vld [vmem:[#allocation3 + $0x14c] ss:$16 sps:$4 sm:$0xff]   ;;  %v4339_v1 = vld [vmem:[#allocation3 + $0x1a4] ss:$16 sps:$4 sm:$0xff]   ;;  %v4336_v2 = vld [vmem:[#allocation3 + $0x148] ss:$16 sps:$4 sm:$0xff]  }
  0x78   : > { %1606 = vmatprep.mubr.bf16.mxu1 %v4359_v59  ;;  %1692 = vmatprep.mubr.bf16.mxu0 %v4359_v59  ;;  %v4341_v3 = vld [vmem:[#allocation3 + $0x1a0] ss:$16 sps:$4 sm:$0xff]   ;;  %v4344_v4 = vld [vmem:[#allocation3 + $0x16c] ss:$16 sps:$4 sm:$0xff]   ;;  %v4345_v5 = vld [vmem:[#allocation3 + $0x1c4] ss:$16 sps:$4 sm:$0xff]  }
  0x79   : > { %v4342_v6 = vld [vmem:[#allocation3 + $0x168] ss:$16 sps:$4 sm:$0xff]   ;;  %v4347_v7 = vld [vmem:[#allocation3 + $0x1c0] ss:$16 sps:$4 sm:$0xff]   ;;  %v4350_v8 = vld [vmem:[#allocation3 + $0x18c] ss:$16 sps:$4 sm:$0xff]  }
  0x7a   : > { %1663 = vmatpush1.bf16.msra.mxu0 %v4282_v28  ;;  %1585 = vmatpush1.bf16.msra.mxu1 %v4293_v33  ;;  %v4351_v9 = vld [vmem:[#allocation3 + $0x1e4] ss:$16 sps:$4 sm:$0xff]   ;;  %v4348_v10 = vld [vmem:[#allocation3 + $0x188] ss:$16 sps:$4 sm:$0xff]   ;;  %v4353_v11 = vld [vmem:[#allocation3 + $0x1e0] ss:$16 sps:$4 sm:$0xff]  }
  0x7b   : > { %1664 = vmatprep.subr.bf16.mxu0 %v4290_v30  ;;  %1586 = vmatprep.subr.bf16.mxu1 %v4297_v35  ;;  %v4356_v12 = vld [vmem:[#allocation3 + $0x1ac] ss:$16 sps:$4 sm:$0xff]   ;;  %v4362_v13 = vld [vmem:[#allocation3 + $0x204] ss:$16 sps:$4 sm:$0xff]   ;;  %v4354_v14 = vld [vmem:[#allocation3 + $0x1a8] ss:$16 sps:$4 sm:$0xff]  }
  0x7c   : > { %v4357_v15 = vld [vmem:[%s5257_s11] ss:$16 sps:$4 sm:$0xff]   ;;  %v4365_v17 = vld [vmem:[#allocation3 + $0x1cc] ss:$16 sps:$4 sm:$0xff]   ;;  %v4368_v18 = vld [vmem:[#allocation3 + $0x224] ss:$16 sps:$4 sm:$0xff]  }
  0x7d   : > { %v4360_v16 = vld [vmem:[#allocation3 + $0x200] ss:$16 sps:$4 sm:$0xff]   ;;  %v4363_v19 = vld [vmem:[#allocation3 + $0x1c8] ss:$16 sps:$4 sm:$0xff]   ;;  %v4371_v21 = vld [vmem:[#allocation3 + $0x1ec] ss:$16 sps:$4 sm:$0xff]  }
  0x7e   : > { %1665 = vmatpush1.bf16.msra.mxu0 %v4288_v32  ;;  %1587 = vmatpush1.bf16.msra.mxu1 %v4299_v37  ;;  %v4366_v20 = vld [vmem:[#allocation3 + $0x220] ss:$16 sps:$4 sm:$0xff]   ;;  %v4374_v22 = vld [vmem:[#allocation3 + $0x244] ss:$16 sps:$4 sm:$0xff]   ;;  %v4369_v23 = vld [vmem:[#allocation3 + $0x1e8] ss:$16 sps:$4 sm:$0xff]  }
  0x7f   : > { %1666 = vmatprep.subr.bf16.mxu0 %v4296_v34  ;;  %1588 = vmatprep.subr.bf16.mxu1 %v4303_v39  ;;  %v4372_v24 = vld [vmem:[#allocation3 + $0x240] ss:$16 sps:$4 sm:$0xff]   ;;  %v4377_v25 = vld [vmem:[#allocation3 + $0x20c] ss:$16 sps:$4 sm:$0xff]   ;;  %v4380_v26 = vld [vmem:[#allocation3 + $0x264] ss:$16 sps:$4 sm:$0xff]  }
  0x80   : > { %v4375_v27 = vld [vmem:[#allocation3 + $0x208] ss:$16 sps:$4 sm:$0xff]   ;;  %v4378_v28 = vld [vmem:[#allocation3 + $0x260] ss:$16 sps:$4 sm:$0xff]   ;;  %v4383_v29 = vld [vmem:[#allocation3 + $0x22c] ss:$16 sps:$4 sm:$0xff]  }
  0x81   : > { %v4386_v30 = vld [vmem:[#allocation3 + $0x284] ss:$16 sps:$4 sm:$0xff]   ;;  %v4381_v31 = vld [vmem:[#allocation3 + $0x228] ss:$16 sps:$4 sm:$0xff]   ;;  %v4384_v32 = vld [vmem:[#allocation3 + $0x280] ss:$16 sps:$4 sm:$0xff]  }
  0x82   : > { %1667 = vmatpush1.bf16.msra.mxu0 %v4294_v36  ;;  %1589 = vmatpush1.bf16.msra.mxu1 %v4305_v41  ;;  %v4389_v33 = vld [vmem:[#allocation3 + $0x24c] ss:$16 sps:$4 sm:$0xff]   ;;  %v4392_v34 = vld [vmem:[#allocation3 + $0x2a4] ss:$16 sps:$4 sm:$0xff]   ;;  %v4387_v35 = vld [vmem:[#allocation3 + $0x248] ss:$16 sps:$4 sm:$0xff]  }
  0x83   : > { %1668 = vmatprep.subr.bf16.mxu0 %v4302_v38  ;;  %1590 = vmatprep.subr.bf16.mxu1 %v4309_v43  ;;  %v4390_v36 = vld [vmem:[#allocation3 + $0x2a0] ss:$16 sps:$4 sm:$0xff]   ;;  %v4395_v37 = vld [vmem:[#allocation3 + $0x26c] ss:$16 sps:$4 sm:$0xff]   ;;  %v4398_v38 = vld [vmem:[#allocation3 + $0x2c4] ss:$16 sps:$4 sm:$0xff]  }
  0x84   : > { %v4393_v39 = vld [vmem:[#allocation3 + $0x268] ss:$16 sps:$4 sm:$0xff]   ;;  %v4401_v41 = vld [vmem:[#allocation3 + $0x28c] ss:$16 sps:$4 sm:$0xff]   ;;  %v4404_v43 = vld [vmem:[#allocation3 + $0x2e4] ss:$16 sps:$4 sm:$0xff]  }
  0x85   : > { %v4428_v59 = vld [vmem:[#allocation3 + $0x364] ss:$16 sps:$4 sm:$0xff]   ;;  %v5452_v0 = vld [vmem:[#allocation6 + $0x1e8] ss:$16 sps:$4 sm:$0xff]   ;;  %vm3413_vm9 = vcmask 253952   ;;  %s6693_s24 = smov 96  }
  0x86   : > { %1669 = vmatpush1.bf16.msra.mxu0 %v4300_v40  ;;  %1591 = vmatpush1.bf16.msra.mxu1 %v4311_v45  ;;  %v4396_v40 = vld [vmem:[#allocation3 + $0x2c0] ss:$16 sps:$4 sm:$0xff]   ;;  %6744 = vst [vmem:[#allocation53_spill] sm:$0xff] %v5452_v0  ;;  %s3990_s26 = sshll.u32 %s5111_s25, 5  ;;  %p6925_p1 = scmp.ne.s32.totalorder %s6707_s0, 0 }
  0x87   : > { %1670 = vmatprep.subr.bf16.mxu0 %v4308_v42  ;;  %1592 = vmatprep.subr.bf16.mxu1 %v4315_v47  ;;  %v4458_v42 = vld [vmem:[%s5257_s11 + $0xc] ss:$16 sps:$4 sm:$0xff]   ;;  %v4402_v45 = vld [vmem:[#allocation3 + $0x2e0] ss:$16 sps:$4 sm:$0xff]   ;;  %v4410_v47 = vld [vmem:[#allocation3 + $0x304] ss:$16 sps:$4 sm:$0xff]   ;;  %s6343_s20 = scalar_lea.hbm %s6554_s12, %s3990_s26  ;;  %s6349_s21 = scalar_lea.hbm %s6555_s13, %s3990_s26 }
  0x88   : > { %s4999_s1 = smov [#allocation9]  }
  0x89   : > { %s4770_s19 = sshll.u32 %s4999_s1, 4  ;;  %s4771_s19 = int_to_ptr.vmem [resolvable:$false] %s4770_s19 }
  0x8a   : > { %1671 = vmatpush1.bf16.msra.mxu0 %v4306_v44  ;;  %1593 = vmatpush1.bf16.msra.mxu1 %v4317_v49  ;;  %v4399_v44 = vld [vmem:[#allocation3 + $0x288] ss:$16 sps:$4 sm:$0xff]   ;;  %v4408_v49 = vld [vmem:[#allocation3 + $0x300] ss:$16 sps:$4 sm:$0xff]   ;;  %s4772_s29 = scalar_lea.vmem %s4771_s19, 64 }
  0x8b   : > { %1672 = vmatprep.subr.bf16.mxu0 %v4314_v46  ;;  %1594 = vmatprep.subr.bf16.mxu1 %v4321_v51  ;;  %v4407_v46 = vld [vmem:[#allocation3 + $0x2ac] ss:$16 sps:$4 sm:$0xff]   ;;  %v4416_v51 = vld [vmem:[#allocation3 + $0x324] ss:$16 sps:$4 sm:$0xff]  }
  0x8e   : > { %1673 = vmatpush1.bf16.msra.mxu0 %v4312_v48  ;;  %1595 = vmatpush1.bf16.msra.mxu1 %v4323_v53  ;;  %v4405_v48 = vld [vmem:[#allocation3 + $0x2a8] ss:$16 sps:$4 sm:$0xff]   ;;  %v4414_v53 = vld [vmem:[#allocation3 + $0x320] ss:$16 sps:$4 sm:$0xff]  }
  0x8f   : > { %1674 = vmatprep.subr.bf16.mxu0 %v4320_v50  ;;  %1596 = vmatprep.subr.bf16.mxu1 %v4327_v55  ;;  %v4413_v50 = vld [vmem:[#allocation3 + $0x2cc] ss:$16 sps:$4 sm:$0xff]   ;;  %v4422_v55 = vld [vmem:[#allocation3 + $0x344] ss:$16 sps:$4 sm:$0xff]  }
  0x92   : > { %1675 = vmatpush1.bf16.msra.mxu0 %v4318_v52  ;;  %1597 = vmatpush1.bf16.msra.mxu1 %v4329_v57  ;;  %v4411_v52 = vld [vmem:[#allocation3 + $0x2c8] ss:$16 sps:$4 sm:$0xff]   ;;  %v4420_v57 = vld [vmem:[#allocation3 + $0x340] ss:$16 sps:$4 sm:$0xff]  }
  0x93   : > { %1676 = vmatprep.subr.bf16.mxu0 %v4326_v54  ;;  %1598 = vmatprep.subr.bf16.mxu1 %v4333_v60  ;;  %v4419_v54 = vld [vmem:[#allocation3 + $0x2ec] ss:$16 sps:$4 sm:$0xff]   ;;  %v4423_v60 = vld [vmem:[#allocation3 + $0x308] ss:$16 sps:$4 sm:$0xff]  }
  0x96   : > { %1677 = vmatpush1.bf16.msra.mxu0 %v4324_v56  ;;  %1599 = vmatpush1.bf16.msra.mxu1 %v4335_v62  ;;  %v4417_v56 = vld [vmem:[#allocation3 + $0x2e8] ss:$16 sps:$4 sm:$0xff]   ;;  %v4431_v62 = vld [vmem:[#allocation3 + $0x32c] ss:$16 sps:$4 sm:$0xff]  }
  0x97   : > { %1678 = vmatprep.subr.bf16.mxu0 %v4332_v58  ;;  %1600 = vmatprep.subr.bf16.mxu1 %v4339_v1  ;;  %v4425_v58 = vld [vmem:[#allocation3 + $0x30c] ss:$16 sps:$4 sm:$0xff]   ;;  %v4429_v1 = vld [vmem:[#allocation3 + $0x328] ss:$16 sps:$4 sm:$0xff]  }
  0x9a   : > { %1679 = vmatpush1.bf16.msra.mxu0 %v4330_v61  ;;  %1601 = vmatpush1.bf16.msra.mxu1 %v4341_v3  ;;  %v4426_v61 = vld [vmem:[#allocation3 + $0x360] ss:$16 sps:$4 sm:$0xff]   ;;  %v4437_v3 = vld [vmem:[#allocation3 + $0x34c] ss:$16 sps:$4 sm:$0xff]  }
  0x9b   : > { %1680 = vmatprep.subr.bf16.mxu0 %v4338_v63  ;;  %1602 = vmatprep.subr.bf16.mxu1 %v4345_v5  ;;  %v4434_v63 = vld [vmem:[#allocation3 + $0x384] ss:$16 sps:$4 sm:$0xff]   ;;  %v4435_v5 = vld [vmem:[#allocation3 + $0x348] ss:$16 sps:$4 sm:$0xff]  }
  0x9e   : > { %1681 = vmatpush1.bf16.msra.mxu0 %v4336_v2  ;;  %1603 = vmatpush1.bf16.msra.mxu1 %v4347_v7  ;;  %v4432_v2 = vld [vmem:[#allocation3 + $0x380] ss:$16 sps:$4 sm:$0xff]   ;;  %v4443_v7 = vld [vmem:[#allocation3 + $0x36c] ss:$16 sps:$4 sm:$0xff]  }
  0x9f   : > { %1682 = vmatprep.subr.bf16.mxu0 %v4344_v4  ;;  %1604 = vmatprep.subr.bf16.mxu1 %v4351_v9  ;;  %v4440_v4 = vld [vmem:[#allocation3 + $0x3a4] ss:$16 sps:$4 sm:$0xff]   ;;  %v4441_v9 = vld [vmem:[#allocation3 + $0x368] ss:$16 sps:$4 sm:$0xff]  }
  0xa2   : > { %1683 = vmatpush1.bf16.msra.mxu0 %v4342_v6  ;;  %1605 = vmatpush1.bf16.msra.mxu1 %v4353_v11  ;;  %v4438_v6 = vld [vmem:[#allocation3 + $0x3a0] ss:$16 sps:$4 sm:$0xff]   ;;  %v4449_v11 = vld [vmem:[#allocation3 + $0x38c] ss:$16 sps:$4 sm:$0xff]  }
  0xa3   : > { %1684 = vmatprep.subr.bf16.mxu0 %v4350_v8  ;;  %1617 = vmatprep.subr.bf16.mxu1 %v4362_v13  ;;  %v4446_v8 = vld [vmem:[#allocation3 + $0x3c4] ss:$16 sps:$4 sm:$0xff]   ;;  %v4447_v13 = vld [vmem:[#allocation3 + $0x388] ss:$16 sps:$4 sm:$0xff]  }
  0xa5   : > { %1607 = vmatmul.mubr.bf16.vlgmr.msra.gmra.mrb[0].mxu1 %v4357_v15 }
  0xa6   : > { %1685 = vmatpush1.bf16.msra.mxu0 %v4348_v10  ;;  %1618 = vmatpush1.bf16.msra.mxu1 %v4360_v16  ;;  %v4444_v10 = vld [vmem:[#allocation3 + $0x3c0] ss:$16 sps:$4 sm:$0xff]   ;;  %v5262_v16 = vld [vmem:[#allocation6 + $0x4] ss:$16 sps:$4 sm:$0xff]  }
  0xa7   : > { %1686 = vmatprep.subr.bf16.mxu0 %v4356_v12  ;;  %1619 = vmatprep.subr.bf16.mxu1 %v4368_v18  ;;  %v4452_v12 = vld [vmem:[#allocation3 + $0x3e4] ss:$16 sps:$4 sm:$0xff]   ;;  %6720 = vst [vmem:[#allocation29_spill] sm:$0xff] %v5262_v16  ;;  %v4456_v18 = vld [vmem:[%s5257_s11 + $0x8] ss:$16 sps:$4 sm:$0xff]   ;;  %s6298_s11 = sand.u32 1, %s4980_s22  }
  0xa8   : > { %1649 = vmatprep.mubr.bf16.mxu1 %v4458_v42  ;;  %s3783_s15 = sshll.u32 %s6298_s11, 1  ;;  %s3782_s18 = sshll.u32 %s6298_s11, 4 }
  0xa9   : > { %s6302_s16 = scalar_lea.vmem [#allocation11], %s3783_s15  ;;  %s6307_s28 = scalar_lea.vmem [#allocation9], %s3783_s15 }
  0xaa   : > { %1687 = vmatpush1.bf16.msra.mxu0 %v4354_v14  ;;  %1620 = vmatpush1.bf16.msra.mxu1 %v4366_v20  ;;  %v4450_v14 = vld [vmem:[#allocation3 + $0x3e0] ss:$16 sps:$4 sm:$0xff]   ;;  %s6316_s23 = scalar_lea.vmem [#allocation8], %s3782_s18  ;;  %s6694_s27 = scalar_lea.vmem [#allocation12], %s6298_s11 }
  0xab   : > { %1688 = vmatprep.subr.bf16.mxu0 %v4365_v17  ;;  %1621 = vmatprep.subr.bf16.mxu1 %v4374_v22  ;;  %v4453_v17 = vld [vmem:[#allocation3 + $0x3a8] ss:$16 sps:$4 sm:$0xff]   ;;  %v5265_v20 = vld [vmem:[#allocation6] ss:$16 sps:$4 sm:$0xff]   ;;  %s3478_s15 = sshll.u32 %s6307_s28, 4  ;;  %s3479_s15 = int_to_ptr.vmem [resolvable:$true] %s3478_s15 }
  0xac   : > { %v4459_v22 = vld [vmem:[#allocation3 + $0x3c8] ss:$16 sps:$4 sm:$0xff]   ;;  %p4773_p4 = scmp.lt.s32.totalorder %s3479_s15, %s4771_s19 }
  0xae   : > { %1689 = vmatpush1.bf16.msra.mxu0 %v4363_v19  ;;  %1622 = vmatpush1.bf16.msra.mxu1 %v4372_v24  ;;  %v4461_v19 = vld [vmem:[#allocation3 + $0x3cc] ss:$16 sps:$4 sm:$0xff]   ;;  %v5271_v24 = vld [vmem:[#allocation6 + $0x20] ss:$16 sps:$4 sm:$0xff]  }
  0xaf   : > { %1690 = vmatprep.subr.bf16.mxu0 %v4371_v21  ;;  %1623 = vmatprep.subr.bf16.mxu1 %v4380_v26  ;;  %v5268_v21 = vld [vmem:[#allocation6 + $0x24] ss:$16 sps:$4 sm:$0xff]   ;;  %v4462_v26 = vld [vmem:[#allocation3 + $0x3e8] ss:$16 sps:$4 sm:$0xff]  }
  0xb2   : > { %1691 = vmatpush1.bf16.msra.mxu0 %v4369_v23  ;;  %1624 = vmatpush1.bf16.msra.mxu1 %v4378_v28  ;;  %v4464_v23 = vld [vmem:[#allocation3 + $0x3ec] ss:$16 sps:$4 sm:$0xff]   ;;  %v5279_v28 = vld [vmem:[#allocation6 + $0x40] ss:$16 sps:$4 sm:$0xff]  }
  0xb3   : > { %1703 = vmatprep.subr.bf16.mxu0 %v4377_v25  ;;  %1625 = vmatprep.subr.bf16.mxu1 %v4386_v30  ;;  %v5274_v25 = vld [vmem:[#allocation6 + $0x44] ss:$16 sps:$4 sm:$0xff]   ;;  %v5284_v30 = vld [vmem:[#allocation6 + $0x8] ss:$16 sps:$4 sm:$0xff]  }
  0xb5   : > { %1693 = vmatmul.mubr.bf16.vlgmr.msra.gmra.mrb[4].mxu0 %v4357_v15  ;;  %v4455_v15 = vld [vmem:[#allocation3 + $0x3ac] ss:$16 sps:$4 sm:$0xff]  }
  0xb6   : > { %1704 = vmatpush1.bf16.msra.mxu0 %v4375_v27  ;;  %1626 = vmatpush1.bf16.msra.mxu1 %v4384_v32  ;;  %v5276_v27 = vld [vmem:[#allocation6 + $0xc] ss:$16 sps:$4 sm:$0xff]   ;;  %v5290_v32 = vld [vmem:[#allocation6 + $0x60] ss:$16 sps:$4 sm:$0xff]  }
  0xb7   : > { %1705 = vmatprep.subr.bf16.mxu0 %v4383_v29  ;;  %1627 = vmatprep.subr.bf16.mxu1 %v4392_v34  ;;  %6721 = vst [vmem:[#allocation30_spill] sm:$0xff] %v5276_v27  ;;  %v5282_v29 = vld [vmem:[#allocation6 + $0x64] ss:$16 sps:$4 sm:$0xff]   ;;  %v5296_v34 = vld [vmem:[#allocation6 + $0x28] ss:$16 sps:$4 sm:$0xff]  }
  0xb8   : > { %1735 = vmatprep.mubr.bf16.mxu0 %v4458_v42  ;;  %v5320_v42 = vld [vmem:[#allocation6 + $0x68] ss:$16 sps:$4 sm:$0xff]  }
  0xba   : > { %1706 = vmatpush1.bf16.msra.mxu0 %v4381_v31  ;;  %1628 = vmatpush1.bf16.msra.mxu1 %v4390_v36  ;;  %v5287_v31 = vld [vmem:[#allocation6 + $0x2c] ss:$16 sps:$4 sm:$0xff]   ;;  %v5302_v36 = vld [vmem:[#allocation6 + $0x80] ss:$16 sps:$4 sm:$0xff]  }
  0xbb   : > { %1707 = vmatprep.subr.bf16.mxu0 %v4389_v33  ;;  %1629 = vmatprep.subr.bf16.mxu1 %v4398_v38  ;;  %v5293_v33 = vld [vmem:[#allocation6 + $0x84] ss:$16 sps:$4 sm:$0xff]   ;;  %v5308_v38 = vld [vmem:[#allocation6 + $0x48] ss:$16 sps:$4 sm:$0xff]  }
  0xbe   : > { %1708 = vmatpush1.bf16.msra.mxu0 %v4387_v35  ;;  %1630 = vmatpush1.bf16.msra.mxu1 %v4396_v40  ;;  %v5299_v35 = vld [vmem:[#allocation6 + $0x4c] ss:$16 sps:$4 sm:$0xff]   ;;  %v5314_v40 = vld [vmem:[#allocation6 + $0xa0] ss:$16 sps:$4 sm:$0xff]  }
  0xbf   : > { %1709 = vmatprep.subr.bf16.mxu0 %v4395_v37  ;;  %1631 = vmatprep.subr.bf16.mxu1 %v4404_v43  ;;  %v5305_v37 = vld [vmem:[#allocation6 + $0xa4] ss:$16 sps:$4 sm:$0xff]   ;;  %v5323_v43 = vld [vmem:[#allocation6 + $0x8c] ss:$16 sps:$4 sm:$0xff]  }
  0xc2   : > { %1710 = vmatpush1.bf16.msra.mxu0 %v4393_v39  ;;  %1632 = vmatpush1.bf16.msra.mxu1 %v4402_v45  ;;  %v5311_v39 = vld [vmem:[#allocation6 + $0x6c] ss:$16 sps:$4 sm:$0xff]   ;;  %v5329_v45 = vld [vmem:[#allocation6 + $0xe4] ss:$16 sps:$4 sm:$0xff]  }
  0xc3   : > { %1711 = vmatprep.subr.bf16.mxu0 %v4401_v41  ;;  %1633 = vmatprep.subr.bf16.mxu1 %v4410_v47  ;;  %v5317_v41 = vld [vmem:[#allocation6 + $0xc4] ss:$16 sps:$4 sm:$0xff]   ;;  %v5335_v47 = vld [vmem:[#allocation6 + $0xac] ss:$16 sps:$4 sm:$0xff]  }
  0xc6   : > { %1712 = vmatpush1.bf16.msra.mxu0 %v4399_v44  ;;  %1634 = vmatpush1.bf16.msra.mxu1 %v4408_v49  ;;  %v5326_v44 = vld [vmem:[#allocation6 + $0xc0] ss:$16 sps:$4 sm:$0xff]   ;;  %v5341_v49 = vld [vmem:[#allocation6 + $0x104] ss:$16 sps:$4 sm:$0xff]  }
  0xc7   : > { %1713 = vmatprep.subr.bf16.mxu0 %v4407_v46  ;;  %1635 = vmatprep.subr.bf16.mxu1 %v4416_v51  ;;  %v5332_v46 = vld [vmem:[#allocation6 + $0x88] ss:$16 sps:$4 sm:$0xff]   ;;  %v5347_v51 = vld [vmem:[#allocation6 + $0xcc] ss:$16 sps:$4 sm:$0xff]  }
  0xca   : > { %1714 = vmatpush1.bf16.msra.mxu0 %v4405_v48  ;;  %1636 = vmatpush1.bf16.msra.mxu1 %v4414_v53  ;;  %v5338_v48 = vld [vmem:[#allocation6 + $0xe0] ss:$16 sps:$4 sm:$0xff]   ;;  %v5353_v53 = vld [vmem:[#allocation6 + $0x124] ss:$16 sps:$4 sm:$0xff]  }
  0xcb   : > { %1715 = vmatprep.subr.bf16.mxu0 %v4413_v50  ;;  %1637 = vmatprep.subr.bf16.mxu1 %v4422_v55  ;;  %v5344_v50 = vld [vmem:[#allocation6 + $0xa8] ss:$16 sps:$4 sm:$0xff]   ;;  %v5359_v55 = vld [vmem:[#allocation6 + $0xec] ss:$16 sps:$4 sm:$0xff]  }
  0xce   : > { %1716 = vmatpush1.bf16.msra.mxu0 %v4411_v52  ;;  %1638 = vmatpush1.bf16.msra.mxu1 %v4420_v57  ;;  %v5350_v52 = vld [vmem:[#allocation6 + $0x100] ss:$16 sps:$4 sm:$0xff]   ;;  %v5365_v57 = vld [vmem:[#allocation6 + $0x144] ss:$16 sps:$4 sm:$0xff]  }
  0xcf   : > { %1717 = vmatprep.subr.bf16.mxu0 %v4419_v54  ;;  %1639 = vmatprep.subr.bf16.mxu1 %v4428_v59  ;;  %v5356_v54 = vld [vmem:[#allocation6 + $0xc8] ss:$16 sps:$4 sm:$0xff]   ;;  %v5371_v59 = vld [vmem:[#allocation6 + $0x10c] ss:$16 sps:$4 sm:$0xff]  }
  0xd2   : > { %1718 = vmatpush1.bf16.msra.mxu0 %v4417_v56  ;;  %1640 = vmatpush1.bf16.msra.mxu1 %v4426_v61  ;;  %v5362_v56 = vld [vmem:[#allocation6 + $0x120] ss:$16 sps:$4 sm:$0xff]   ;;  %v5377_v61 = vld [vmem:[#allocation6 + $0x164] ss:$16 sps:$4 sm:$0xff]  }
  0xd3   : > { %1719 = vmatprep.subr.bf16.mxu0 %v4425_v58  ;;  %1641 = vmatprep.subr.bf16.mxu1 %v4434_v63  ;;  %v5368_v58 = vld [vmem:[#allocation6 + $0xe8] ss:$16 sps:$4 sm:$0xff]   ;;  %6723 = vst [vmem:[#allocation32_spill] sm:$0xff] %v5377_v61  ;;  %v5383_v63 = vld [vmem:[#allocation6 + $0x12c] ss:$16 sps:$4 sm:$0xff]  }
  0xd6   : > { %1720 = vmatpush1.bf16.msra.mxu0 %v4423_v60  ;;  %1642 = vmatpush1.bf16.msra.mxu1 %v4432_v2  ;;  %v5374_v60 = vld [vmem:[#allocation6 + $0x140] ss:$16 sps:$4 sm:$0xff]   ;;  %v5389_v2 = vld [vmem:[#allocation6 + $0x184] ss:$16 sps:$4 sm:$0xff]  }
  0xd7   : > { %1721 = vmatprep.subr.bf16.mxu0 %v4431_v62  ;;  %1643 = vmatprep.subr.bf16.mxu1 %v4440_v4  ;;  %6722 = vst [vmem:[#allocation31_spill] sm:$0xff] %v5374_v60  ;;  %v5380_v62 = vld [vmem:[#allocation6 + $0x108] ss:$16 sps:$4 sm:$0xff]   ;;  %6725 = vst [vmem:[#allocation34_spill] sm:$0xff] %v5389_v2  ;;  %v5395_v4 = vld [vmem:[#allocation6 + $0x14c] ss:$16 sps:$4 sm:$0xff]  }
  0xd8   : > { %6726 = vst [vmem:[#allocation35_spill] sm:$0xff] %v5395_v4 }
  0xda   : > { %1722 = vmatpush1.bf16.msra.mxu0 %v4429_v1  ;;  %1644 = vmatpush1.bf16.msra.mxu1 %v4438_v6  ;;  %v5386_v1 = vld [vmem:[#allocation6 + $0x160] ss:$16 sps:$4 sm:$0xff]   ;;  %v5401_v6 = vld [vmem:[#allocation6 + $0x1a4] ss:$16 sps:$4 sm:$0xff]  }
  0xdb   : > { %1723 = vmatprep.subr.bf16.mxu0 %v4437_v3  ;;  %1645 = vmatprep.subr.bf16.mxu1 %v4446_v8  ;;  %6724 = vst [vmem:[#allocation33_spill] sm:$0xff] %v5386_v1  ;;  %v5392_v3 = vld [vmem:[#allocation6 + $0x128] ss:$16 sps:$4 sm:$0xff]   ;;  %6728 = vst [vmem:[#allocation37_spill] sm:$0xff] %v5401_v6  ;;  %v5407_v8 = vld [vmem:[#allocation6 + $0x16c] ss:$16 sps:$4 sm:$0xff]  }
  0xdc   : > { %6730 = vst [vmem:[#allocation39_spill] sm:$0xff] %v5407_v8 }
  0xde   : > { %1724 = vmatpush1.bf16.msra.mxu0 %v4435_v5  ;;  %1646 = vmatpush1.bf16.msra.mxu1 %v4444_v10  ;;  %v5398_v5 = vld [vmem:[#allocation6 + $0x180] ss:$16 sps:$4 sm:$0xff]   ;;  %v5413_v10 = vld [vmem:[#allocation6 + $0x1c4] ss:$16 sps:$4 sm:$0xff]  }
  0xdf   : > { %1725 = vmatprep.subr.bf16.mxu0 %v4443_v7  ;;  %1647 = vmatprep.subr.bf16.mxu1 %v4452_v12  ;;  %6727 = vst [vmem:[#allocation36_spill] sm:$0xff] %v5398_v5  ;;  %v5404_v7 = vld [vmem:[#allocation6 + $0x148] ss:$16 sps:$4 sm:$0xff]   ;;  %6732 = vst [vmem:[#allocation41_spill] sm:$0xff] %v5413_v10  ;;  %v5419_v12 = vld [vmem:[#allocation6 + $0x18c] ss:$16 sps:$4 sm:$0xff]  }
  0xe0   : > { %6729 = vst [vmem:[#allocation38_spill] sm:$0xff] %v5404_v7  ;;  %6734 = vst [vmem:[#allocation43_spill] sm:$0xff] %v5419_v12 }
  0xe2   : > { %1726 = vmatpush1.bf16.msra.mxu0 %v4441_v9  ;;  %1648 = vmatpush1.bf16.msra.mxu1 %v4450_v14  ;;  %v5410_v9 = vld [vmem:[#allocation6 + $0x1a0] ss:$16 sps:$4 sm:$0xff]   ;;  %v5425_v14 = vld [vmem:[#allocation6 + $0x1e4] ss:$16 sps:$4 sm:$0xff]  }
  0xe3   : > { %1727 = vmatprep.subr.bf16.mxu0 %v4449_v11  ;;  %2154 = vmatprep.subr.bf16.mxu1 %v5262_v16  ;;  %6731 = vst [vmem:[#allocation40_spill] sm:$0xff] %v5410_v9  ;;  %v5416_v11 = vld [vmem:[#allocation6 + $0x168] ss:$16 sps:$4 sm:$0xff]   ;;  %6736 = vst [vmem:[#allocation45_spill] sm:$0xff] %v5425_v14 }
  0xe4   : > { %6733 = vst [vmem:[#allocation42_spill] sm:$0xff] %v5416_v11 }
  0xe5   : > { %1650 = vmatmul.mubr.bf16.vlgmr.msra.gmra.mrb[0].mxu1 %v4456_v18 }
  0xe6   : > { %1728 = vmatpush1.bf16.msra.mxu0 %v4447_v13  ;;  %2155 = vmatpush1.bf16.msra.mxu1 %v5265_v20  ;;  %v5422_v13 = vld [vmem:[#allocation6 + $0x1c0] ss:$16 sps:$4 sm:$0xff]  }
  0xe7   : > { %1729 = vmatprep.subr.bf16.mxu0 %v4455_v15  ;;  %2156 = vmatprep.subr.bf16.mxu1 %v5268_v21  ;;  %6735 = vst [vmem:[#allocation44_spill] sm:$0xff] %v5422_v13  ;;  %v5428_v15 = vld [vmem:[#allocation6 + $0x188] ss:$16 sps:$4 sm:$0xff]  }
  0xe8   : > { %6737 = vst [vmem:[#allocation46_spill] sm:$0xff] %v5428_v15 }
  0xea   : > { %1730 = vmatpush1.bf16.msra.mxu0 %v4453_v17  ;;  %2157 = vmatpush1.bf16.msra.mxu1 %v5271_v24  ;;  %v5431_v17 = vld [vmem:[#allocation6 + $0x1ac] ss:$16 sps:$4 sm:$0xff]  }
  0xeb   : > { %1731 = vmatprep.subr.bf16.mxu0 %v4461_v19  ;;  %2158 = vmatprep.subr.bf16.mxu1 %v5274_v25  ;;  %6738 = vst [vmem:[#allocation47_spill] sm:$0xff] %v5431_v17  ;;  %v5438_v19 = vld [vmem:[#allocation6 + $0x1a8] ss:$16 sps:$4 sm:$0xff]  }
  0xec   : > { %6740 = vst [vmem:[#allocation49_spill] sm:$0xff] %v5438_v19 }
  0xee   : > { %1732 = vmatpush1.bf16.msra.mxu0 %v4459_v22  ;;  %2159 = vmatpush1.bf16.msra.mxu1 %v5279_v28  ;;  %v5441_v22 = vld [vmem:[#allocation6 + $0x1cc] ss:$16 sps:$4 sm:$0xff]  }
  0xef   : > { %1733 = vmatprep.subr.bf16.mxu0 %v4464_v23  ;;  %2160 = vmatprep.subr.bf16.mxu1 %v5282_v29  ;;  %6741 = vst [vmem:[#allocation50_spill] sm:$0xff] %v5441_v22  ;;  %v5446_v23 = vld [vmem:[#allocation6 + $0x1c8] ss:$16 sps:$4 sm:$0xff]  }
  0xf0   : > { %6742 = vst [vmem:[#allocation51_spill] sm:$0xff] %v5446_v23 }
  0xf2   : > { %1734 = vmatpush1.bf16.msra.mxu0 %v4462_v26  ;;  %2161 = vmatpush1.bf16.msra.mxu1 %v5290_v32  ;;  %v5449_v26 = vld [vmem:[#allocation6 + $0x1ec] ss:$16 sps:$4 sm:$0xff]  }
  0xf3   : > { %2195 = vmatprep.subr.bf16.mxu0 %v5276_v27  ;;  %2162 = vmatprep.subr.bf16.mxu1 %v5293_v33  ;;  %6743 = vst [vmem:[#allocation52_spill] sm:$0xff] %v5449_v26 }
  0xf5   : > { %1736 = vmatmul.mubr.bf16.vlgmr.msra.gmra.mrb[4].mxu0 %v4456_v18  ;;  %v5434_v18 = vld [vmem:[#allocation6 + $0x1e0] ss:$16 sps:$4 sm:$0xff]  }
  0xf6   : > { %2196 = vmatpush1.bf16.msra.mxu0 %v5284_v30  ;;  %2163 = vmatpush1.bf16.msra.mxu1 %v5302_v36  ;;  %6739 = vst [vmem:[#allocation48_spill] sm:$0xff] %v5434_v18 }
  0xf7   : > { %2197 = vmatprep.subr.bf16.mxu0 %v5287_v31  ;;  %2164 = vmatprep.subr.bf16.mxu1 %v5305_v37 }
  0xfa   : > { %2198 = vmatpush1.bf16.msra.mxu0 %v5296_v34  ;;  %2165 = vmatpush1.bf16.msra.mxu1 %v5314_v40 }
  0xfb   : > { %2199 = vmatprep.subr.bf16.mxu0 %v5299_v35  ;;  %2166 = vmatprep.subr.bf16.mxu1 %v5317_v41 }
  0xfe   : > { %2200 = vmatpush1.bf16.msra.mxu0 %v5308_v38  ;;  %2167 = vmatpush1.bf16.msra.mxu1 %v5326_v44 }
  0xff   : > { %2201 = vmatprep.subr.bf16.mxu0 %v5311_v39  ;;  %2168 = vmatprep.subr.bf16.mxu1 %v5329_v45 }
 0x102   : > { %2202 = vmatpush1.bf16.msra.mxu0 %v5320_v42  ;;  %2169 = vmatpush1.bf16.msra.mxu1 %v5338_v48 }
 0x103   : > { %2203 = vmatprep.subr.bf16.mxu0 %v5323_v43  ;;  %2170 = vmatprep.subr.bf16.mxu1 %v5341_v49 }
 0x106   : > { %2204 = vmatpush1.bf16.msra.mxu0 %v5332_v46  ;;  %2171 = vmatpush1.bf16.msra.mxu1 %v5350_v52 }
 0x107   : > { %2205 = vmatprep.subr.bf16.mxu0 %v5335_v47  ;;  %2172 = vmatprep.subr.bf16.mxu1 %v5353_v53 }
 0x10a   : > { %2206 = vmatpush1.bf16.msra.mxu0 %v5344_v50  ;;  %2173 = vmatpush1.bf16.msra.mxu1 %v5362_v56 }
 0x10b   : > { %2207 = vmatprep.subr.bf16.mxu0 %v5347_v51  ;;  %2174 = vmatprep.subr.bf16.mxu1 %v5365_v57 }
 0x10e   : > { %2208 = vmatpush1.bf16.msra.mxu0 %v5356_v54  ;;  %2175 = vmatpush1.bf16.msra.mxu1 %v5374_v60 }
 0x10f   : > { %2209 = vmatprep.subr.bf16.mxu0 %v5359_v55  ;;  %2176 = vmatprep.subr.bf16.mxu1 %v5377_v61 }
 0x112   : > { %2210 = vmatpush1.bf16.msra.mxu0 %v5368_v58  ;;  %2177 = vmatpush1.bf16.msra.mxu1 %v5386_v1 }
 0x113   : > { %2211 = vmatprep.subr.bf16.mxu0 %v5371_v59  ;;  %2178 = vmatprep.subr.bf16.mxu1 %v5389_v2 }
 0x116   : > { %2212 = vmatpush1.bf16.msra.mxu0 %v5380_v62  ;;  %2179 = vmatpush1.bf16.msra.mxu1 %v5398_v5 }
 0x117   : > { %2213 = vmatprep.subr.bf16.mxu0 %v5383_v63  ;;  %2180 = vmatprep.subr.bf16.mxu1 %v5401_v6 }
 0x11a   : > { %2214 = vmatpush1.bf16.msra.mxu0 %v5392_v3  ;;  %2181 = vmatpush1.bf16.msra.mxu1 %v5410_v9 }
 0x11b   : > { %2215 = vmatprep.subr.bf16.mxu0 %v5395_v4  ;;  %2182 = vmatprep.subr.bf16.mxu1 %v5413_v10 }
 0x11e   : > { %2216 = vmatpush1.bf16.msra.mxu0 %v5404_v7  ;;  %2183 = vmatpush1.bf16.msra.mxu1 %v5422_v13 }
 0x11f   : > { %2217 = vmatprep.subr.bf16.mxu0 %v5407_v8  ;;  %2184 = vmatprep.subr.bf16.mxu1 %v5425_v14 }
 0x122   : > { %2218 = vmatpush1.bf16.msra.mxu0 %v5416_v11  ;;  %2185 = vmatpush1.bf16.msra.mxu1 %v5434_v18  ;;  %v636_v18 = vlaneseq }
 0x123   : > { %2219 = vmatprep.subr.bf16.mxu0 %v5419_v12  ;;  %2266 = vmatprep.subr.bf16.mxu1 %v5262_v16  ;;  %v4995_v16 = vmov 1983009808  }
 0x124   : > { %v863_v14 = vunpack.c.l.s4 %v4995_v16  ;;  %v637_v13 = vshrl.u32 %v636_v18, 7 }
 0x126   : > { %2220 = vmatpush1.bf16.msra.mxu0 %v5428_v15  ;;  %v864_v10 = vunpack.c.0.s8 %v863_v14 }
 0x127   : > { %2221 = vmatprep.subr.bf16.mxu0 %v5431_v17 }
 0x128   : > { %v5460_v9 = vsub.s32 %v864_v10, %v637_v13 }
 0x12a   : > { %2222 = vmatpush1.bf16.msra.mxu0 %v5438_v19  ;;  %v642_v19 = vsub.s32 1, %v637_v13 }
 0x12b   : > { %2223 = vmatprep.subr.bf16.mxu0 %v5441_v22  ;;  %v634_v22 = vld [vmem:[%s6546_s4] sm:$0x3] }
 0x12e   : > { %2224 = vmatpush1.bf16.msra.mxu0 %v5446_v23  ;;  %v638_v23 = vsub.s32 0, %v637_v13 }
 0x12f   : > { %2225 = vmatprep.subr.bf16.mxu0 %v5449_v26  ;;  %v5465_v26 = vld [vmem:[%s6550_s8] sm:$0xf] }
 0x130   : > { %6745 = vst [vmem:[#allocation54_spill] sm:$0xff] %v5465_v26  ;;  %v639_v16 = vrot.slane %v634_v22, %v638_v23  ;;  %v6755_v23 = vld [vmem:[#allocation41_spill] sm:$0xff] }
 0x132   : > { %2226 = vmatpush1.bf16.msra.mxu0 %v5452_v0  ;;  %v643_v0 = vrot.slane %v634_v22, %v642_v19  ;;  %v6754_v22 = vld [vmem:[#allocation49_spill] sm:$0xff] }
 0x133   : > { %2307 = vmatprep.subr.bf16.mxu0 %v5276_v27  ;;  %v5469_v27 = vrot.slane %v5465_v26, %v5460_v9 }
 0x135   : > { %6746 = vst [vmem:[#allocation55_spill] sm:$0xff] %v5469_v27  ;;  %v5473_v10 = vcombine.high %v5469_v27, %v5469_v27 }
 0x137   : > { %6747 = vst [vmem:[#allocation56_spill] sm:$0xff] %v5473_v10 }
 0x148   : > { %v716_v14 = vpop.f32.mrb[0].mxu0 }
 0x149   : > { %v718_v18 = vpop.f32.mrb[1].mxu0  ;;  %v717_v13 = vadd.f32 %v716_v14, %v639_v16  ;;  %v6757_v16 = vld [vmem:[#allocation44_spill] sm:$0xff]  ;;  %v6758_v14 = vld [vmem:[#allocation51_spill] sm:$0xff] }
 0x14a   : > { %v719_v17 = vadd.f32 %v718_v18, %v643_v0  ;;  %v6748_v0 = vld [vmem:[#allocation43_spill] sm:$0xff]  ;;  %v6759_v18 = vld [vmem:[#allocation45_spill] sm:$0xff] }
 0x14c   : > { %v722_v6 = vrot.slane %v719_v17, 7  ;;  %v6753_v17 = vld [vmem:[#allocation40_spill] sm:$0xff] }
 0x14e   : > { %v725_v15 = vsel %vm724_vm1, %v717_v13, %v722_v6  ;;  %v6750_v6 = vld [vmem:[#allocation46_spill] sm:$0xff]  ;;  %v6760_v13 = vld [vmem:[#allocation52_spill] sm:$0xff] }
 0x14f   : > { %v1766_v5 = vmul.f32 %v5469_v27, %v725_v15  ;;  %v1767_v19 = vmul.f32 %v5473_v10, %v725_v15  ;;  %v6752_v15 = vld [vmem:[#allocation47_spill] sm:$0xff] }
 0x151   : > { %v1768_v12 = vpack.c.bf16 %v1766_v5, %v1766_v5  ;;  %v1769_v26 = vpack.c.bf16 %v1767_v19, %v1767_v19  ;;  %v6749_v5 = vld [vmem:[#allocation36_spill] sm:$0xff] }
 0x152   : > { %v6761_v19 = vld [vmem:[#allocation48_spill] sm:$0xff] }
 0x153   : > { %2186 = vmatprep.mubr.bf16.mxu1 %v1769_v26  ;;  %2227 = vmatprep.mubr.bf16.mxu0 %v1769_v26  ;;  %v6756_v26 = vld [vmem:[#allocation50_spill] sm:$0xff] }
 0x154   : > { %2187 = vmatmul.mubr.bf16.vlgmr.msra.gmra.mrb[4].mxu1 %v1768_v12  ;;  %2228 = vmatmul.mubr.bf16.vlgmr.msra.gmra.mrb[8].mxu0 %v1768_v12  ;;  %v6751_v12 = vld [vmem:[#allocation37_spill] sm:$0xff] }
 0x155   : > { %2267 = vmatpush1.bf16.msra.mxu1 %v5265_v20  ;;  %2308 = vmatpush1.bf16.msra.mxu0 %v5284_v30 }
 0x156   : > { %2268 = vmatprep.subr.bf16.mxu1 %v5268_v21  ;;  %2309 = vmatprep.subr.bf16.mxu0 %v5287_v31 }
 0x159   : > { %2269 = vmatpush1.bf16.msra.mxu1 %v5271_v24  ;;  %2310 = vmatpush1.bf16.msra.mxu0 %v5296_v34 }
 0x15a   : > { %2270 = vmatprep.subr.bf16.mxu1 %v5274_v25  ;;  %2311 = vmatprep.subr.bf16.mxu0 %v5299_v35 }
 0x15d   : > { %2271 = vmatpush1.bf16.msra.mxu1 %v5279_v28  ;;  %2312 = vmatpush1.bf16.msra.mxu0 %v5308_v38 }
 0x15e   : > { %2272 = vmatprep.subr.bf16.mxu1 %v5282_v29  ;;  %2313 = vmatprep.subr.bf16.mxu0 %v5311_v39 }
 0x161   : > { %2273 = vmatpush1.bf16.msra.mxu1 %v5290_v32  ;;  %2314 = vmatpush1.bf16.msra.mxu0 %v5320_v42 }
 0x162   : > { %2274 = vmatprep.subr.bf16.mxu1 %v5293_v33  ;;  %2315 = vmatprep.subr.bf16.mxu0 %v5323_v43 }
 0x165   : > { %2275 = vmatpush1.bf16.msra.mxu1 %v5302_v36  ;;  %2316 = vmatpush1.bf16.msra.mxu0 %v5332_v46 }
 0x166   : > { %2276 = vmatprep.subr.bf16.mxu1 %v5305_v37  ;;  %2317 = vmatprep.subr.bf16.mxu0 %v5335_v47 }
 0x169   : > { %2277 = vmatpush1.bf16.msra.mxu1 %v5314_v40  ;;  %2318 = vmatpush1.bf16.msra.mxu0 %v5344_v50 }
 0x16a   : > { %2278 = vmatprep.subr.bf16.mxu1 %v5317_v41  ;;  %2319 = vmatprep.subr.bf16.mxu0 %v5347_v51 }
 0x16d   : > { %2279 = vmatpush1.bf16.msra.mxu1 %v5326_v44  ;;  %2320 = vmatpush1.bf16.msra.mxu0 %v5356_v54 }
 0x16e   : > { %2280 = vmatprep.subr.bf16.mxu1 %v5329_v45  ;;  %2321 = vmatprep.subr.bf16.mxu0 %v5359_v55 }
 0x171   : > { %2281 = vmatpush1.bf16.msra.mxu1 %v5338_v48  ;;  %2322 = vmatpush1.bf16.msra.mxu0 %v5368_v58 }
 0x172   : > { %2282 = vmatprep.subr.bf16.mxu1 %v5341_v49  ;;  %2323 = vmatprep.subr.bf16.mxu0 %v5371_v59 }
 0x175   : > { %2283 = vmatpush1.bf16.msra.mxu1 %v5350_v52  ;;  %2324 = vmatpush1.bf16.msra.mxu0 %v5380_v62 }
 0x176   : > { %2284 = vmatprep.subr.bf16.mxu1 %v5353_v53  ;;  %2325 = vmatprep.subr.bf16.mxu0 %v5383_v63 }
 0x179   : > { %2285 = vmatpush1.bf16.msra.mxu1 %v5362_v56  ;;  %2326 = vmatpush1.bf16.msra.mxu0 %v5392_v3 }
 0x17a   : > { %2286 = vmatprep.subr.bf16.mxu1 %v5365_v57  ;;  %2327 = vmatprep.subr.bf16.mxu0 %v5395_v4 }
 0x17d   : > { %2287 = vmatpush1.bf16.msra.mxu1 %v5374_v60  ;;  %2328 = vmatpush1.bf16.msra.mxu0 %v5404_v7 }
 0x17e   : > { %2288 = vmatprep.subr.bf16.mxu1 %v5377_v61  ;;  %2329 = vmatprep.subr.bf16.mxu0 %v5407_v8 }
 0x181   : > { %2289 = vmatpush1.bf16.msra.mxu1 %v5386_v1  ;;  %2330 = vmatpush1.bf16.msra.mxu0 %v5416_v11 }
 0x182   : > { %2290 = vmatprep.subr.bf16.mxu1 %v5389_v2  ;;  %2331 = vmatprep.subr.bf16.mxu0 %v6748_v0 }
 0x185   : > { %2291 = vmatpush1.bf16.msra.mxu1 %v6749_v5  ;;  %2332 = vmatpush1.bf16.msra.mxu0 %v6750_v6 }
 0x186   : > { %2292 = vmatprep.subr.bf16.mxu1 %v6751_v12  ;;  %2333 = vmatprep.subr.bf16.mxu0 %v6752_v15  ;;  %v6762_v12 = vld [vmem:[#allocation53_spill] sm:$0xff] }
 0x187   : > { %v6763_v15 = vld [vmem:[#allocation29_spill] sm:$0xff] }
 0x189   : > { %2293 = vmatpush1.bf16.msra.mxu1 %v6753_v17  ;;  %2334 = vmatpush1.bf16.msra.mxu0 %v6754_v22  ;;  %v6764_v17 = vld [vmem:[#allocation30_spill] sm:$0xff] }
 0x18a   : > { %2294 = vmatprep.subr.bf16.mxu1 %v6755_v23  ;;  %2335 = vmatprep.subr.bf16.mxu0 %v6756_v26  ;;  %v727_v26 = vld [vmem:[%s6548_s6] sm:$0xff] }
 0x18b   : > { %v882_v23 = vcombine.low %v727_v26, %v727_v26 }
 0x18d   : > { %2295 = vmatpush1.bf16.msra.mxu1 %v6757_v16  ;;  %2336 = vmatpush1.bf16.msra.mxu0 %v6758_v14  ;;  %v868_v16 = vrot.slane %v727_v26, %v5460_v9  ;;  %v889_v14 = vrot.slane %v882_v23, %v5460_v9 }
 0x18e   : > { %2296 = vmatprep.subr.bf16.mxu1 %v6759_v18  ;;  %2337 = vmatprep.subr.bf16.mxu0 %v6760_v13 }
 0x18f   : > { %v876_v18 = vcombine.high %v868_v16, %v868_v16  ;;  %v890_v13 = vcombine.high %v889_v14, %v889_v14  ;;  %v893_v22 = vcombine.low %v868_v16, %v868_v16 }
 0x191   : > { %2297 = vmatpush1.bf16.msra.mxu1 %v6761_v19  ;;  %2338 = vmatpush1.bf16.msra.mxu0 %v6762_v12  ;;  %v900_v19 = vsel %vm899_vm2, %v868_v16, %v889_v14  ;;  %v861_v12 = vcombine.high %v727_v26, %v727_v26 }
 0x192   : > { %2410 = vmatprep.subr.bf16.mxu1 %v6763_v15  ;;  %2451 = vmatprep.subr.bf16.mxu0 %v6764_v17  ;;  %v901_v15 = vsel %vm899_vm2, %v876_v18, %v890_v13  ;;  %v897_v17 = vcombine.low %v889_v14, %v889_v14  ;;  %v905_v6 = vsel %vm904_vm3, %v900_v19, %v893_v22 }
 0x193   : > { %v906_v5 = vsel %vm904_vm3, %v901_v15, %v868_v16  ;;  %v875_v0 = vrot.slane %v861_v12, %v5460_v9 }
 0x194   : > { %v910_v23 = vsel %vm909_vm4, %v905_v6, %v897_v17  ;;  %v911_v2 = vsel %vm909_vm4, %v906_v5, %v889_v14 }
 0x195   : > { %v877_v1 = vcombine.high %v875_v0, %v875_v0  ;;  %v894_v60 = vcombine.low %v875_v0, %v875_v0  ;;  %v902_v19 = vsel %vm899_vm2, %v875_v0, %v868_v16 }
 0x197   : > { %v903_v12 = vsel %vm899_vm2, %v877_v1, %v876_v18  ;;  %v907_v5 = vsel %vm904_vm3, %v902_v19, %v894_v60 }
 0x198   : > { %v908_v6 = vsel %vm904_vm3, %v903_v12, %v875_v0 }
 0x1b8   : > { %v1651_v11 = vpop.f32.mrb[0].mxu1 }
 0x1b9   : > { %v4159_v8 = vadd.f32 %v1651_v11, %v910_v23  ;;  %v1653_v61 = vpop.f32.mrb[1].mxu1  ;;  %v912_v11 = vsel %vm909_vm4, %v907_v5, %v893_v22 }
 0x1ba   : > { %v4160_v7 = vadd.f32 %v1653_v61, %v911_v2  ;;  %v1655_v26 = vpop.f32.mrb[2].mxu1  ;;  %v913_v61 = vsel %vm909_vm4, %v908_v6, %v868_v16 }
 0x1bb   : > { %1746 = vst [vmem:[#allocation2] sm:$0xff] %v4159_v8  ;;  %v4161_v13 = vadd.f32 %v1655_v26, %v910_v23  ;;  %v1657_v4 = vpop.f32.mrb[3].mxu1 }
 0x1bc   : > { %1747 = vst [vmem:[#allocation2 + $0x8] sm:$0xff] %v4160_v7  ;;  %v4162_v15 = vadd.f32 %v1657_v4, %v911_v2 }
 0x1bd   : > { %1750 = vst [vmem:[#allocation2 + $0x20] sm:$0xff] %v4161_v13 }
 0x1be   : > { %1751 = vst [vmem:[#allocation2 + $0x28] sm:$0xff] %v4162_v15 }
 0x1c2   : > { %v2236_v60 = vld [vmem:[#allocation2] sm:$0x3] }
 0x1c3   : > { %v2237_v22 = vld [vmem:[#allocation2 + $0x8] sm:$0x3] }
 0x1c8   : > { %v1737_v17 = vpop.f32.mrb[4].mxu0 }
 0x1c9   : > { %v4163_v8 = vadd.f32 %v1737_v17, %v912_v11  ;;  %v1739_v14 = vpop.f32.mrb[5].mxu0 }
 0x1ca   : > { %v4164_v23 = vadd.f32 %v1739_v14, %v913_v61  ;;  %v1741_v26 = vpop.f32.mrb[6].mxu0 }
 0x1cb   : > { %1748 = vst [vmem:[#allocation2 + $0x10] sm:$0xff] %v4163_v8  ;;  %v4165_v7 = vadd.f32 %v1741_v26, %v912_v11  ;;  %v1743_v2 = vpop.f32.mrb[7].mxu0 }
 0x1cc   : > { %1749 = vst [vmem:[#allocation2 + $0x18] sm:$0xff] %v4164_v23  ;;  %v4166_v1 = vadd.f32 %v1743_v2, %v913_v61 }
 0x1cd   : > { %1752 = vst [vmem:[#allocation2 + $0x30] sm:$0xff] %v4165_v7 }
 0x1ce   : > { %1753 = vst [vmem:[#allocation2 + $0x38] sm:$0xff] %v4166_v1 }
 0x1d2   : > { %v2238_v11 = vld [vmem:[#allocation2 + $0x10] sm:$0x3] }
 0x1d3   : > { %v2239_v14 = vld [vmem:[#allocation2 + $0x18] sm:$0x3] }
 0x227   : > { %v2188_v4 = vpop.f32.mrb[4].mxu1  ;;  %v2229_v18 = vpop.f32.mrb[8].mxu0 }
 0x228   : > { %v2240_v0 = vadd.f32 %v2236_v60, %v2188_v4  ;;  %v2190_v13 = vpop.f32.mrb[5].mxu1  ;;  %v2231_v16 = vpop.f32.mrb[9].mxu0  ;;  %v2242_v61 = vadd.f32 %v2238_v11, %v2229_v18 }
 0x229   : > { %v2241_v19 = vadd.f32 %v2237_v22, %v2190_v13  ;;  %v2192_v15 = vpop.f32.mrb[6].mxu1  ;;  %v2233_v12 = vpop.f32.mrb[10].mxu0  ;;  %v2243_v23 = vadd.f32 %v2239_v14, %v2231_v16 }
 0x22a   : > { %v2244_v5 = vmul.f32 0.5, %v2240_v0  ;;  %v2193_v6 = vpop.f32.mrb[7].mxu1  ;;  %v2234_v17 = vpop.f32.mrb[11].mxu0  ;;  %v726_v0 = vld [vmem:[%s622_s17] sm:$0x3]  ;;  %s3433_s17 = sand.u32 1, %s5111_s25  }
 0x22b   : > { %v2248_v8 = vmul.f32 0.5, %v2241_v19  ;;  %v2253_v26 = vmul.f32 0.5, %v2243_v23  ;;  %v6767_v23 = vld [vmem:[#allocation35_spill] sm:$0xff] }
 0x22c   : > { %4564 = vtanh.f32 %v2244_v5 }
 0x22d   : > { %4566 = vtanh.f32 %v2248_v8 }
 0x22e   : > { %4568 = vtanh.f32 %v2242_v61 }
 0x22f   : > { %4570 = vtanh.f32 %v2253_v26  ;;  %v6768_v26 = vld [vmem:[#allocation31_spill] sm:$0xff] }
 0x236   : > { %v4565_v7 = vpop.eup %4564 }
 0x237   : > { %v4567_v2 = vpop.eup %4566  ;;  %v2246_v1 = vmul.f32 0.5, %v4565_v7  ;;  %v6769_v7 = vld [vmem:[#allocation38_spill] sm:$0xff] }
 0x238   : > { %v2250_v4 = vmul.f32 0.5, %v4567_v2  ;;  %v4569_v13 = vpop.eup %4568  ;;  %v6770_v2 = vld [vmem:[#allocation32_spill] sm:$0xff] }
 0x239   : > { %v2247_v60 = vadd.f32 0.5, %v2246_v1  ;;  %v4571_v16 = vpop.eup %4570  ;;  %v6771_v1 = vld [vmem:[#allocation39_spill] sm:$0xff] }
 0x23a   : > { %v2251_v22 = vadd.f32 0.5, %v2250_v4  ;;  %v2255_v12 = vmul.f32 0.5, %v4571_v16  ;;  %v6772_v4 = vld [vmem:[#allocation33_spill] sm:$0xff]  ;;  %v6779_v16 = vld [vmem:[#allocation47_spill] sm:$0xff] }
 0x23b   : > { %v2258_v18 = vmul.f32 %v4569_v13, %v2247_v60  ;;  %v6773_v60 = vld [vmem:[#allocation42_spill] sm:$0xff]  ;;  %v6775_v13 = vld [vmem:[#allocation43_spill] sm:$0xff] }
 0x23c   : > { %v2257_v19 = vmul.f32 %v2251_v22, %v726_v0  ;;  %v2256_v5 = vadd.f32 0.5, %v2255_v12  ;;  %v6774_v0 = vld [vmem:[#allocation34_spill] sm:$0xff]  ;;  %v6776_v22 = vld [vmem:[#allocation36_spill] sm:$0xff] }
 0x23d   : > { %v6780_v12 = vld [vmem:[#allocation40_spill] sm:$0xff] }
 0x23e   : > { %v5564_v15 = vadd.f32 %v2258_v18, %v2257_v19  ;;  %v6777_v18 = vld [vmem:[#allocation46_spill] sm:$0xff]  ;;  %v6778_v19 = vld [vmem:[#allocation37_spill] sm:$0xff] }
 0x240   : > { %4572 = vtanh.f32 %v5564_v15 }
 0x24a   : > { %v4573_v6 = vpop.eup %4572 }
 0x24b   : > { %v5567_v17 = vmul.f32 %v4573_v6, %v2256_v5  ;;  %v6781_v5 = vld [vmem:[#allocation49_spill] sm:$0xff] }
 0x24c   : > { %v6782_v6 = vld [vmem:[#allocation41_spill] sm:$0xff] }
 0x24d   : > { %6766 = vst [vmem:[#allocation57_spill] sm:$0xff] %v5567_v17  ;;  %v2263_v11 = vmul.f32 %v5567_v17, %v5473_v10  ;;  %v2262_v8 = vmul.f32 %v5567_v17, %v5469_v27  ;;  %v6787_v10 = vld [vmem:[#allocation52_spill] sm:$0xff]  ;;  %v6789_v27 = vld [vmem:[#allocation53_spill] sm:$0xff] }
 0x24e   : > { %v6788_v17 = vld [vmem:[#allocation48_spill] sm:$0xff] }
 0x24f   : > { %v2265_v61 = vpack.c.bf16 %v2263_v11, %v2263_v11  ;;  %v2264_v14 = vpack.c.bf16 %v2262_v8, %v2262_v8  ;;  %v6783_v11 = vld [vmem:[#allocation50_spill] sm:$0xff]  ;;  %v6784_v8 = vld [vmem:[#allocation44_spill] sm:$0xff] }
 0x251   : > { %2298 = vmatprep.mubr.bf16.mxu1 %v2265_v61  ;;  %2339 = vmatprep.mubr.bf16.mxu0 %v2265_v61  ;;  %v6785_v61 = vld [vmem:[#allocation51_spill] sm:$0xff] }
 0x252   : > { %2299 = vmatmul.mubr.bf16.vlgmr.msra.gmra.mrb[8].mxu1 %v2264_v14  ;;  %2340 = vmatmul.mubr.bf16.vlgmr.msra.gmra.mrb[12].mxu0 %v2264_v14  ;;  %v6786_v14 = vld [vmem:[#allocation45_spill] sm:$0xff] }
 0x253   : > { %2411 = vmatpush1.bf16.msra.mxu1 %v5265_v20  ;;  %2452 = vmatpush1.bf16.msra.mxu0 %v5284_v30 }
 0x254   : > { %2412 = vmatprep.subr.bf16.mxu1 %v5268_v21  ;;  %2453 = vmatprep.subr.bf16.mxu0 %v5287_v31 }
 0x257   : > { %2413 = vmatpush1.bf16.msra.mxu1 %v5271_v24  ;;  %2454 = vmatpush1.bf16.msra.mxu0 %v5296_v34 }
 0x258   : > { %2414 = vmatprep.subr.bf16.mxu1 %v5274_v25  ;;  %2455 = vmatprep.subr.bf16.mxu0 %v5299_v35 }
 0x25b   : > { %2415 = vmatpush1.bf16.msra.mxu1 %v5279_v28  ;;  %2456 = vmatpush1.bf16.msra.mxu0 %v5308_v38 }
 0x25c   : > { %2416 = vmatprep.subr.bf16.mxu1 %v5282_v29  ;;  %2457 = vmatprep.subr.bf16.mxu0 %v5311_v39 }
 0x25f   : > { %2417 = vmatpush1.bf16.msra.mxu1 %v5290_v32  ;;  %2458 = vmatpush1.bf16.msra.mxu0 %v5320_v42 }
 0x260   : > { %2418 = vmatprep.subr.bf16.mxu1 %v5293_v33  ;;  %2459 = vmatprep.subr.bf16.mxu0 %v5323_v43 }
 0x263   : > { %2419 = vmatpush1.bf16.msra.mxu1 %v5302_v36  ;;  %2460 = vmatpush1.bf16.msra.mxu0 %v5332_v46 }
 0x264   : > { %2420 = vmatprep.subr.bf16.mxu1 %v5305_v37  ;;  %2461 = vmatprep.subr.bf16.mxu0 %v5335_v47 }
 0x267   : > { %2421 = vmatpush1.bf16.msra.mxu1 %v5314_v40  ;;  %2462 = vmatpush1.bf16.msra.mxu0 %v5344_v50 }
 0x268   : > { %2422 = vmatprep.subr.bf16.mxu1 %v5317_v41  ;;  %2463 = vmatprep.subr.bf16.mxu0 %v5347_v51 }
 0x26b   : > { %2423 = vmatpush1.bf16.msra.mxu1 %v5326_v44  ;;  %2464 = vmatpush1.bf16.msra.mxu0 %v5356_v54 }
 0x26c   : > { %2424 = vmatprep.subr.bf16.mxu1 %v5329_v45  ;;  %2465 = vmatprep.subr.bf16.mxu0 %v5359_v55 }
 0x26f   : > { %2425 = vmatpush1.bf16.msra.mxu1 %v5338_v48  ;;  %2466 = vmatpush1.bf16.msra.mxu0 %v5368_v58 }
 0x270   : > { %2426 = vmatprep.subr.bf16.mxu1 %v5341_v49  ;;  %2467 = vmatprep.subr.bf16.mxu0 %v5371_v59 }
 0x273   : > { %2427 = vmatpush1.bf16.msra.mxu1 %v5350_v52  ;;  %2468 = vmatpush1.bf16.msra.mxu0 %v5380_v62 }
 0x274   : > { %2428 = vmatprep.subr.bf16.mxu1 %v5353_v53  ;;  %2469 = vmatprep.subr.bf16.mxu0 %v5383_v63 }
 0x277   : > { %2429 = vmatpush1.bf16.msra.mxu1 %v5362_v56  ;;  %2470 = vmatpush1.bf16.msra.mxu0 %v5392_v3 }
 0x278   : > { %2430 = vmatprep.subr.bf16.mxu1 %v5365_v57  ;;  %2471 = vmatprep.subr.bf16.mxu0 %v6767_v23 }
 0x27b   : > { %2431 = vmatpush1.bf16.msra.mxu1 %v6768_v26  ;;  %2472 = vmatpush1.bf16.msra.mxu0 %v6769_v7 }
 0x27c   : > { %2432 = vmatprep.subr.bf16.mxu1 %v6770_v2  ;;  %2473 = vmatprep.subr.bf16.mxu0 %v6771_v1  ;;  %v2350_v1 = vld [vmem:[#allocation2 + $0x10] sm:$0xc] }
 0x27f   : > { %2433 = vmatpush1.bf16.msra.mxu1 %v6772_v4  ;;  %2474 = vmatpush1.bf16.msra.mxu0 %v6773_v60 }
 0x280   : > { %2434 = vmatprep.subr.bf16.mxu1 %v6774_v0  ;;  %2475 = vmatprep.subr.bf16.mxu0 %v6775_v13 }
 0x283   : > { %2435 = vmatpush1.bf16.msra.mxu1 %v6776_v22  ;;  %2476 = vmatpush1.bf16.msra.mxu0 %v6777_v18 }
 0x284   : > { %2436 = vmatprep.subr.bf16.mxu1 %v6778_v19  ;;  %2477 = vmatprep.subr.bf16.mxu0 %v6779_v16  ;;  %v6790_v16 = vld [vmem:[#allocation29_spill] sm:$0xff] }
 0x287   : > { %2437 = vmatpush1.bf16.msra.mxu1 %v6780_v12  ;;  %2478 = vmatpush1.bf16.msra.mxu0 %v6781_v5  ;;  %v6791_v12 = vld [vmem:[#allocation30_spill] sm:$0xff] }
 0x288   : > { %2438 = vmatprep.subr.bf16.mxu1 %v6782_v6  ;;  %2479 = vmatprep.subr.bf16.mxu0 %v6783_v11 }
 0x28b   : > { %2439 = vmatpush1.bf16.msra.mxu1 %v6784_v8  ;;  %2480 = vmatpush1.bf16.msra.mxu0 %v6785_v61  ;;  %v2348_v8 = vld [vmem:[#allocation2] sm:$0xc] }
 0x28c   : > { %2440 = vmatprep.subr.bf16.mxu1 %v6786_v14  ;;  %2481 = vmatprep.subr.bf16.mxu0 %v6787_v10  ;;  %v2349_v10 = vld [vmem:[#allocation2 + $0x8] sm:$0xc] }
 0x28f   : > { %2441 = vmatpush1.bf16.msra.mxu1 %v6788_v17  ;;  %2482 = vmatpush1.bf16.msra.mxu0 %v6789_v27 }
 0x290   : > { %2545 = vmatprep.subr.bf16.mxu1 %v6790_v16  ;;  %2586 = vmatprep.subr.bf16.mxu0 %v6791_v12 }
 0x325   : > { %v2300_v5 = vpop.f32.mrb[8].mxu1  ;;  %v2341_v6 = vpop.f32.mrb[12].mxu0 }
 0x326   : > { %v2356_v19 = vrot.slane %v2300_v5, 6  ;;  %v2302_v11 = vpop.f32.mrb[9].mxu1  ;;  %v2343_v18 = vpop.f32.mrb[13].mxu0  ;;  %v2358_v0 = vrot.slane %v2341_v6, 6  ;;  %v2351_v5 = vld [vmem:[#allocation2 + $0x18] sm:$0xc] }
 0x327   : > { %v2357_v22 = vrot.slane %v2302_v11, 6  ;;  %v2304_v61 = vpop.f32.mrb[10].mxu1  ;;  %v2345_v13 = vpop.f32.mrb[14].mxu0  ;;  %v2359_v2 = vrot.slane %v2343_v18, 6 }
 0x328   : > { %v2364_v14 = vadd.f32 %v2356_v19, %v2348_v8  ;;  %v2305_v60 = vpop.f32.mrb[11].mxu1  ;;  %v2346_v17 = vpop.f32.mrb[15].mxu0  ;;  %v2366_v12 = vadd.f32 %v2358_v0, %v2350_v1  ;;  %v6792_v1 = vld [vmem:[#allocation54_spill] sm:$0xff] }
 0x329   : > { %v2365_v4 = vadd.f32 %v2357_v22, %v2349_v10  ;;  %v2367_v7 = vadd.f32 %v2359_v2, %v2351_v5  ;;  %v2382_v10 = vrot.slane %v5564_v15, 6  ;;  %v2389_v2 = vcombine.low %v6792_v1, %v6792_v1 }
 0x32a   : > { %v2368_v27 = vmul.f32 0.5, %v2364_v14 }
 0x32b   : > { %v2372_v16 = vmul.f32 0.5, %v2365_v4  ;;  %v2377_v26 = vmul.f32 0.5, %v2367_v7  ;;  %v5644_v18 = vrot.slane %v2389_v2, %v5460_v9 }
 0x32c   : > { %4574 = vtanh.f32 %v2368_v27 }
 0x32d   : > { %4576 = vtanh.f32 %v2372_v16  ;;  %6793 = vst [vmem:[#allocation35_spill] sm:$0xff] %v5644_v18 }
 0x32e   : > { %4578 = vtanh.f32 %v2366_v12  ;;  %v5648_v12 = vcombine.high %v5644_v18, %v5644_v18 }
 0x32f   : > { %4580 = vtanh.f32 %v2377_v26 }
 0x330   : > { %6794 = vst [vmem:[#allocation29_spill] sm:$0xff] %v5648_v12 }
 0x336   : > { %v4575_v11 = vpop.eup %4574 }
 0x337   : > { %v4577_v61 = vpop.eup %4576  ;;  %v2370_v13 = vmul.f32 0.5, %v4575_v11 }
 0x338   : > { %v2374_v19 = vmul.f32 0.5, %v4577_v61  ;;  %v4579_v60 = vpop.eup %4578 }
 0x339   : > { %v2371_v6 = vadd.f32 0.5, %v2370_v13  ;;  %v4581_v7 = vpop.eup %4580 }
 0x33a   : > { %v2375_v17 = vadd.f32 0.5, %v2374_v19  ;;  %v2379_v0 = vmul.f32 0.5, %v4581_v7 }
 0x33b   : > { %v2385_v22 = vmul.f32 %v4579_v60, %v2371_v6 }
 0x33c   : > { %v2384_v4 = vmul.f32 %v2382_v10, %v2375_v17  ;;  %v2380_v26 = vadd.f32 0.5, %v2379_v0  ;;  %v2495_v17 = vld [vmem:[#allocation2 + $0x18] sm:$0x30] }
 0x33e   : > { %v5638_v27 = vadd.f32 %v2385_v22, %v2384_v4 }
 0x340   : > { %4582 = vtanh.f32 %v5638_v27 }
 0x34a   : > { %v4583_v15 = vpop.eup %4582 }
 0x34b   : > { %v5650_v8 = vmul.f32 %v4583_v15, %v2380_v26 }
 0x34d   : > { %6795 = vst [vmem:[#allocation54_spill] sm:$0xff] %v5650_v8  ;;  %v2401_v14 = vmul.f32 %v5648_v12, %v5650_v8  ;;  %v2400_v16 = vmul.f32 %v5644_v18, %v5650_v8  ;;  %v5880_v12 = vld [vmem:[#allocation6 + $0x1a4] ss:$16 sps:$4 sm:$0xff]  }
 0x34f   : > { %v2403_v5 = vpack.c.bf16 %v2401_v14, %v2401_v14  ;;  %v2402_v11 = vpack.c.bf16 %v2400_v16, %v2400_v16  ;;  %v2526_v14 = vrot.slane %v5638_v27, 6 }
 0x351   : > { %v2407_v61 = vrot.slane %v2403_v5, 1  ;;  %v2406_v13 = vrot.slane %v2402_v11, 1 }
 0x353   : > { %2442 = vmatprep.mubr.bf16.mxu1 %v2407_v61  ;;  %2483 = vmatprep.mubr.bf16.mxu0 %v2407_v61 }
 0x354   : > { %2443 = vmatmul.mubr.bf16.vlgmr.msra.gmra.mrb[12].mxu1 %v2406_v13  ;;  %2484 = vmatmul.mubr.bf16.vlgmr.msra.gmra.mrb[16].mxu0 %v2406_v13 }
 0x355   : > { %2546 = vmatpush1.bf16.msra.mxu1 %v5265_v20  ;;  %2587 = vmatpush1.bf16.msra.mxu0 %v5284_v30  ;;  %v6796_v20 = vld [vmem:[#allocation31_spill] sm:$0xff]  ;;  %v6802_v30 = vld [vmem:[#allocation34_spill] sm:$0xff] }
 0x356   : > { %2547 = vmatprep.subr.bf16.mxu1 %v5268_v21  ;;  %2588 = vmatprep.subr.bf16.mxu0 %v5287_v31  ;;  %v6797_v21 = vld [vmem:[#allocation38_spill] sm:$0xff]  ;;  %v6803_v31 = vld [vmem:[#allocation43_spill] sm:$0xff] }
 0x359   : > { %2548 = vmatpush1.bf16.msra.mxu1 %v5271_v24  ;;  %2589 = vmatpush1.bf16.msra.mxu0 %v5296_v34  ;;  %v6798_v24 = vld [vmem:[#allocation32_spill] sm:$0xff]  ;;  %v6806_v34 = vld [vmem:[#allocation37_spill] sm:$0xff] }
 0x35a   : > { %2549 = vmatprep.subr.bf16.mxu1 %v5274_v25  ;;  %2590 = vmatprep.subr.bf16.mxu0 %v5299_v35  ;;  %v6799_v25 = vld [vmem:[#allocation39_spill] sm:$0xff] }
 0x35b   : > { %v6807_v35 = vld [vmem:[#allocation47_spill] sm:$0xff] }
 0x35d   : > { %2550 = vmatpush1.bf16.msra.mxu1 %v5279_v28  ;;  %2591 = vmatpush1.bf16.msra.mxu0 %v5308_v38  ;;  %v6800_v28 = vld [vmem:[#allocation33_spill] sm:$0xff] }
 0x35e   : > { %2551 = vmatprep.subr.bf16.mxu1 %v5282_v29  ;;  %2592 = vmatprep.subr.bf16.mxu0 %v5311_v39  ;;  %v6801_v29 = vld [vmem:[#allocation42_spill] sm:$0xff]  ;;  %v6810_v38 = vld [vmem:[#allocation41_spill] sm:$0xff] }
 0x35f   : > { %v6811_v39 = vld [vmem:[#allocation50_spill] sm:$0xff] }
 0x361   : > { %2552 = vmatpush1.bf16.msra.mxu1 %v5290_v32  ;;  %2593 = vmatpush1.bf16.msra.mxu0 %v5320_v42  ;;  %v6804_v32 = vld [vmem:[#allocation36_spill] sm:$0xff]  ;;  %v6814_v42 = vld [vmem:[#allocation45_spill] sm:$0xff] }
 0x362   : > { %2553 = vmatprep.subr.bf16.mxu1 %v5293_v33  ;;  %2594 = vmatprep.subr.bf16.mxu0 %v5323_v43  ;;  %v6805_v33 = vld [vmem:[#allocation46_spill] sm:$0xff]  ;;  %v6815_v43 = vld [vmem:[#allocation52_spill] sm:$0xff] }
 0x365   : > { %2554 = vmatpush1.bf16.msra.mxu1 %v5302_v36  ;;  %2595 = vmatpush1.bf16.msra.mxu0 %v5332_v46  ;;  %v6808_v36 = vld [vmem:[#allocation40_spill] sm:$0xff] }
 0x366   : > { %2555 = vmatprep.subr.bf16.mxu1 %v5305_v37  ;;  %2596 = vmatprep.subr.bf16.mxu0 %v5335_v47  ;;  %v6809_v37 = vld [vmem:[#allocation49_spill] sm:$0xff]  ;;  %v6819_v47 = vld [vmem:[#allocation30_spill] sm:$0xff]  ;;  %6832 = vst [vmem:[#allocation40_spill] sm:$0xff] %v5880_v12 }
 0x367   : > { %v5718_v46 = vld [vmem:[#allocation6 + $0x4] ss:$16 sps:$4 sm:$0xff]  }
 0x368   : > { %6818 = vst [vmem:[#allocation31_spill] sm:$0xff] %v5718_v46 }
 0x369   : > { %2556 = vmatpush1.bf16.msra.mxu1 %v5314_v40  ;;  %2597 = vmatpush1.bf16.msra.mxu0 %v5344_v50  ;;  %v6812_v40 = vld [vmem:[#allocation44_spill] sm:$0xff] }
 0x36a   : > { %2557 = vmatprep.subr.bf16.mxu1 %v5317_v41  ;;  %2598 = vmatprep.subr.bf16.mxu0 %v5347_v51  ;;  %v6813_v41 = vld [vmem:[#allocation51_spill] sm:$0xff] }
 0x36d   : > { %2558 = vmatpush1.bf16.msra.mxu1 %v5326_v44  ;;  %2599 = vmatpush1.bf16.msra.mxu0 %v5356_v54  ;;  %v6816_v44 = vld [vmem:[#allocation48_spill] sm:$0xff] }
 0x36e   : > { %2559 = vmatprep.subr.bf16.mxu1 %v5329_v45  ;;  %2600 = vmatprep.subr.bf16.mxu0 %v5359_v55  ;;  %v6817_v45 = vld [vmem:[#allocation53_spill] sm:$0xff] }
 0x371   : > { %2560 = vmatpush1.bf16.msra.mxu1 %v5338_v48  ;;  %2601 = vmatpush1.bf16.msra.mxu0 %v5368_v58 }
 0x372   : > { %2561 = vmatprep.subr.bf16.mxu1 %v5341_v49  ;;  %2602 = vmatprep.subr.bf16.mxu0 %v5371_v59  ;;  %v2493_v59 = vld [vmem:[#allocation2 + $0x8] sm:$0x30] }
 0x375   : > { %2562 = vmatpush1.bf16.msra.mxu1 %v5350_v52  ;;  %2603 = vmatpush1.bf16.msra.mxu0 %v5380_v62 }
 0x376   : > { %2563 = vmatprep.subr.bf16.mxu1 %v5353_v53  ;;  %2604 = vmatprep.subr.bf16.mxu0 %v5383_v63  ;;  %v2492_v53 = vld [vmem:[#allocation2] sm:$0x30] }
 0x379   : > { %2564 = vmatpush1.bf16.msra.mxu1 %v5362_v56  ;;  %2605 = vmatpush1.bf16.msra.mxu0 %v5392_v3 }
 0x37a   : > { %2565 = vmatprep.subr.bf16.mxu1 %v5365_v57  ;;  %2606 = vmatprep.subr.bf16.mxu0 %v6767_v23  ;;  %v2494_v23 = vld [vmem:[#allocation2 + $0x10] sm:$0x30] }
 0x37d   : > { %2566 = vmatpush1.bf16.msra.mxu1 %v6796_v20  ;;  %2607 = vmatpush1.bf16.msra.mxu0 %v6797_v21  ;;  %v6820_v21 = vld [vmem:[#allocation55_spill] sm:$0xff] }
 0x37e   : > { %2567 = vmatprep.subr.bf16.mxu1 %v6798_v24  ;;  %2608 = vmatprep.subr.bf16.mxu0 %v6799_v25  ;;  %v5728_v24 = vcombine.low %v6820_v21, %v6820_v21 }
 0x380   : > { %6821 = vst [vmem:[#allocation38_spill] sm:$0xff] %v5728_v24 }
 0x381   : > { %2568 = vmatpush1.bf16.msra.mxu1 %v6800_v28  ;;  %2609 = vmatpush1.bf16.msra.mxu0 %v6801_v29 }
 0x382   : > { %2569 = vmatprep.subr.bf16.mxu1 %v6802_v30  ;;  %2610 = vmatprep.subr.bf16.mxu0 %v6803_v31 }
 0x385   : > { %2570 = vmatpush1.bf16.msra.mxu1 %v6804_v32  ;;  %2611 = vmatpush1.bf16.msra.mxu0 %v6805_v33 }
 0x386   : > { %2571 = vmatprep.subr.bf16.mxu1 %v6806_v34  ;;  %2612 = vmatprep.subr.bf16.mxu0 %v6807_v35 }
 0x389   : > { %2572 = vmatpush1.bf16.msra.mxu1 %v6808_v36  ;;  %2613 = vmatpush1.bf16.msra.mxu0 %v6809_v37 }
 0x38a   : > { %2573 = vmatprep.subr.bf16.mxu1 %v6810_v38  ;;  %2614 = vmatprep.subr.bf16.mxu0 %v6811_v39 }
 0x38d   : > { %2574 = vmatpush1.bf16.msra.mxu1 %v6812_v40  ;;  %2615 = vmatpush1.bf16.msra.mxu0 %v6813_v41  ;;  %v5736_v40 = vld [vmem:[#allocation6] ss:$16 sps:$4 sm:$0xff]  }
 0x38e   : > { %2575 = vmatprep.subr.bf16.mxu1 %v6814_v42  ;;  %2616 = vmatprep.subr.bf16.mxu0 %v6815_v43  ;;  %v5739_v42 = vld [vmem:[#allocation6 + $0x8] ss:$16 sps:$4 sm:$0xff]  }
 0x391   : > { %2576 = vmatpush1.bf16.msra.mxu1 %v6816_v44  ;;  %2617 = vmatpush1.bf16.msra.mxu0 %v6817_v45 }
 0x392   : > { %2680 = vmatprep.subr.bf16.mxu1 %v5718_v46  ;;  %2721 = vmatprep.subr.bf16.mxu0 %v6819_v47  ;;  %v5742_v47 = vld [vmem:[#allocation6 + $0x24] ss:$16 sps:$4 sm:$0xff]  }
 0x427   : > { %v2444_v48 = vpop.f32.mrb[12].mxu1  ;;  %v2485_v49 = vpop.f32.mrb[16].mxu0 }
 0x428   : > { %v2500_v50 = vrot.slane %v2444_v48, 4  ;;  %v2446_v51 = vpop.f32.mrb[13].mxu1  ;;  %v2487_v52 = vpop.f32.mrb[17].mxu0  ;;  %v2502_v58 = vrot.slane %v2485_v49, 4  ;;  %v5745_v48 = vld [vmem:[#allocation6 + $0x2c] ss:$16 sps:$4 sm:$0xff]  }
 0x429   : > { %v2501_v54 = vrot.slane %v2446_v51, 4  ;;  %v2448_v55 = vpop.f32.mrb[14].mxu1  ;;  %v2489_v56 = vpop.f32.mrb[18].mxu0  ;;  %v2503_v60 = vrot.slane %v2487_v52, 4  ;;  %v5748_v49 = vld [vmem:[#allocation6 + $0x20] ss:$16 sps:$4 sm:$0xff]  }
 0x42a   : > { %v2508_v57 = vadd.f32 %v2500_v50, %v2492_v53  ;;  %v2449_v62 = vpop.f32.mrb[15].mxu1  ;;  %v2490_v63 = vpop.f32.mrb[19].mxu0  ;;  %v2510_v6 = vadd.f32 %v2502_v58, %v2494_v23  ;;  %v5751_v50 = vld [vmem:[#allocation6 + $0x28] ss:$16 sps:$4 sm:$0xff]   ;;  %v5754_v51 = vld [vmem:[#allocation6 + $0x44] ss:$16 sps:$4 sm:$0xff]  }
 0x42b   : > { %v2509_v3 = vadd.f32 %v2501_v54, %v2493_v59  ;;  %v2511_v10 = vadd.f32 %v2503_v60, %v2495_v17  ;;  %v5757_v52 = vld [vmem:[#allocation6 + $0x4c] ss:$16 sps:$4 sm:$0xff]   ;;  %v5760_v53 = vld [vmem:[#allocation6 + $0x40] ss:$16 sps:$4 sm:$0xff]   ;;  %v5763_v54 = vld [vmem:[#allocation6 + $0x48] ss:$16 sps:$4 sm:$0xff]  }
 0x42c   : > { %v2512_v9 = vmul.f32 0.5, %v2508_v57  ;;  %v5766_v55 = vld [vmem:[#allocation6 + $0x64] ss:$16 sps:$4 sm:$0xff]   ;;  %v5769_v56 = vld [vmem:[#allocation6 + $0x6c] ss:$16 sps:$4 sm:$0xff]  }
 0x42d   : > { %v2516_v19 = vmul.f32 0.5, %v2509_v3  ;;  %v2521_v22 = vmul.f32 0.5, %v2511_v10  ;;  %v5772_v57 = vld [vmem:[#allocation6 + $0x60] ss:$16 sps:$4 sm:$0xff]   ;;  %v5775_v58 = vld [vmem:[#allocation6 + $0x68] ss:$16 sps:$4 sm:$0xff]  }
 0x42e   : > { %4584 = vtanh.f32 %v2512_v9  ;;  %v5778_v59 = vld [vmem:[#allocation6 + $0x84] ss:$16 sps:$4 sm:$0xff]   ;;  %v5781_v62 = vld [vmem:[#allocation6 + $0x8c] ss:$16 sps:$4 sm:$0xff]   ;;  %v5784_v63 = vld [vmem:[#allocation6 + $0x80] ss:$16 sps:$4 sm:$0xff]  }
 0x42f   : > { %4586 = vtanh.f32 %v2516_v19  ;;  %v5787_v3 = vld [vmem:[#allocation6 + $0x88] ss:$16 sps:$4 sm:$0xff]   ;;  %v5790_v9 = vld [vmem:[#allocation6 + $0xa4] ss:$16 sps:$4 sm:$0xff]   ;;  %v5793_v23 = vld [vmem:[#allocation6 + $0xac] ss:$16 sps:$4 sm:$0xff]  }
 0x430   : > { %4588 = vtanh.f32 %v2510_v6  ;;  %v5796_v19 = vld [vmem:[#allocation6 + $0xa0] ss:$16 sps:$4 sm:$0xff]   ;;  %v5799_v6 = vld [vmem:[#allocation6 + $0xa8] ss:$16 sps:$4 sm:$0xff]   ;;  %v5802_v60 = vld [vmem:[#allocation6 + $0xc4] ss:$16 sps:$4 sm:$0xff]  }
 0x431   : > { %4590 = vtanh.f32 %v2521_v22  ;;  %v5805_v17 = vld [vmem:[#allocation6 + $0xcc] ss:$16 sps:$4 sm:$0xff]   ;;  %v5808_v10 = vld [vmem:[#allocation6 + $0xc0] ss:$16 sps:$4 sm:$0xff]   ;;  %v5811_v22 = vld [vmem:[#allocation6 + $0xc8] ss:$16 sps:$4 sm:$0xff]  }
 0x438   : > { %v4585_v4 = vpop.eup %4584 }
 0x439   : > { %v4587_v1 = vpop.eup %4586  ;;  %v2514_v2 = vmul.f32 0.5, %v4585_v4  ;;  %v5814_v4 = vld [vmem:[#allocation6 + $0xe4] ss:$16 sps:$4 sm:$0xff]  }
 0x43a   : > { %v2518_v7 = vmul.f32 0.5, %v4587_v1  ;;  %v4589_v26 = vpop.eup %4588  ;;  %v5817_v1 = vld [vmem:[#allocation6 + $0xec] ss:$16 sps:$4 sm:$0xff]  }
 0x43b   : > { %v2515_v0 = vadd.f32 0.5, %v2514_v2  ;;  %v4591_v61 = vpop.eup %4590  ;;  %v5820_v2 = vld [vmem:[#allocation6 + $0xe0] ss:$16 sps:$4 sm:$0xff]  }
 0x43c   : > { %v2519_v15 = vadd.f32 0.5, %v2518_v7  ;;  %v2523_v13 = vmul.f32 0.5, %v4591_v61  ;;  %v5823_v7 = vld [vmem:[#allocation6 + $0xe8] ss:$16 sps:$4 sm:$0xff]   ;;  %v5844_v61 = vld [vmem:[#allocation6 + $0x120] ss:$16 sps:$4 sm:$0xff]  }
 0x43d   : > { %v2529_v16 = vmul.f32 %v4589_v26, %v2515_v0  ;;  %v5826_v0 = vld [vmem:[#allocation6 + $0x104] ss:$16 sps:$4 sm:$0xff]   ;;  %v5829_v26 = vld [vmem:[#allocation6 + $0x10c] ss:$16 sps:$4 sm:$0xff]  }
 0x43e   : > { %v2528_v5 = vmul.f32 %v2526_v14, %v2519_v15  ;;  %v2524_v20 = vadd.f32 0.5, %v2523_v13  ;;  %v5832_v15 = vld [vmem:[#allocation6 + $0x100] ss:$16 sps:$4 sm:$0xff]   ;;  %v5835_v14 = vld [vmem:[#allocation6 + $0x108] ss:$16 sps:$4 sm:$0xff]  }
 0x43f   : > { %v5847_v13 = vld [vmem:[#allocation6 + $0x128] ss:$16 sps:$4 sm:$0xff]  }
 0x440   : > { %v5723_v11 = vadd.f32 %v2529_v16, %v2528_v5  ;;  %v5838_v16 = vld [vmem:[#allocation6 + $0x124] ss:$16 sps:$4 sm:$0xff]   ;;  %v5841_v5 = vld [vmem:[#allocation6 + $0x12c] ss:$16 sps:$4 sm:$0xff]  }
 0x442   : > { %4592 = vtanh.f32 %v5723_v11 }
 0x44c   : > { %v4593_v25 = vpop.eup %4592 }
 0x44d   : > { %v5730_v28 = vmul.f32 %v4593_v25, %v2524_v20  ;;  %v5850_v20 = vld [vmem:[#allocation6 + $0x144] ss:$16 sps:$4 sm:$0xff]   ;;  %v5853_v25 = vld [vmem:[#allocation6 + $0x14c] ss:$16 sps:$4 sm:$0xff]  }
 0x44e   : > { %6823 = vst [vmem:[#allocation39_spill] sm:$0xff] %v5850_v20  ;;  %6824 = vst [vmem:[#allocation33_spill] sm:$0xff] %v5853_v25 }
 0x44f   : > { %6822 = vst [vmem:[#allocation32_spill] sm:$0xff] %v5730_v28  ;;  %v2536_v30 = vmul.f32 %v5730_v28, %v6820_v21  ;;  %v2535_v27 = vmul.f32 %v5728_v24, %v5730_v28  ;;  %v5876_v24 = vld [vmem:[#allocation6 + $0x180] ss:$16 sps:$4 sm:$0xff]  }
 0x450   : > { %6831 = vst [vmem:[#allocation47_spill] sm:$0xff] %v5876_v24  ;;  %v5884_v21 = vld [vmem:[#allocation6 + $0x1a0] ss:$16 sps:$4 sm:$0xff]  }
 0x451   : > { %v2538_v32 = vpack.c.bf16 %v2536_v30, %v2536_v30  ;;  %v2537_v34 = vpack.c.bf16 %v2535_v27, %v2535_v27  ;;  %v5856_v30 = vld [vmem:[#allocation6 + $0x140] ss:$16 sps:$4 sm:$0xff]   ;;  %v5859_v27 = vld [vmem:[#allocation6 + $0x148] ss:$16 sps:$4 sm:$0xff]   ;;  %6833 = vst [vmem:[#allocation49_spill] sm:$0xff] %v5884_v21 }
 0x452   : > { %6825 = vst [vmem:[#allocation42_spill] sm:$0xff] %v5856_v30  ;;  %6826 = vst [vmem:[#allocation34_spill] sm:$0xff] %v5859_v27 }
 0x453   : > { %v2542_v36 = vrot.slane %v2538_v32, 2  ;;  %v2541_v38 = vrot.slane %v2537_v34, 2  ;;  %v5862_v32 = vld [vmem:[#allocation6 + $0x164] ss:$16 sps:$4 sm:$0xff]   ;;  %v5865_v34 = vld [vmem:[#allocation6 + $0x16c] ss:$16 sps:$4 sm:$0xff]  }
 0x454   : > { %6827 = vst [vmem:[#allocation43_spill] sm:$0xff] %v5862_v32  ;;  %6828 = vst [vmem:[#allocation36_spill] sm:$0xff] %v5865_v34 }
 0x455   : > { %2577 = vmatprep.mubr.bf16.mxu1 %v2542_v36  ;;  %2618 = vmatprep.mubr.bf16.mxu0 %v2542_v36  ;;  %v5868_v36 = vld [vmem:[#allocation6 + $0x160] ss:$16 sps:$4 sm:$0xff]  }
 0x456   : > { %2578 = vmatmul.mubr.bf16.vlgmr.msra.gmra.mrb[16].mxu1 %v2541_v38  ;;  %2619 = vmatmul.mubr.bf16.vlgmr.msra.gmra.mrb[20].mxu0 %v2541_v38  ;;  %6829 = vst [vmem:[#allocation46_spill] sm:$0xff] %v5868_v36  ;;  %v5872_v38 = vld [vmem:[#allocation6 + $0x184] ss:$16 sps:$4 sm:$0xff]  }
 0x457   : > { %2681 = vmatpush1.bf16.msra.mxu1 %v5736_v40  ;;  %2722 = vmatpush1.bf16.msra.mxu0 %v5739_v42  ;;  %6830 = vst [vmem:[#allocation37_spill] sm:$0xff] %v5872_v38 }
 0x458   : > { %2682 = vmatprep.subr.bf16.mxu1 %v5742_v47  ;;  %2723 = vmatprep.subr.bf16.mxu0 %v5745_v48 }
 0x45b   : > { %2683 = vmatpush1.bf16.msra.mxu1 %v5748_v49  ;;  %2724 = vmatpush1.bf16.msra.mxu0 %v5751_v50 }
 0x45c   : > { %2684 = vmatprep.subr.bf16.mxu1 %v5754_v51  ;;  %2725 = vmatprep.subr.bf16.mxu0 %v5757_v52 }
 0x45f   : > { %2685 = vmatpush1.bf16.msra.mxu1 %v5760_v53  ;;  %2726 = vmatpush1.bf16.msra.mxu0 %v5763_v54 }
 0x460   : > { %2686 = vmatprep.subr.bf16.mxu1 %v5766_v55  ;;  %2727 = vmatprep.subr.bf16.mxu0 %v5769_v56 }
 0x463   : > { %2687 = vmatpush1.bf16.msra.mxu1 %v5772_v57  ;;  %2728 = vmatpush1.bf16.msra.mxu0 %v5775_v58 }
 0x464   : > { %2688 = vmatprep.subr.bf16.mxu1 %v5778_v59  ;;  %2729 = vmatprep.subr.bf16.mxu0 %v5781_v62 }
 0x467   : > { %2689 = vmatpush1.bf16.msra.mxu1 %v5784_v63  ;;  %2730 = vmatpush1.bf16.msra.mxu0 %v5787_v3 }
 0x468   : > { %2690 = vmatprep.subr.bf16.mxu1 %v5790_v9  ;;  %2731 = vmatprep.subr.bf16.mxu0 %v5793_v23 }
 0x46b   : > { %2691 = vmatpush1.bf16.msra.mxu1 %v5796_v19  ;;  %2732 = vmatpush1.bf16.msra.mxu0 %v5799_v6 }
 0x46c   : > { %2692 = vmatprep.subr.bf16.mxu1 %v5802_v60  ;;  %2733 = vmatprep.subr.bf16.mxu0 %v5805_v17 }
 0x46f   : > { %2693 = vmatpush1.bf16.msra.mxu1 %v5808_v10  ;;  %2734 = vmatpush1.bf16.msra.mxu0 %v5811_v22 }
 0x470   : > { %2694 = vmatprep.subr.bf16.mxu1 %v5814_v4  ;;  %2735 = vmatprep.subr.bf16.mxu0 %v5817_v1 }
 0x473   : > { %2695 = vmatpush1.bf16.msra.mxu1 %v5820_v2  ;;  %2736 = vmatpush1.bf16.msra.mxu0 %v5823_v7 }
 0x474   : > { %2696 = vmatprep.subr.bf16.mxu1 %v5826_v0  ;;  %2737 = vmatprep.subr.bf16.mxu0 %v5829_v26 }
 0x477   : > { %2697 = vmatpush1.bf16.msra.mxu1 %v5832_v15  ;;  %2738 = vmatpush1.bf16.msra.mxu0 %v5835_v14 }
 0x478   : > { %2698 = vmatprep.subr.bf16.mxu1 %v5838_v16  ;;  %2739 = vmatprep.subr.bf16.mxu0 %v5841_v5 }
 0x47b   : > { %2699 = vmatpush1.bf16.msra.mxu1 %v5844_v61  ;;  %2740 = vmatpush1.bf16.msra.mxu0 %v5847_v13 }
 0x47c   : > { %2700 = vmatprep.subr.bf16.mxu1 %v5850_v20  ;;  %2741 = vmatprep.subr.bf16.mxu0 %v5853_v25 }
 0x47f   : > { %2701 = vmatpush1.bf16.msra.mxu1 %v5856_v30  ;;  %2742 = vmatpush1.bf16.msra.mxu0 %v5859_v27 }
 0x480   : > { %2702 = vmatprep.subr.bf16.mxu1 %v5862_v32  ;;  %2743 = vmatprep.subr.bf16.mxu0 %v5865_v34  ;;  %v2629_v32 = vld [vmem:[#allocation2 + $0x10] sm:$0xc0] }
 0x483   : > { %2703 = vmatpush1.bf16.msra.mxu1 %v5868_v36  ;;  %2744 = vmatpush1.bf16.msra.mxu0 %v6801_v29  ;;  %v5888_v29 = vld [vmem:[#allocation6 + $0x1c4] ss:$16 sps:$4 sm:$0xff]  }
 0x484   : > { %2704 = vmatprep.subr.bf16.mxu1 %v5872_v38  ;;  %2745 = vmatprep.subr.bf16.mxu0 %v6803_v31  ;;  %6834 = vst [vmem:[#allocation41_spill] sm:$0xff] %v5888_v29  ;;  %v5892_v31 = vld [vmem:[#allocation6 + $0x1c0] ss:$16 sps:$4 sm:$0xff]  }
 0x485   : > { %6835 = vst [vmem:[#allocation50_spill] sm:$0xff] %v5892_v31 }
 0x487   : > { %2705 = vmatpush1.bf16.msra.mxu1 %v5876_v24  ;;  %2746 = vmatpush1.bf16.msra.mxu0 %v6805_v33  ;;  %v5896_v33 = vld [vmem:[#allocation6 + $0x1e4] ss:$16 sps:$4 sm:$0xff]  }
 0x488   : > { %2706 = vmatprep.subr.bf16.mxu1 %v5880_v12  ;;  %2747 = vmatprep.subr.bf16.mxu0 %v6807_v35  ;;  %6836 = vst [vmem:[#allocation44_spill] sm:$0xff] %v5896_v33  ;;  %v5903_v35 = vld [vmem:[#allocation6 + $0xc] ss:$16 sps:$4 sm:$0xff]  }
 0x489   : > { %6837 = vst [vmem:[#allocation51_spill] sm:$0xff] %v5903_v35 }
 0x48b   : > { %2707 = vmatpush1.bf16.msra.mxu1 %v5884_v21  ;;  %2748 = vmatpush1.bf16.msra.mxu0 %v6809_v37  ;;  %v2627_v21 = vld [vmem:[#allocation2] sm:$0xc0] }
 0x48c   : > { %2708 = vmatprep.subr.bf16.mxu1 %v5888_v29  ;;  %2749 = vmatprep.subr.bf16.mxu0 %v6811_v39 }
 0x48f   : > { %2709 = vmatpush1.bf16.msra.mxu1 %v5892_v31  ;;  %2750 = vmatpush1.bf16.msra.mxu0 %v6813_v41 }
 0x490   : > { %2710 = vmatprep.subr.bf16.mxu1 %v5896_v33  ;;  %2751 = vmatprep.subr.bf16.mxu0 %v6815_v43 }
 0x493   : > { %2711 = vmatpush1.bf16.msra.mxu1 %v6816_v44  ;;  %2752 = vmatpush1.bf16.msra.mxu0 %v6817_v45  ;;  %v2628_v44 = vld [vmem:[#allocation2 + $0x8] sm:$0xc0] }
 0x494   : > { %2795 = vmatprep.subr.bf16.mxu1 %v5718_v46  ;;  %2836 = vmatprep.subr.bf16.mxu0 %v5903_v35 }
 0x529   : > { %v2579_v37 = vpop.f32.mrb[16].mxu1  ;;  %v2620_v39 = vpop.f32.mrb[20].mxu0 }
 0x52a   : > { %v2635_v31 = vrot.slane %v2579_v37, 2  ;;  %v2581_v41 = vpop.f32.mrb[17].mxu1  ;;  %v2622_v29 = vpop.f32.mrb[21].mxu0  ;;  %v2637_v38 = vrot.slane %v2620_v39, 2  ;;  %v2630_v37 = vld [vmem:[#allocation2 + $0x18] sm:$0xc0] }
 0x52b   : > { %v2636_v12 = vrot.slane %v2581_v41, 2  ;;  %v2583_v33 = vpop.f32.mrb[18].mxu1  ;;  %v2624_v24 = vpop.f32.mrb[22].mxu0  ;;  %v2638_v30 = vrot.slane %v2622_v29, 2  ;;  %v3188_v29 = vrot.slane %v5730_v28, 2 }
 0x52c   : > { %v2643_v43 = vadd.f32 %v2635_v31, %v2627_v21  ;;  %v2584_v36 = vpop.f32.mrb[19].mxu1  ;;  %v2625_v45 = vpop.f32.mrb[23].mxu0  ;;  %v2645_v35 = vadd.f32 %v2637_v38, %v2629_v32  ;;  %v2668_v38 = vcombine.low %v5644_v18, %v5644_v18  ;;  %v5997_v28 = vld [vmem:[#allocation6 + $0x1c8] ss:$16 sps:$4 sm:$0xff]  }
 0x52d   : > { %v2644_v34 = vadd.f32 %v2636_v12, %v2628_v44  ;;  %v2646_v25 = vadd.f32 %v2638_v30, %v2630_v37  ;;  %v2661_v12 = vrot.slane %v5723_v11, 6  ;;  %v6839_v11 = vld [vmem:[#allocation57_spill] sm:$0xff]  ;;  %6859 = vst [vmem:[#allocation58_spill] sm:$0xff] %v5997_v28 }
 0x52e   : > { %v2647_v46 = vmul.f32 0.5, %v2643_v43 }
 0x52f   : > { %v2651_v27 = vmul.f32 0.5, %v2644_v34  ;;  %v2656_v20 = vmul.f32 0.5, %v2646_v25  ;;  %v3185_v25 = vrot.slane %v5650_v8, 1  ;;  %v6004_v8 = vld [vmem:[#allocation6 + $0x1e0] ss:$16 sps:$4 sm:$0xff]  }
 0x530   : > { %4594 = vtanh.f32 %v2647_v46  ;;  %6862 = vst [vmem:[#allocation60_spill] sm:$0xff] %v6004_v8 }
 0x531   : > { %4596 = vtanh.f32 %v2651_v27  ;;  %v3205_v44 = vsel %vm724_vm1, %v6839_v11, %v3185_v25  ;;  %v6845_v25 = vld [vmem:[#allocation36_spill] sm:$0xff] }
 0x532   : > { %4598 = vtanh.f32 %v2645_v35  ;;  %v6860_v11 = vld [vmem:[#allocation44_spill] sm:$0xff] }
 0x533   : > { %4600 = vtanh.f32 %v2656_v20 }
 0x53a   : > { %v4595_v41 = vpop.eup %4594 }
 0x53b   : > { %v4597_v33 = vpop.eup %4596  ;;  %v2649_v24 = vmul.f32 0.5, %v4595_v41 }
 0x53c   : > { %v2653_v21 = vmul.f32 0.5, %v4597_v33  ;;  %v4599_v36 = vpop.eup %4598  ;;  %v3206_v33 = vsel %vm899_vm2, %v3205_v44, %v3188_v29  ;;  %v5977_v29 = vld [vmem:[#allocation6 + $0x18c] ss:$16 sps:$4 sm:$0xff]  }
 0x53d   : > { %v2650_v31 = vadd.f32 0.5, %v2649_v24  ;;  %v4601_v27 = vpop.eup %4600  ;;  %6849 = vst [vmem:[#allocation48_spill] sm:$0xff] %v5977_v29  ;;  %v6850_v44 = vld [vmem:[#allocation47_spill] sm:$0xff] }
 0x53e   : > { %v2654_v39 = vadd.f32 0.5, %v2653_v21  ;;  %v2658_v32 = vmul.f32 0.5, %v4601_v27  ;;  %v6843_v27 = vld [vmem:[#allocation34_spill] sm:$0xff] }
 0x53f   : > { %v2664_v43 = vmul.f32 %v4599_v36, %v2650_v31 }
 0x540   : > { %v2663_v34 = vmul.f32 %v2661_v12, %v2654_v39  ;;  %v2659_v30 = vadd.f32 0.5, %v2658_v32  ;;  %v6840_v12 = vld [vmem:[#allocation39_spill] sm:$0xff] }
 0x541   : > { %v6844_v32 = vld [vmem:[#allocation43_spill] sm:$0xff] }
 0x542   : > { %v5907_v46 = vadd.f32 %v2664_v43, %v2663_v34  ;;  %v6841_v43 = vld [vmem:[#allocation33_spill] sm:$0xff]  ;;  %v6842_v34 = vld [vmem:[#allocation42_spill] sm:$0xff] }
 0x544   : > { %4602 = vtanh.f32 %v5907_v46 }
 0x54e   : > { %v4603_v20 = vpop.eup %4602 }
 0x54f   : > { %v5914_v35 = vmul.f32 %v4603_v20, %v2659_v30  ;;  %v6846_v30 = vld [vmem:[#allocation46_spill] sm:$0xff]  ;;  %v6848_v20 = vld [vmem:[#allocation37_spill] sm:$0xff] }
 0x551   : > { %6838 = vst [vmem:[#allocation45_spill] sm:$0xff] %v5914_v35  ;;  %v6666_v45 = vrot.slane %v5914_v35, 3  ;;  %v2671_v37 = vmul.f32 %v5914_v35, %v5644_v18  ;;  %v2670_v41 = vmul.f32 %v2668_v38, %v5914_v35  ;;  %v5973_v38 = vld [vmem:[#allocation6 + $0x168] ss:$16 sps:$4 sm:$0xff]   ;;  %v6001_v35 = vld [vmem:[#allocation6 + $0x1ec] ss:$16 sps:$4 sm:$0xff]  }
 0x552   : > { %6847 = vst [vmem:[#allocation52_spill] sm:$0xff] %v5973_v38  ;;  %6861 = vst [vmem:[#allocation59_spill] sm:$0xff] %v6001_v35  ;;  %v6007_v18 = vld [vmem:[#allocation6 + $0x1e8] ss:$16 sps:$4 sm:$0xff]  }
 0x553   : > { %v5926_v24 = vsel %vm3207_vm5, %v3206_v33, %v6666_v45  ;;  %v2673_v21 = vpack.c.bf16 %v2671_v37, %v2671_v37  ;;  %v2672_v31 = vpack.c.bf16 %v2670_v41, %v2670_v41  ;;  %v5981_v37 = vld [vmem:[#allocation6 + $0x188] ss:$16 sps:$4 sm:$0xff]   ;;  %v5985_v33 = vld [vmem:[#allocation6 + $0x1ac] ss:$16 sps:$4 sm:$0xff]   ;;  %6863 = vst [vmem:[#allocation61_spill] sm:$0xff] %v6007_v18 }
 0x554   : > { %6851 = vst [vmem:[#allocation53_spill] sm:$0xff] %v5981_v37  ;;  %v6852_v41 = vld [vmem:[#allocation40_spill] sm:$0xff]  ;;  %6853 = vst [vmem:[#allocation30_spill] sm:$0xff] %v5985_v33  ;;  %v6858_v45 = vld [vmem:[#allocation50_spill] sm:$0xff] }
 0x555   : > { %v2677_v36 = vrot.slane %v2673_v21, 3  ;;  %v2676_v39 = vrot.slane %v2672_v31, 3  ;;  %v6854_v21 = vld [vmem:[#allocation49_spill] sm:$0xff]  ;;  %v5989_v31 = vld [vmem:[#allocation6 + $0x1a8] ss:$16 sps:$4 sm:$0xff]  }
 0x556   : > { %6855 = vst [vmem:[#allocation39_spill] sm:$0xff] %v5989_v31 }
 0x557   : > { %2712 = vmatprep.mubr.bf16.mxu1 %v2677_v36  ;;  %2753 = vmatprep.mubr.bf16.mxu0 %v2677_v36  ;;  %v6856_v36 = vld [vmem:[#allocation41_spill] sm:$0xff] }
 0x558   : > { %2713 = vmatmul.mubr.bf16.vlgmr.msra.gmra.mrb[20].mxu1 %v2676_v39  ;;  %2754 = vmatmul.mubr.bf16.vlgmr.msra.gmra.mrb[24].mxu0 %v2676_v39  ;;  %v5993_v39 = vld [vmem:[#allocation6 + $0x1cc] ss:$16 sps:$4 sm:$0xff]  }
 0x559   : > { %2796 = vmatpush1.bf16.msra.mxu1 %v5736_v40  ;;  %2837 = vmatpush1.bf16.msra.mxu0 %v5739_v42  ;;  %6857 = vst [vmem:[#allocation33_spill] sm:$0xff] %v5993_v39 }
 0x55a   : > { %2797 = vmatprep.subr.bf16.mxu1 %v5742_v47  ;;  %2838 = vmatprep.subr.bf16.mxu0 %v5745_v48 }
 0x55d   : > { %2798 = vmatpush1.bf16.msra.mxu1 %v5748_v49  ;;  %2839 = vmatpush1.bf16.msra.mxu0 %v5751_v50 }
 0x55e   : > { %2799 = vmatprep.subr.bf16.mxu1 %v5754_v51  ;;  %2840 = vmatprep.subr.bf16.mxu0 %v5757_v52 }
 0x561   : > { %2800 = vmatpush1.bf16.msra.mxu1 %v5760_v53  ;;  %2841 = vmatpush1.bf16.msra.mxu0 %v5763_v54 }
 0x562   : > { %2801 = vmatprep.subr.bf16.mxu1 %v5766_v55  ;;  %2842 = vmatprep.subr.bf16.mxu0 %v5769_v56 }
 0x565   : > { %2802 = vmatpush1.bf16.msra.mxu1 %v5772_v57  ;;  %2843 = vmatpush1.bf16.msra.mxu0 %v5775_v58 }
 0x566   : > { %2803 = vmatprep.subr.bf16.mxu1 %v5778_v59  ;;  %2844 = vmatprep.subr.bf16.mxu0 %v5781_v62 }
 0x569   : > { %2804 = vmatpush1.bf16.msra.mxu1 %v5784_v63  ;;  %2845 = vmatpush1.bf16.msra.mxu0 %v5787_v3 }
 0x56a   : > { %2805 = vmatprep.subr.bf16.mxu1 %v5790_v9  ;;  %2846 = vmatprep.subr.bf16.mxu0 %v5793_v23 }
 0x56d   : > { %2806 = vmatpush1.bf16.msra.mxu1 %v5796_v19  ;;  %2847 = vmatpush1.bf16.msra.mxu0 %v5799_v6 }
 0x56e   : > { %2807 = vmatprep.subr.bf16.mxu1 %v5802_v60  ;;  %2848 = vmatprep.subr.bf16.mxu0 %v5805_v17 }
 0x571   : > { %2808 = vmatpush1.bf16.msra.mxu1 %v5808_v10  ;;  %2849 = vmatpush1.bf16.msra.mxu0 %v5811_v22 }
 0x572   : > { %2809 = vmatprep.subr.bf16.mxu1 %v5814_v4  ;;  %2850 = vmatprep.subr.bf16.mxu0 %v5817_v1 }
 0x575   : > { %2810 = vmatpush1.bf16.msra.mxu1 %v5820_v2  ;;  %2851 = vmatpush1.bf16.msra.mxu0 %v5823_v7 }
 0x576   : > { %2811 = vmatprep.subr.bf16.mxu1 %v5826_v0  ;;  %2852 = vmatprep.subr.bf16.mxu0 %v5829_v26 }
 0x579   : > { %2812 = vmatpush1.bf16.msra.mxu1 %v5832_v15  ;;  %2853 = vmatpush1.bf16.msra.mxu0 %v5835_v14 }
 0x57a   : > { %2813 = vmatprep.subr.bf16.mxu1 %v5838_v16  ;;  %2854 = vmatprep.subr.bf16.mxu0 %v5841_v5 }
 0x57d   : > { %2814 = vmatpush1.bf16.msra.mxu1 %v5844_v61  ;;  %2855 = vmatpush1.bf16.msra.mxu0 %v5847_v13 }
 0x57e   : > { %2815 = vmatprep.subr.bf16.mxu1 %v6840_v12  ;;  %2856 = vmatprep.subr.bf16.mxu0 %v6841_v43 }
 0x581   : > { %2816 = vmatpush1.bf16.msra.mxu1 %v6842_v34  ;;  %2857 = vmatpush1.bf16.msra.mxu0 %v6843_v27 }
 0x582   : > { %2817 = vmatprep.subr.bf16.mxu1 %v6844_v32  ;;  %2858 = vmatprep.subr.bf16.mxu0 %v6845_v25 }
 0x585   : > { %2818 = vmatpush1.bf16.msra.mxu1 %v6846_v30  ;;  %2859 = vmatpush1.bf16.msra.mxu0 %v5973_v38  ;;  %v2764_v38 = vld [vmem:[#allocation2 + $0x30] sm:$0x3] }
 0x586   : > { %2819 = vmatprep.subr.bf16.mxu1 %v6848_v20  ;;  %2860 = vmatprep.subr.bf16.mxu0 %v5977_v29 }
 0x589   : > { %2820 = vmatpush1.bf16.msra.mxu1 %v6850_v44  ;;  %2861 = vmatpush1.bf16.msra.mxu0 %v5981_v37 }
 0x58a   : > { %2821 = vmatprep.subr.bf16.mxu1 %v6852_v41  ;;  %2862 = vmatprep.subr.bf16.mxu0 %v5985_v33  ;;  %v2763_v33 = vld [vmem:[#allocation2 + $0x28] sm:$0x3] }
 0x58d   : > { %2822 = vmatpush1.bf16.msra.mxu1 %v6854_v21  ;;  %2863 = vmatpush1.bf16.msra.mxu0 %v5989_v31 }
 0x58e   : > { %2823 = vmatprep.subr.bf16.mxu1 %v6856_v36  ;;  %2864 = vmatprep.subr.bf16.mxu0 %v5993_v39  ;;  %v6864_v39 = vld [vmem:[#allocation31_spill] sm:$0xff] }
 0x591   : > { %2824 = vmatpush1.bf16.msra.mxu1 %v6858_v45  ;;  %2865 = vmatpush1.bf16.msra.mxu0 %v5997_v28  ;;  %v6865_v45 = vld [vmem:[#allocation51_spill] sm:$0xff] }
 0x592   : > { %2825 = vmatprep.subr.bf16.mxu1 %v6860_v11  ;;  %2866 = vmatprep.subr.bf16.mxu0 %v6001_v35  ;;  %v2762_v28 = vld [vmem:[#allocation2 + $0x20] sm:$0x3] }
 0x595   : > { %2826 = vmatpush1.bf16.msra.mxu1 %v6004_v8  ;;  %2867 = vmatpush1.bf16.msra.mxu0 %v6007_v18 }
 0x596   : > { %2928 = vmatprep.subr.bf16.mxu1 %v6864_v39  ;;  %2969 = vmatprep.subr.bf16.mxu0 %v6865_v45  ;;  %v2765_v39 = vld [vmem:[#allocation2 + $0x38] sm:$0x3] }
 0x62b   : > { %v2714_v36 = vpop.f32.mrb[20].mxu1  ;;  %v2755_v31 = vpop.f32.mrb[24].mxu0 }
 0x62c   : > { %v2766_v11 = vadd.f32 %v2762_v28, %v2714_v36  ;;  %v2716_v21 = vpop.f32.mrb[21].mxu1  ;;  %v2757_v41 = vpop.f32.mrb[25].mxu0  ;;  %v2768_v18 = vadd.f32 %v2764_v38, %v2755_v31 }
 0x62d   : > { %v2767_v35 = vadd.f32 %v2763_v33, %v2716_v21  ;;  %v2718_v37 = vpop.f32.mrb[22].mxu1  ;;  %v2759_v44 = vpop.f32.mrb[26].mxu0  ;;  %v2769_v45 = vadd.f32 %v2765_v39, %v2757_v41 }
 0x62e   : > { %v2770_v29 = vmul.f32 0.5, %v2766_v11  ;;  %v2719_v8 = vpop.f32.mrb[23].mxu1  ;;  %v2760_v20 = vpop.f32.mrb[27].mxu0 }
 0x62f   : > { %v2774_v30 = vmul.f32 0.5, %v2767_v35  ;;  %v2779_v25 = vmul.f32 0.5, %v2769_v45  ;;  %v2784_v8 = vrot.slane %v5907_v46, 6 }
 0x630   : > { %4604 = vtanh.f32 %v2770_v29 }
 0x631   : > { %4606 = vtanh.f32 %v2774_v30 }
 0x632   : > { %4608 = vtanh.f32 %v2768_v18 }
 0x633   : > { %4610 = vtanh.f32 %v2779_v25  ;;  %v6867_v25 = vld [vmem:[#allocation56_spill] sm:$0xff] }
 0x63a   : > { %v4605_v32 = vpop.eup %4604 }
 0x63b   : > { %v4607_v28 = vpop.eup %4606  ;;  %v2772_v36 = vmul.f32 0.5, %v4605_v32 }
 0x63c   : > { %v2776_v27 = vmul.f32 0.5, %v4607_v28  ;;  %v4609_v37 = vpop.eup %4608  ;;  %v6870_v28 = vld [vmem:[#allocation43_spill] sm:$0xff] }
 0x63d   : > { %v2773_v33 = vadd.f32 0.5, %v2772_v36  ;;  %v4611_v30 = vpop.eup %4610  ;;  %v6871_v36 = vld [vmem:[#allocation36_spill] sm:$0xff] }
 0x63e   : > { %v2777_v44 = vadd.f32 0.5, %v2776_v27  ;;  %v2781_v18 = vmul.f32 0.5, %v4611_v30  ;;  %v6868_v27 = vld [vmem:[#allocation55_spill] sm:$0xff]  ;;  %v6878_v30 = vld [vmem:[#allocation40_spill] sm:$0xff] }
 0x63f   : > { %v2787_v11 = vmul.f32 %v4609_v37, %v2773_v33  ;;  %v6872_v33 = vld [vmem:[#allocation46_spill] sm:$0xff]  ;;  %v6873_v37 = vld [vmem:[#allocation52_spill] sm:$0xff] }
 0x640   : > { %v2786_v20 = vmul.f32 %v2784_v8, %v2777_v44  ;;  %v2782_v38 = vadd.f32 0.5, %v2781_v18  ;;  %v6874_v44 = vld [vmem:[#allocation37_spill] sm:$0xff]  ;;  %v6875_v8 = vld [vmem:[#allocation48_spill] sm:$0xff]  ;;  %v6879_v18 = vld [vmem:[#allocation30_spill] sm:$0xff] }
 0x642   : > { %v6013_v35 = vadd.f32 %v2787_v11, %v2786_v20  ;;  %v6876_v11 = vld [vmem:[#allocation47_spill] sm:$0xff]  ;;  %v6877_v20 = vld [vmem:[#allocation53_spill] sm:$0xff] }
 0x644   : > { %4612 = vtanh.f32 %v6013_v35 }
 0x64e   : > { %v4613_v45 = vpop.eup %4612 }
 0x64f   : > { %v6016_v29 = vmul.f32 %v4613_v45, %v2782_v38  ;;  %v6880_v38 = vld [vmem:[#allocation49_spill] sm:$0xff]  ;;  %v6881_v45 = vld [vmem:[#allocation39_spill] sm:$0xff] }
 0x651   : > { %6866 = vst [vmem:[#allocation62_spill] sm:$0xff] %v6016_v29  ;;  %v3194_v32 = vrot.slane %v6016_v29, 4  ;;  %v2792_v41 = vmul.f32 %v6016_v29, %v6867_v25  ;;  %v2791_v46 = vmul.f32 %v6016_v29, %v6868_v27  ;;  %v6883_v25 = vld [vmem:[#allocation33_spill] sm:$0xff]  ;;  %v6888_v29 = vld [vmem:[#allocation60_spill] sm:$0xff] }
 0x652   : > { %v6889_v27 = vld [vmem:[#allocation61_spill] sm:$0xff] }
 0x653   : > { %v2794_v21 = vpack.c.bf16 %v2792_v41, %v2792_v41  ;;  %v2793_v31 = vpack.c.bf16 %v2791_v46, %v2791_v46  ;;  %v6025_v39 = vsel %vm904_vm3, %v5926_v24, %v3194_v32  ;;  %v6869_v24 = vld [vmem:[#allocation34_spill] sm:$0xff]  ;;  %v6882_v32 = vld [vmem:[#allocation41_spill] sm:$0xff] }
 0x654   : > { %v6884_v41 = vld [vmem:[#allocation50_spill] sm:$0xff] }
 0x655   : > { %2827 = vmatprep.mubr.bf16.mxu1 %v2794_v21  ;;  %2868 = vmatprep.mubr.bf16.mxu0 %v2794_v21  ;;  %v6885_v46 = vld [vmem:[#allocation58_spill] sm:$0xff]  ;;  %v6886_v21 = vld [vmem:[#allocation44_spill] sm:$0xff] }
 0x656   : > { %2828 = vmatmul.mubr.bf16.vlgmr.msra.gmra.mrb[24].mxu1 %v2793_v31  ;;  %2869 = vmatmul.mubr.bf16.vlgmr.msra.gmra.mrb[28].mxu0 %v2793_v31  ;;  %v6887_v31 = vld [vmem:[#allocation59_spill] sm:$0xff] }
 0x657   : > { %2929 = vmatpush1.bf16.msra.mxu1 %v5736_v40  ;;  %2970 = vmatpush1.bf16.msra.mxu0 %v5739_v42 }
 0x658   : > { %2930 = vmatprep.subr.bf16.mxu1 %v5742_v47  ;;  %2971 = vmatprep.subr.bf16.mxu0 %v5745_v48 }
 0x65b   : > { %2931 = vmatpush1.bf16.msra.mxu1 %v5748_v49  ;;  %2972 = vmatpush1.bf16.msra.mxu0 %v5751_v50 }
 0x65c   : > { %2932 = vmatprep.subr.bf16.mxu1 %v5754_v51  ;;  %2973 = vmatprep.subr.bf16.mxu0 %v5757_v52 }
 0x65f   : > { %2933 = vmatpush1.bf16.msra.mxu1 %v5760_v53  ;;  %2974 = vmatpush1.bf16.msra.mxu0 %v5763_v54 }
 0x660   : > { %2934 = vmatprep.subr.bf16.mxu1 %v5766_v55  ;;  %2975 = vmatprep.subr.bf16.mxu0 %v5769_v56 }
 0x663   : > { %2935 = vmatpush1.bf16.msra.mxu1 %v5772_v57  ;;  %2976 = vmatpush1.bf16.msra.mxu0 %v5775_v58 }
 0x664   : > { %2936 = vmatprep.subr.bf16.mxu1 %v5778_v59  ;;  %2977 = vmatprep.subr.bf16.mxu0 %v5781_v62 }
 0x667   : > { %2937 = vmatpush1.bf16.msra.mxu1 %v5784_v63  ;;  %2978 = vmatpush1.bf16.msra.mxu0 %v5787_v3 }
 0x668   : > { %2938 = vmatprep.subr.bf16.mxu1 %v5790_v9  ;;  %2979 = vmatprep.subr.bf16.mxu0 %v5793_v23 }
 0x66b   : > { %2939 = vmatpush1.bf16.msra.mxu1 %v5796_v19  ;;  %2980 = vmatpush1.bf16.msra.mxu0 %v5799_v6 }
 0x66c   : > { %2940 = vmatprep.subr.bf16.mxu1 %v5802_v60  ;;  %2981 = vmatprep.subr.bf16.mxu0 %v5805_v17 }
 0x66f   : > { %2941 = vmatpush1.bf16.msra.mxu1 %v5808_v10  ;;  %2982 = vmatpush1.bf16.msra.mxu0 %v5811_v22 }
 0x670   : > { %2942 = vmatprep.subr.bf16.mxu1 %v5814_v4  ;;  %2983 = vmatprep.subr.bf16.mxu0 %v5817_v1 }
 0x673   : > { %2943 = vmatpush1.bf16.msra.mxu1 %v5820_v2  ;;  %2984 = vmatpush1.bf16.msra.mxu0 %v5823_v7 }
 0x674   : > { %2944 = vmatprep.subr.bf16.mxu1 %v5826_v0  ;;  %2985 = vmatprep.subr.bf16.mxu0 %v5829_v26 }
 0x677   : > { %2945 = vmatpush1.bf16.msra.mxu1 %v5832_v15  ;;  %2986 = vmatpush1.bf16.msra.mxu0 %v5835_v14 }
 0x678   : > { %2946 = vmatprep.subr.bf16.mxu1 %v5838_v16  ;;  %2987 = vmatprep.subr.bf16.mxu0 %v5841_v5 }
 0x67b   : > { %2947 = vmatpush1.bf16.msra.mxu1 %v5844_v61  ;;  %2988 = vmatpush1.bf16.msra.mxu0 %v5847_v13 }
 0x67c   : > { %2948 = vmatprep.subr.bf16.mxu1 %v6840_v12  ;;  %2989 = vmatprep.subr.bf16.mxu0 %v6841_v43 }
 0x67f   : > { %2949 = vmatpush1.bf16.msra.mxu1 %v6842_v34  ;;  %2990 = vmatpush1.bf16.msra.mxu0 %v6869_v24 }
 0x680   : > { %2950 = vmatprep.subr.bf16.mxu1 %v6870_v28  ;;  %2991 = vmatprep.subr.bf16.mxu0 %v6871_v36  ;;  %v2879_v36 = vld [vmem:[#allocation2 + $0x30] sm:$0xc] }
 0x683   : > { %2951 = vmatpush1.bf16.msra.mxu1 %v6872_v33  ;;  %2992 = vmatpush1.bf16.msra.mxu0 %v6873_v37 }
 0x684   : > { %2952 = vmatprep.subr.bf16.mxu1 %v6874_v44  ;;  %2993 = vmatprep.subr.bf16.mxu0 %v6875_v8 }
 0x687   : > { %2953 = vmatpush1.bf16.msra.mxu1 %v6876_v11  ;;  %2994 = vmatpush1.bf16.msra.mxu0 %v6877_v20 }
 0x688   : > { %2954 = vmatprep.subr.bf16.mxu1 %v6878_v30  ;;  %2995 = vmatprep.subr.bf16.mxu0 %v6879_v18  ;;  %v6890_v18 = vld [vmem:[#allocation31_spill] sm:$0xff] }
 0x68b   : > { %2955 = vmatpush1.bf16.msra.mxu1 %v6880_v38  ;;  %2996 = vmatpush1.bf16.msra.mxu0 %v6881_v45  ;;  %v6891_v38 = vld [vmem:[#allocation51_spill] sm:$0xff] }
 0x68c   : > { %2956 = vmatprep.subr.bf16.mxu1 %v6882_v32  ;;  %2997 = vmatprep.subr.bf16.mxu0 %v6883_v25 }
 0x68f   : > { %2957 = vmatpush1.bf16.msra.mxu1 %v6884_v41  ;;  %2998 = vmatpush1.bf16.msra.mxu0 %v6885_v46  ;;  %v2877_v41 = vld [vmem:[#allocation2 + $0x20] sm:$0xc] }
 0x690   : > { %2958 = vmatprep.subr.bf16.mxu1 %v6886_v21  ;;  %2999 = vmatprep.subr.bf16.mxu0 %v6887_v31  ;;  %v2878_v31 = vld [vmem:[#allocation2 + $0x28] sm:$0xc] }
 0x693   : > { %2959 = vmatpush1.bf16.msra.mxu1 %v6888_v29  ;;  %3000 = vmatpush1.bf16.msra.mxu0 %v6889_v27 }
 0x694   : > { %3061 = vmatprep.subr.bf16.mxu1 %v6890_v18  ;;  %3102 = vmatprep.subr.bf16.mxu0 %v6891_v38 }
 0x729   : > { %v2829_v45 = vpop.f32.mrb[24].mxu1  ;;  %v2870_v32 = vpop.f32.mrb[28].mxu0 }
 0x72a   : > { %v2885_v30 = vrot.slane %v2829_v45, 6  ;;  %v2831_v25 = vpop.f32.mrb[25].mxu1  ;;  %v2872_v20 = vpop.f32.mrb[29].mxu0  ;;  %v2887_v44 = vrot.slane %v2870_v32, 6  ;;  %v2880_v45 = vld [vmem:[#allocation2 + $0x38] sm:$0xc] }
 0x72b   : > { %v2886_v11 = vrot.slane %v2831_v25, 6  ;;  %v2833_v46 = vpop.f32.mrb[26].mxu1  ;;  %v2874_v8 = vpop.f32.mrb[30].mxu0  ;;  %v2888_v28 = vrot.slane %v2872_v20, 6 }
 0x72c   : > { %v2893_v21 = vadd.f32 %v2885_v30, %v2877_v41  ;;  %v2834_v37 = vpop.f32.mrb[27].mxu1  ;;  %v2875_v29 = vpop.f32.mrb[31].mxu0  ;;  %v2895_v38 = vadd.f32 %v2887_v44, %v2879_v36 }
 0x72d   : > { %v2894_v33 = vadd.f32 %v2886_v11, %v2878_v31  ;;  %v2896_v24 = vadd.f32 %v2888_v28, %v2880_v45  ;;  %v2911_v11 = vrot.slane %v6013_v35, 6 }
 0x72e   : > { %v2897_v27 = vmul.f32 0.5, %v2893_v21  ;;  %v6892_v21 = vld [vmem:[#allocation29_spill] sm:$0xff] }
 0x72f   : > { %v2901_v18 = vmul.f32 0.5, %v2894_v33  ;;  %v2906_v34 = vmul.f32 0.5, %v2896_v24 }
 0x730   : > { %4614 = vtanh.f32 %v2897_v27 }
 0x731   : > { %4616 = vtanh.f32 %v2901_v18  ;;  %v6893_v18 = vld [vmem:[#allocation35_spill] sm:$0xff] }
 0x732   : > { %4618 = vtanh.f32 %v2895_v38 }
 0x733   : > { %4620 = vtanh.f32 %v2906_v34 }
 0x73a   : > { %v4615_v25 = vpop.eup %4614 }
 0x73b   : > { %v4617_v46 = vpop.eup %4616  ;;  %v2899_v8 = vmul.f32 0.5, %v4615_v25 }
 0x73c   : > { %v2903_v30 = vmul.f32 0.5, %v4617_v46  ;;  %v4619_v37 = vpop.eup %4618 }
 0x73d   : > { %v2900_v32 = vadd.f32 0.5, %v2899_v8  ;;  %v4621_v36 = vpop.eup %4620 }
 0x73e   : > { %v2904_v29 = vadd.f32 0.5, %v2903_v30  ;;  %v2908_v44 = vmul.f32 0.5, %v4621_v36 }
 0x73f   : > { %v2914_v41 = vmul.f32 %v4619_v37, %v2900_v32  ;;  %v3013_v32 = vld [vmem:[#allocation2 + $0x38] sm:$0x30] }
 0x740   : > { %v2913_v33 = vmul.f32 %v2911_v11, %v2904_v29  ;;  %v2909_v28 = vadd.f32 0.5, %v2908_v44 }
 0x742   : > { %v6092_v27 = vadd.f32 %v2914_v41, %v2913_v33 }
 0x744   : > { %4622 = vtanh.f32 %v6092_v27 }
 0x74e   : > { %v4623_v24 = vpop.eup %4622 }
 0x74f   : > { %v6095_v20 = vmul.f32 %v4623_v24, %v2909_v28 }
 0x751   : > { %v3197_v34 = vrot.slane %v6095_v20, 5  ;;  %v2919_v31 = vmul.f32 %v6095_v20, %v6892_v21  ;;  %v2918_v35 = vmul.f32 %v6095_v20, %v6893_v18 }
 0x753   : > { %v2921_v38 = vpack.c.bf16 %v2919_v31, %v2919_v31  ;;  %v2920_v45 = vpack.c.bf16 %v2918_v35, %v2918_v35  ;;  %v6104_v25 = vsel %vm3210_vm6, %v6025_v39, %v3197_v34  ;;  %v3044_v34 = vrot.slane %v6092_v27, 6 }
 0x755   : > { %v2925_v46 = vrot.slane %v2921_v38, 1  ;;  %v2924_v8 = vrot.slane %v2920_v45, 1 }
 0x757   : > { %2960 = vmatprep.mubr.bf16.mxu1 %v2925_v46  ;;  %3001 = vmatprep.mubr.bf16.mxu0 %v2925_v46 }
 0x758   : > { %2961 = vmatmul.mubr.bf16.vlgmr.msra.gmra.mrb[28].mxu1 %v2924_v8  ;;  %3002 = vmatmul.mubr.bf16.vlgmr.msra.gmra.mrb[32].mxu0 %v2924_v8 }
 0x759   : > { %3062 = vmatpush1.bf16.msra.mxu1 %v5736_v40  ;;  %3103 = vmatpush1.bf16.msra.mxu0 %v5739_v42  ;;  %v6894_v40 = vld [vmem:[#allocation42_spill] sm:$0xff] }
 0x75a   : > { %3063 = vmatprep.subr.bf16.mxu1 %v5742_v47  ;;  %3104 = vmatprep.subr.bf16.mxu0 %v5745_v48  ;;  %v6895_v42 = vld [vmem:[#allocation34_spill] sm:$0xff]  ;;  %v6896_v47 = vld [vmem:[#allocation43_spill] sm:$0xff]  ;;  %v6897_v48 = vld [vmem:[#allocation36_spill] sm:$0xff] }
 0x75d   : > { %3064 = vmatpush1.bf16.msra.mxu1 %v5748_v49  ;;  %3105 = vmatpush1.bf16.msra.mxu0 %v5751_v50  ;;  %v6898_v49 = vld [vmem:[#allocation46_spill] sm:$0xff]  ;;  %v6899_v50 = vld [vmem:[#allocation52_spill] sm:$0xff] }
 0x75e   : > { %3065 = vmatprep.subr.bf16.mxu1 %v5754_v51  ;;  %3106 = vmatprep.subr.bf16.mxu0 %v5757_v52  ;;  %v6900_v51 = vld [vmem:[#allocation37_spill] sm:$0xff]  ;;  %v6901_v52 = vld [vmem:[#allocation48_spill] sm:$0xff] }
 0x761   : > { %3066 = vmatpush1.bf16.msra.mxu1 %v5760_v53  ;;  %3107 = vmatpush1.bf16.msra.mxu0 %v5763_v54  ;;  %v6902_v53 = vld [vmem:[#allocation47_spill] sm:$0xff]  ;;  %v6903_v54 = vld [vmem:[#allocation53_spill] sm:$0xff] }
 0x762   : > { %3067 = vmatprep.subr.bf16.mxu1 %v5766_v55  ;;  %3108 = vmatprep.subr.bf16.mxu0 %v5769_v56  ;;  %v6904_v55 = vld [vmem:[#allocation40_spill] sm:$0xff]  ;;  %v6905_v56 = vld [vmem:[#allocation30_spill] sm:$0xff] }
 0x765   : > { %3068 = vmatpush1.bf16.msra.mxu1 %v5772_v57  ;;  %3109 = vmatpush1.bf16.msra.mxu0 %v5775_v58  ;;  %v6906_v57 = vld [vmem:[#allocation49_spill] sm:$0xff]  ;;  %v6907_v58 = vld [vmem:[#allocation39_spill] sm:$0xff] }
 0x766   : > { %3069 = vmatprep.subr.bf16.mxu1 %v5778_v59  ;;  %3110 = vmatprep.subr.bf16.mxu0 %v5781_v62  ;;  %v6908_v59 = vld [vmem:[#allocation41_spill] sm:$0xff] }
 0x767   : > { %v6909_v62 = vld [vmem:[#allocation33_spill] sm:$0xff] }
 0x769   : > { %3070 = vmatpush1.bf16.msra.mxu1 %v5784_v63  ;;  %3111 = vmatpush1.bf16.msra.mxu0 %v5787_v3  ;;  %v6910_v63 = vld [vmem:[#allocation50_spill] sm:$0xff] }
 0x76a   : > { %3071 = vmatprep.subr.bf16.mxu1 %v5790_v9  ;;  %3112 = vmatprep.subr.bf16.mxu0 %v5793_v23  ;;  %v6911_v3 = vld [vmem:[#allocation58_spill] sm:$0xff]  ;;  %v6912_v9 = vld [vmem:[#allocation44_spill] sm:$0xff]  ;;  %v6913_v23 = vld [vmem:[#allocation59_spill] sm:$0xff] }
 0x76d   : > { %3072 = vmatpush1.bf16.msra.mxu1 %v5796_v19  ;;  %3113 = vmatpush1.bf16.msra.mxu0 %v5799_v6  ;;  %v6914_v19 = vld [vmem:[#allocation60_spill] sm:$0xff]  ;;  %v6915_v6 = vld [vmem:[#allocation61_spill] sm:$0xff] }
 0x76e   : > { %3073 = vmatprep.subr.bf16.mxu1 %v5802_v60  ;;  %3114 = vmatprep.subr.bf16.mxu0 %v5805_v17 }
 0x771   : > { %3074 = vmatpush1.bf16.msra.mxu1 %v5808_v10  ;;  %3115 = vmatpush1.bf16.msra.mxu0 %v5811_v22 }
 0x772   : > { %3075 = vmatprep.subr.bf16.mxu1 %v5814_v4  ;;  %3116 = vmatprep.subr.bf16.mxu0 %v5817_v1  ;;  %v3010_v1 = vld [vmem:[#allocation2 + $0x20] sm:$0x30] }
 0x775   : > { %3076 = vmatpush1.bf16.msra.mxu1 %v5820_v2  ;;  %3117 = vmatpush1.bf16.msra.mxu0 %v5823_v7 }
 0x776   : > { %3077 = vmatprep.subr.bf16.mxu1 %v5826_v0  ;;  %3118 = vmatprep.subr.bf16.mxu0 %v5829_v26 }
 0x779   : > { %3078 = vmatpush1.bf16.msra.mxu1 %v5832_v15  ;;  %3119 = vmatpush1.bf16.msra.mxu0 %v5835_v14  ;;  %v3011_v14 = vld [vmem:[#allocation2 + $0x28] sm:$0x30] }
 0x77a   : > { %3079 = vmatprep.subr.bf16.mxu1 %v5838_v16  ;;  %3120 = vmatprep.subr.bf16.mxu0 %v5841_v5 }
 0x77d   : > { %3080 = vmatpush1.bf16.msra.mxu1 %v5844_v61  ;;  %3121 = vmatpush1.bf16.msra.mxu0 %v5847_v13 }
 0x77e   : > { %3081 = vmatprep.subr.bf16.mxu1 %v6840_v12  ;;  %3122 = vmatprep.subr.bf16.mxu0 %v6841_v43  ;;  %v3012_v12 = vld [vmem:[#allocation2 + $0x30] sm:$0x30] }
 0x781   : > { %3082 = vmatpush1.bf16.msra.mxu1 %v6894_v40  ;;  %3123 = vmatpush1.bf16.msra.mxu0 %v6895_v42  ;;  %v6916_v42 = vld [vmem:[#allocation55_spill] sm:$0xff] }
 0x782   : > { %3083 = vmatprep.subr.bf16.mxu1 %v6896_v47  ;;  %3124 = vmatprep.subr.bf16.mxu0 %v6897_v48  ;;  %v6917_v48 = vld [vmem:[#allocation38_spill] sm:$0xff] }
 0x785   : > { %3084 = vmatpush1.bf16.msra.mxu1 %v6898_v49  ;;  %3125 = vmatpush1.bf16.msra.mxu0 %v6899_v50 }
 0x786   : > { %3085 = vmatprep.subr.bf16.mxu1 %v6900_v51  ;;  %3126 = vmatprep.subr.bf16.mxu0 %v6901_v52 }
 0x789   : > { %3086 = vmatpush1.bf16.msra.mxu1 %v6902_v53  ;;  %3127 = vmatpush1.bf16.msra.mxu0 %v6903_v54  ;;  %v3253_v54 = vld [vmem:[%s6551_s9 + $0x80] sm:$0xff] }
 0x78a   : > { %3087 = vmatprep.subr.bf16.mxu1 %v6904_v55  ;;  %3128 = vmatprep.subr.bf16.mxu0 %v6905_v56  ;;  %v3254_v55 = vld [vmem:[%s6551_s9 + $0x88] sm:$0xff]  ;;  %v3237_v56 = vld [vmem:[%s6551_s9] sm:$0xff] }
 0x78d   : > { %3088 = vmatpush1.bf16.msra.mxu1 %v6906_v57  ;;  %3129 = vmatpush1.bf16.msra.mxu0 %v6907_v58  ;;  %v3238_v57 = vld [vmem:[%s6551_s9 + $0x8] sm:$0xff]  ;;  %v4996_v58 = vmov 0.0|0.0  }
 0x78e   : > { %3089 = vmatprep.subr.bf16.mxu1 %v6908_v59  ;;  %3130 = vmatprep.subr.bf16.mxu0 %v6909_v62  ;;  %v4136_v59 = vpack.c.bf16 %v3238_v57, %v3237_v56  ;;  %v3255_v62 = vld [vmem:[%s6551_s9 + $0x90] sm:$0xff] }
 0x791   : > { %3090 = vmatpush1.bf16.msra.mxu1 %v6910_v63  ;;  %3131 = vmatpush1.bf16.msra.mxu0 %v6911_v3  ;;  %v3256_v63 = vld [vmem:[%s6551_s9 + $0x98] sm:$0xff]  ;;  %v3239_v3 = vld [vmem:[%s6551_s9 + $0x10] sm:$0xff] }
 0x792   : > { %3091 = vmatprep.subr.bf16.mxu1 %v6912_v9  ;;  %3132 = vmatprep.subr.bf16.mxu0 %v6913_v23  ;;  %v4115_v9 = vpack.c.bf16 %v3256_v63, %v3255_v62  ;;  %v3240_v23 = vld [vmem:[%s6551_s9 + $0x18] sm:$0xff] }
 0x795   : > { %3092 = vmatpush1.bf16.msra.mxu1 %v6914_v19  ;;  %3133 = vmatpush1.bf16.msra.mxu0 %v6915_v6  ;;  %v4139_v19 = vpack.c.bf16 %v3240_v23, %v3239_v3  ;;  %v3257_v6 = vld [vmem:[%s6551_s9 + $0xa0] sm:$0xff] }
 0x796   : > { %4111 = vmatprep.subr.bf16.mxu1 %v4996_v58  ;;  %4135 = vmatprep.subr.bf16.mxu0 %v4996_v58 }
 0x82b   : > { %v2962_v60 = vpop.f32.mrb[28].mxu1  ;;  %v3003_v17 = vpop.f32.mrb[32].mxu0 }
 0x82c   : > { %v3018_v10 = vrot.slane %v2962_v60, 4  ;;  %v2964_v22 = vpop.f32.mrb[29].mxu1  ;;  %v3005_v4 = vpop.f32.mrb[33].mxu0  ;;  %v3020_v15 = vrot.slane %v3003_v17, 4  ;;  %v3258_v60 = vld [vmem:[%s6551_s9 + $0xa8] sm:$0xff]  ;;  %v3241_v17 = vld [vmem:[%s6551_s9 + $0x20] sm:$0xff] }
 0x82d   : > { %v3019_v2 = vrot.slane %v2964_v22, 4  ;;  %v2966_v7 = vpop.f32.mrb[30].mxu1  ;;  %v3007_v0 = vpop.f32.mrb[34].mxu0  ;;  %v3021_v30 = vrot.slane %v3005_v4, 4  ;;  %v3242_v22 = vld [vmem:[%s6551_s9 + $0x28] sm:$0xff] }
 0x82e   : > { %v3026_v26 = vadd.f32 %v3018_v10, %v3010_v1  ;;  %v2967_v16 = vpop.f32.mrb[31].mxu1  ;;  %v3008_v5 = vpop.f32.mrb[35].mxu0  ;;  %v3028_v39 = vadd.f32 %v3020_v15, %v3012_v12  ;;  %v4118_v10 = vpack.c.bf16 %v3258_v60, %v3257_v6  ;;  %v4142_v4 = vpack.c.bf16 %v3242_v22, %v3241_v17  ;;  %v3259_v1 = vld [vmem:[%s6551_s9 + $0xb0] sm:$0xff] }
 0x82f   : > { %v3027_v61 = vadd.f32 %v3019_v2, %v3011_v14  ;;  %v3029_v37 = vadd.f32 %v3021_v30, %v3013_v32  ;;  %v3260_v2 = vld [vmem:[%s6551_s9 + $0xb8] sm:$0xff]  ;;  %v3243_v7 = vld [vmem:[%s6551_s9 + $0x30] sm:$0xff]  ;;  %v3261_v14 = vld [vmem:[%s6551_s9 + $0xc0] sm:$0xff] }
 0x830   : > { %v3030_v13 = vmul.f32 0.5, %v3026_v26  ;;  %v4121_v0 = vpack.c.bf16 %v3260_v2, %v3259_v1  ;;  %v3244_v26 = vld [vmem:[%s6551_s9 + $0x38] sm:$0xff]  ;;  %v3262_v16 = vld [vmem:[%s6551_s9 + $0xc8] sm:$0xff]  ;;  %v3245_v5 = vld [vmem:[%s6551_s9 + $0x40] sm:$0xff] }
 0x831   : > { %v3034_v43 = vmul.f32 0.5, %v3027_v61  ;;  %v3039_v29 = vmul.f32 0.5, %v3029_v37  ;;  %v4145_v15 = vpack.c.bf16 %v3244_v26, %v3243_v7  ;;  %v4124_v61 = vpack.c.bf16 %v3262_v16, %v3261_v14  ;;  %v3247_v30 = vld [vmem:[%s6551_s9 + $0x50] sm:$0xff]  ;;  %v3248_v37 = vld [vmem:[%s6551_s9 + $0x58] sm:$0xff] }
 0x832   : > { %4624 = vtanh.f32 %v3030_v13  ;;  %v3246_v13 = vld [vmem:[%s6551_s9 + $0x48] sm:$0xff] }
 0x833   : > { %4626 = vtanh.f32 %v3034_v43  ;;  %v4148_v12 = vpack.c.bf16 %v3246_v13, %v3245_v5  ;;  %v3263_v43 = vld [vmem:[%s6551_s9 + $0xd0] sm:$0xff] }
 0x834   : > { %4628 = vtanh.f32 %v3028_v39  ;;  %v3264_v39 = vld [vmem:[%s6551_s9 + $0xd8] sm:$0xff] }
 0x835   : > { %4630 = vtanh.f32 %v3039_v29  ;;  %v4127_v32 = vpack.c.bf16 %v3264_v39, %v3263_v43  ;;  %v4151_v29 = vpack.c.bf16 %v3248_v37, %v3247_v30  ;;  %v3218_v43 = vrot.slane %v6095_v20, 1  ;;  %v6919_v39 = vld [vmem:[#allocation62_spill] sm:$0xff] }
 0x836   : > { %v3220_v30 = vrot.slane %v6919_v39, 6 }
 0x83c   : > { %v4625_v11 = vpop.eup %4624 }
 0x83d   : > { %v4627_v41 = vpop.eup %4626  ;;  %v3032_v33 = vmul.f32 0.5, %v4625_v11  ;;  %v3265_v11 = vld [vmem:[%s6551_s9 + $0xe0] sm:$0xff] }
 0x83e   : > { %v3036_v36 = vmul.f32 0.5, %v4627_v41  ;;  %v4629_v28 = vpop.eup %4628  ;;  %v3266_v41 = vld [vmem:[%s6551_s9 + $0xe8] sm:$0xff] }
 0x83f   : > { %v3033_v44 = vadd.f32 0.5, %v3032_v33  ;;  %v4631_v35 = vpop.eup %4630  ;;  %v3249_v33 = vld [vmem:[%s6551_s9 + $0x60] sm:$0xff] }
 0x840   : > { %v3037_v24 = vadd.f32 0.5, %v3036_v36  ;;  %v3041_v38 = vmul.f32 0.5, %v4631_v35  ;;  %v4130_v36 = vpack.c.bf16 %v3266_v41, %v3265_v11  ;;  %v3252_v35 = vld [vmem:[%s6551_s9 + $0x78] sm:$0xff]  ;;  %v6921_v41 = vld [vmem:[#allocation45_spill] sm:$0xff] }
 0x841   : > { %v3047_v21 = vmul.f32 %v4629_v28, %v3033_v44  ;;  %v3250_v44 = vld [vmem:[%s6551_s9 + $0x68] sm:$0xff]  ;;  %v6920_v11 = vld [vmem:[#allocation54_spill] sm:$0xff] }
 0x842   : > { %v3046_v31 = vmul.f32 %v3044_v34, %v3037_v24  ;;  %v3042_v45 = vadd.f32 0.5, %v3041_v38  ;;  %v4154_v28 = vpack.c.bf16 %v3250_v44, %v3249_v33  ;;  %v3267_v24 = vld [vmem:[%s6551_s9 + $0xf0] sm:$0xff]  ;;  %v3268_v34 = vld [vmem:[%s6551_s9 + $0xf8] sm:$0xff]  ;;  %v6918_v38 = vmov 0.0  }
 0x843   : > { %v3222_v20 = vrot.slane %v6920_v11, 5  ;;  %v6922_v33 = vrot.slane %v6921_v41, 3  ;;  %v6923_v44 = vld [vmem:[#allocation57_spill] sm:$0xff] }
 0x844   : > { %v6169_v18 = vadd.f32 %v3047_v21, %v3046_v31  ;;  %v3251_v21 = vld [vmem:[%s6551_s9 + $0x70] sm:$0xff]  ;;  %v4133_v31 = vpack.c.bf16 %v3268_v34, %v3267_v24  ;;  %v6924_v24 = vld [vmem:[#allocation32_spill] sm:$0xff] }
 0x846   : > { %4632 = vtanh.f32 %v6169_v18  ;;  %v3177_v2 = vrot.slane %v6169_v18, 6 }
 0x850   : > { %v4633_v46 = vpop.eup %4632 }
 0x851   : > { %v6172_v8 = vmul.f32 %v4633_v46, %v3042_v45  ;;  %v4157_v45 = vpack.c.bf16 %v3252_v35, %v3251_v21 }
 0x853   : > { %v3200_v40 = vrot.slane %v6172_v8, 6  ;;  %v3052_v47 = vmul.f32 %v6172_v8, %v6916_v42  ;;  %v3051_v27 = vmul.f32 %v6172_v8, %v6917_v48 }
 0x855   : > { %v3054_v49 = vpack.c.bf16 %v3052_v47, %v3052_v47  ;;  %v3053_v50 = vpack.c.bf16 %v3051_v27, %v3051_v27  ;;  %v6181_v51 = vsel %vm909_vm4, %v6104_v25, %v3200_v40  ;;  %v4112_v25 = vpack.c.bf16 %v3254_v55, %v3253_v54  ;;  %v3143_v27 = vld [vmem:[#allocation2 + $0x20] sm:$0xc0]  ;;  %v3144_v55 = vld [vmem:[#allocation2 + $0x28] sm:$0xc0] }
 0x857   : > { %v3058_v52 = vrot.slane %v3054_v49, 2  ;;  %v3057_v53 = vrot.slane %v3053_v50, 2 }
 0x859   : > { %3093 = vmatprep.mubr.bf16.mxu1 %v3058_v52  ;;  %3134 = vmatprep.mubr.bf16.mxu0 %v3058_v52 }
 0x85a   : > { %3094 = vmatmul.mubr.bf16.vlgmr.msra.gmra.mrb[32].mxu1 %v3057_v53  ;;  %3135 = vmatmul.mubr.bf16.vlgmr.msra.gmra.mrb[36].mxu0 %v3057_v53 }
 0x85b   : > { %4113 = vmatpush3.bf16.msra.mxu1 %v4112_v25  ;;  %4137 = vmatpush3.bf16.msra.mxu0 %v4136_v59  ;;  %v3145_v59 = vld [vmem:[#allocation2 + $0x30] sm:$0xc0] }
 0x85c   : > { %4114 = vmatprep.subr.bf16.mxu1 %v4996_v58  ;;  %4138 = vmatprep.subr.bf16.mxu0 %v4996_v58 }
 0x85d   : > { %4065 = vmatprep.mubr.msk.f32.mxu1 %vm4997_vm7, %v6918_v38  ;;  %4100 = vmatprep.mubr.msk.f32.mxu0 %vm4997_vm7, %v6918_v38  ;;  %v3411_v38 = vld [vmem:[%s6552_s10] sm:$0x1] }
 0x85f   : > { %4116 = vmatpush3.bf16.msra.mxu1 %v4115_v9  ;;  %4140 = vmatpush3.bf16.msra.mxu0 %v4139_v19  ;;  %v3146_v9 = vld [vmem:[#allocation2 + $0x38] sm:$0xc0] }
 0x860   : > { %4117 = vmatprep.subr.bf16.mxu1 %v4996_v58  ;;  %4141 = vmatprep.subr.bf16.mxu0 %v4996_v58 }
 0x863   : > { %4119 = vmatpush3.bf16.msra.mxu1 %v4118_v10  ;;  %4143 = vmatpush3.bf16.msra.mxu0 %v4142_v4 }
 0x864   : > { %4120 = vmatprep.subr.bf16.mxu1 %v4996_v58  ;;  %4144 = vmatprep.subr.bf16.mxu0 %v4996_v58 }
 0x867   : > { %4122 = vmatpush3.bf16.msra.mxu1 %v4121_v0  ;;  %4146 = vmatpush3.bf16.msra.mxu0 %v4145_v15 }
 0x868   : > { %4123 = vmatprep.subr.bf16.mxu1 %v4996_v58  ;;  %4147 = vmatprep.subr.bf16.mxu0 %v4996_v58 }
 0x86b   : > { %4125 = vmatpush3.bf16.msra.mxu1 %v4124_v61  ;;  %4149 = vmatpush3.bf16.msra.mxu0 %v4148_v12  ;;  %v3216_v12 = vrot.slane %v6172_v8, 4 }
 0x86c   : > { %4126 = vmatprep.subr.bf16.mxu1 %v4996_v58  ;;  %4150 = vmatprep.subr.bf16.mxu0 %v4996_v58 }
 0x86f   : > { %4128 = vmatpush3.bf16.msra.mxu1 %v4127_v32  ;;  %4152 = vmatpush3.bf16.msra.mxu0 %v4151_v29 }
 0x870   : > { %4129 = vmatprep.subr.bf16.mxu1 %v4996_v58  ;;  %4153 = vmatprep.subr.bf16.mxu0 %v4996_v58 }
 0x873   : > { %4131 = vmatpush3.bf16.msra.mxu1 %v4130_v36  ;;  %4155 = vmatpush3.bf16.msra.mxu0 %v4154_v28  ;;  %v3225_v28 = vrot.slane %v6923_v44, 2 }
 0x874   : > { %4132 = vmatprep.subr.bf16.mxu1 %v4996_v58  ;;  %4156 = vmatprep.subr.bf16.mxu0 %v4996_v58 }
 0x877   : > { %4134 = vmatpush3.bf16.msra.mxu1 %v4133_v31  ;;  %4158 = vmatpush3.bf16.msra.mxu0 %v4157_v45 }
 0x92d   : > { %v3095_v46 = vpop.f32.mrb[32].mxu1  ;;  %v3136_v40 = vpop.f32.mrb[36].mxu0 }
 0x92e   : > { %v3151_v42 = vrot.slane %v3095_v46, 2  ;;  %v3097_v47 = vpop.f32.mrb[33].mxu1  ;;  %v3138_v48 = vpop.f32.mrb[37].mxu0  ;;  %v3153_v54 = vrot.slane %v3136_v40, 2 }
 0x92f   : > { %v3152_v49 = vrot.slane %v3097_v47, 2  ;;  %v3099_v50 = vpop.f32.mrb[34].mxu1  ;;  %v3140_v52 = vpop.f32.mrb[38].mxu0  ;;  %v3154_v3 = vrot.slane %v3138_v48, 2 }
 0x930   : > { %v3159_v53 = vadd.f32 %v3151_v42, %v3143_v27  ;;  %v3100_v56 = vpop.f32.mrb[35].mxu1  ;;  %v3141_v25 = vpop.f32.mrb[39].mxu0  ;;  %v3161_v63 = vadd.f32 %v3153_v54, %v3145_v59 }
 0x931   : > { %v3160_v57 = vadd.f32 %v3152_v49, %v3144_v55  ;;  %v3162_v23 = vadd.f32 %v3154_v3, %v3146_v9 }
 0x932   : > { %v3163_v58 = vmul.f32 0.5, %v3159_v53 }
 0x933   : > { %v3167_v62 = vmul.f32 0.5, %v3160_v57  ;;  %v3172_v19 = vmul.f32 0.5, %v3162_v23 }
 0x934   : > { %4634 = vtanh.f32 %v3163_v58 }
 0x935   : > { %4636 = vtanh.f32 %v3167_v62 }
 0x936   : > { %4638 = vtanh.f32 %v3161_v63 }
 0x937   : > { %4640 = vtanh.f32 %v3172_v19 }
 0x93e   : > { %v4635_v6 = vpop.eup %4634 }
 0x93f   : > { %v4637_v60 = vpop.eup %4636  ;;  %v3165_v17 = vmul.f32 0.5, %v4635_v6 }
 0x940   : > { %v3169_v10 = vmul.f32 0.5, %v4637_v60  ;;  %v4639_v4 = vpop.eup %4638 }
 0x941   : > { %v3166_v22 = vadd.f32 0.5, %v3165_v17  ;;  %v4641_v15 = vpop.eup %4640 }
 0x942   : > { %v3170_v1 = vadd.f32 0.5, %v3169_v10  ;;  %v3174_v14 = vmul.f32 0.5, %v4641_v15 }
 0x943   : > { %v3180_v7 = vmul.f32 %v4639_v4, %v3166_v22 }
 0x944   : > { %v3179_v0 = vmul.f32 %v3177_v2, %v3170_v1  ;;  %v3175_v16 = vadd.f32 0.5, %v3174_v14 }
 0x946   : > { %v3181_v26 = vadd.f32 %v3180_v7, %v3179_v0 }
 0x948   : > { %4642 = vtanh.f32 %v3181_v26  ;;  %3236 = vst [vmem:[%s6302_s16 - $0x6] sm:$0xc0] %v3181_v26 }
 0x952   : > { %v4643_v5 = vpop.eup %4642 }
 0x953   : > { %v3183_v61 = vmul.f32 %v4643_v5, %v3175_v16 }
 0x955   : > { %v3203_v13 = vrot.slane %v3183_v61, 7  ;;  %v3339_v18 = vrot.slane %v3183_v61, 6  ;;  %3235 = vst [vmem:[%s6307_s28 - $0x6] sm:$0xc0] %v3183_v61 }
 0x957   : > { %v3227_v32 = vsel %vm724_vm1, %v3203_v13, %v3216_v12  ;;  %4066 = vmatmul.mubr.f32.vlgmr.msra.gmra.mrb[36].mxu1 %v3203_v13  ;;  %4101 = vmatmul.mubr.f32.vlgmr.msra.gmra.mrb[2].mxu0 %v3339_v18  ;;  %v3214_v37 = vsel %vm3213_vm8, %v6181_v51, %v3203_v13 }
 0x958   : > { %v3228_v29 = vsel %vm899_vm2, %v3227_v32, %v3218_v43  ;;  %3215 = vst [vmem:[%s6316_s23] sm:$0xff] %v3214_v37 }
 0x959   : > { %v3229_v8 = vsel %vm3207_vm5, %v3228_v29, %v3220_v30 }
 0x95a   : > { %v3230_v36 = vsel %vm904_vm3, %v3229_v8, %v6922_v33 }
 0x95b   : > { %v3231_v51 = vsel %vm3210_vm6, %v3230_v36, %v6924_v24 }
 0x95c   : > { %v3232_v34 = vsel %vm909_vm4, %v3231_v51, %v3222_v20 }
 0x95d   : > { %v3233_v21 = vsel %vm3213_vm8, %v3232_v34, %v3225_v28 }
 0x95e   : > { %3234 = vst [vmem:[%s6316_s23 + $0x8] sm:$0xff] %v3233_v21 }
 0xa2a   : > { %v3335_v31 = vpop.f32.mrb[36].mxu1  ;;  %v3407_v35 = vpop.f32.mrb[2].mxu0 }
 0xa2b   : > { %v3408_v45 = vadd.f32 %v3407_v35, %v3335_v31  ;;  %v4067_v46 = vpop.f32.mrb[37].mxu1  ;;  %v4102_v40 = vpop.f32.mrb[3].mxu0 }
 0xa2d   : > { %v3412_v42 = vadd.f32 %v3411_v38, %v3408_v45 }
 0xa2f   : > { %v3420_v47 = vmul.f32 0.5, %v3412_v42  ;;  %3416 = vrot.lane.b32.xlu0 %v3412_v42, %s6693_s24  ;;  %3414 = vst.msk [vmem:[%s6694_s27] sm:$0x1] %vm3413_vm9, %v3412_v42  ;;  %s6353_s24 = scalar_lea.sflag [#allocation10], %s3433_s17  ;;  %s4766_s27 = scalar_lea.vmem %s3479_s15, 32 }
 0xa30   : > { %p4767_p10 = scmp.ne.s32.totalorder %s3479_s15, %s4766_s27  ;;  %p4774_p7 = scmp.lt.s32.totalorder %s4772_s29, %s4766_s27 }
 0xa31   : > { %v3421_v48 = vmul.f32 1.442695, %v3420_v47 }
 0xa32   : > { %p4768_p2 = pnand %p4767_p10, %p6925_p1  ;;  %p4775_p8 = por %p4774_p7, %p4773_p4 }
 0xa33   : > { %4644 = vpow2.f32 %v3421_v48 }
 0xa34   : > { %p4769_p3 = pneg %p4768_p2 }
 0xa36   : > { %p4776_p11 = pnand %p4775_p8, %p4769_p3 }
 0xa38   : > { %4779 = shalt.err (!%p4776_p11)
}
 0xa39   : > { %s4780_s28 = scalar_lea.hbm %s6343_s20, 32  ;;  %s4784_s1 = scalar_lea.hbm %s6554_s12, 64 }
 0xa3a   : > { %p4781_p13 = scmp.ne.s32.totalorder %s6343_s20, %s4780_s28  ;;  %p4785_p6 = scmp.lt.u32.totalorder %s6343_s20, %s6554_s12 }
 0xa3b   : > { %p4786_p9 = scmp.lt.u32.totalorder %s4784_s1, %s4780_s28  ;;  %p4788_p10 = scmp.lt.u32.totalorder %s4780_s28, %s6343_s20 }
 0xa3c   : > { %p4782_p5 = pnand %p4781_p13, %p6925_p1 }
 0xa3d   : > { %p4787_p12 = por %p4786_p9, %p4785_p6 }
 0xa3e   : > { %p4783_p0 = pneg %p4782_p5 }
 0xa3f   : > { %p4789_p2 = por %p4788_p10, %p4787_p12 }
 0xa41   : > { %p4790_p3 = pnand %p4789_p2, %p4783_p0 }
 0xa43   : > { %4793 = shalt.err (!%p4790_p3)
}
 0xa44   : > { %4184 = dma.vmem_to_hbm [thread:$0]  (%p6925_p1), %s3479_s15, 32, %s6343_s20, %s6353_s24  }
 0xa45   : > { %s6374_s27 = sshll.u32 %s5111_s25, 4  ;;  %s6926_s29 = scalar_lea.vmem [#allocation12], %s6298_s11 }
 0xa46   : > { %s3504_s26 = sshll.u32 %s6926_s29, 4  ;;  %s6382_s28 = scalar_lea.hbm %s6556_s14, %s6374_s27  ;;  %s3505_s26 = int_to_ptr.vmem [resolvable:$true] %s3504_s26 }
 0xa47   : > { %s6386_s30 = scalar_lea.sflag [#allocation13], %s3433_s17  ;;  %s4794_s19 = scalar_lea.vmem %s3505_s26, 16 }
 0xa48   : > { %p4795_p4 = scmp.ne.s32.totalorder %s3505_s26, %s4794_s19  ;;  %s5000_s20 = smov [#allocation12]  }
 0xa49   : > { %s4798_s15 = sshll.u32 %s5000_s20, 4  ;;  %s4799_s15 = int_to_ptr.vmem [resolvable:$false] %s4798_s15 }
 0xa4a   : > { %p4796_p7 = pnand %p4795_p4, %p6925_p1  ;;  %s4800_s2 = scalar_lea.vmem %s4799_s15, 32 }
 0xa4b   : > { %p4801_p11 = scmp.lt.s32.totalorder %s3505_s26, %s4799_s15  ;;  %p4802_p13 = scmp.lt.s32.totalorder %s4800_s2, %s4794_s19 }
 0xa4c   : > { %p4797_p8 = pneg %p4796_p7 }
 0xa4d   : > { %p4803_p5 = por %p4802_p13, %p4801_p11 }
 0xa4f   : > { %p4804_p0 = pnand %p4803_p5, %p4797_p8 }
 0xa51   : > { %4807 = shalt.err (!%p4804_p0)
}
 0xa52   : > { %s4808_s17 = scalar_lea.hbm %s6382_s28, 16  ;;  %s4812_s1 = scalar_lea.hbm %s6556_s14, 32 }
 0xa53   : > { %p4809_p6 = scmp.ne.s32.totalorder %s6382_s28, %s4808_s17  ;;  %p4813_p10 = scmp.lt.u32.totalorder %s6382_s28, %s6556_s14 }
 0xa54   : > { %p4814_p2 = scmp.lt.u32.totalorder %s4812_s1, %s4808_s17  ;;  %p4816_p4 = scmp.lt.u32.totalorder %s4808_s17, %s6382_s28 }
 0xa55   : > { %p4810_p9 = pnand %p4809_p6, %p6925_p1 }
 0xa56   : > { %p4815_p3 = por %p4814_p2, %p4813_p10 }
 0xa57   : > { %p4811_p12 = pneg %p4810_p9 }
 0xa58   : > { %p4817_p7 = por %p4816_p4, %p4815_p3 }
 0xa5a   : > { %p4818_p8 = pnand %p4817_p7, %p4811_p12 }
 0xa5c   : > { %4821 = shalt.err (!%p4818_p8)
}
 0xa5d   : > { %4186 = dma.vmem_to_hbm [thread:$0]  (%p6925_p1), %s3505_s26, 16, %s6382_s28, %s6386_s30  }
 0xa5e   : > { %s3998_s2 = sshll.u32 %s5111_s25, 8  ;;  %s6927_s18 = sld [smem:[#allocation67_spill]] }
 0xa5f   : > { %s3465_s17 = sshll.u32 %s6316_s23, 4  ;;  %s3491_s20 = sshll.u32 %s6302_s16, 4  ;;  %s6413_s17 = int_to_ptr.vmem [resolvable:$true] %s3465_s17  ;;  %s3492_s20 = int_to_ptr.vmem [resolvable:$true] %s3491_s20 }
 0xa60   : > { %s3429_s15 = scalar_lea.sflag [#allocation5], %s6298_s11  ;;  %s4822_s3 = scalar_lea.vmem %s6413_s17, 256 }
 0xa61   : > { %p4823_p11 = scmp.ne.s32.totalorder %s6413_s17, %s4822_s3  ;;  %s5001_s26 = smov [#allocation8]  }
 0xa62   : > { %s4826_s25 = sshll.u32 %s5001_s26, 4  ;;  %s4827_s25 = int_to_ptr.vmem [resolvable:$false] %s4826_s25 }
 0xa63   : > { %p4824_p13 = pnand %p4823_p11, %p6925_p1  ;;  %s4828_s28 = scalar_lea.vmem %s4827_s25, 512 }
 0xa64   : > { %s6410_s1 = scalar_lea.hbm %s6927_s18, %s3998_s2  ;;  %p4829_p0 = scmp.lt.s32.totalorder %s6413_s17, %s4827_s25 }
 0xa65   : > { %p4825_p5 = pneg %p4824_p13  ;;  %p4830_p6 = scmp.lt.s32.totalorder %s4828_s28, %s4822_s3 }
 0xa67   : > { %p4831_p9 = por %p4830_p6, %p4829_p0 }
 0xa69   : > { %p4832_p12 = pnand %p4831_p9, %p4825_p5 }
 0xa6b   : > { %4835 = shalt.err (!%p4832_p12)
}
 0xa6c   : > { %s4836_s23 = scalar_lea.hbm %s6410_s1, 256  ;;  %s4840_s29 = scalar_lea.hbm %s6927_s18, 512 }
 0xa6d   : > { %p4837_p10 = scmp.ne.s32.totalorder %s6410_s1, %s4836_s23  ;;  %p4841_p4 = scmp.lt.u32.totalorder %s6410_s1, %s6927_s18 }
 0xa6e   : > { %p4842_p7 = scmp.lt.u32.totalorder %s4840_s29, %s4836_s23  ;;  %p4844_p11 = scmp.lt.u32.totalorder %s4836_s23, %s6410_s1 }
 0xa6f   : > { %p4838_p2 = pnand %p4837_p10, %p6925_p1 }
 0xa70   : > { %p4843_p8 = por %p4842_p7, %p4841_p4 }
 0xa71   : > { %p4839_p3 = pneg %p4838_p2 }
 0xa72   : > { %p4845_p13 = por %p4844_p11, %p4843_p8 }
 0xa74   : > { %p4846_p5 = pnand %p4845_p13, %p4839_p3 }
 0xa76   : > { %4849 = shalt.err (!%p4846_p5)
}
 0xa77   : > { %4183 = dma.vmem_to_hbm [thread:$0]  (%p6925_p1), %s6413_s17, 256, %s6410_s1, %s3429_s15   ;;  %v4645_v27 = vpop.eup %4644 }
 0xa78   : > { %s6928_s3 = smov 96   ;;  %s4850_s28 = scalar_lea.vmem %s3492_s20, 32 }
 0xa79   : > { %3424 = vrot.lane.b32.xlu0 %v4645_v27, %s6928_s3  ;;  %p4851_p0 = scmp.ne.s32.totalorder %s3492_s20, %s4850_s28  ;;  %s5002_s23 = smov [#allocation11]  }
 0xa7a   : > { %s4854_s2 = sshll.u32 %s5002_s23, 4  ;;  %s4855_s2 = int_to_ptr.vmem [resolvable:$false] %s4854_s2 }
 0xa7b   : > { %p4852_p6 = pnand %p4851_p0, %p6925_p1  ;;  %s4856_s19 = scalar_lea.vmem %s4855_s2, 64 }
 0xa7c   : > { %p4857_p12 = scmp.lt.s32.totalorder %s3492_s20, %s4855_s2  ;;  %p4858_p10 = scmp.lt.s32.totalorder %s4856_s19, %s4850_s28 }
 0xa7d   : > { %p4853_p9 = pneg %p4852_p6 }
 0xa7e   : > { %p4859_p2 = por %p4858_p10, %p4857_p12 }
 0xa80   : > { %p4860_p3 = pnand %p4859_p2, %p4853_p9 }
 0xa82   : > { %4863 = shalt.err (!%p4860_p3)
}
 0xa83   : > { %s4864_s16 = scalar_lea.hbm %s6349_s21, 32  ;;  %s4868_s15 = scalar_lea.hbm %s6555_s13, 64 }
 0xa84   : > { %p4865_p4 = scmp.ne.s32.totalorder %s6349_s21, %s4864_s16  ;;  %p4869_p11 = scmp.lt.u32.totalorder %s6349_s21, %s6555_s13 }
 0xa85   : > { %p4870_p13 = scmp.lt.u32.totalorder %s4868_s15, %s4864_s16  ;;  %p4872_p0 = scmp.lt.u32.totalorder %s4864_s16, %s6349_s21 }
 0xa86   : > { %p4866_p7 = pnand %p4865_p4, %p6925_p1 }
 0xa87   : > { %p4871_p5 = por %p4870_p13, %p4869_p11 }
 0xa88   : > { %p4867_p8 = pneg %p4866_p7 }
 0xa89   : > { %p4873_p6 = por %p4872_p0, %p4871_p5 }
 0xa8b   : > { %p4874_p9 = pnand %p4873_p6, %p4867_p8 }
 0xa8d   : > { %4877 = shalt.err (!%p4874_p9)
}
 0xa8e   : > { %4185 = dma.vmem_to_hbm [thread:$0]  (%p6925_p1), %s3492_s20, 32, %s6349_s21, %s6353_s24  }
 0xa8f   : > { %s604_s25 = scalar_lea.vmem [#allocation14], %s6298_s11  ;;  %s6929_s2 = sld [smem:[#allocation68_spill]] }
 0xa90   : > { %s3517_s3 = sshll.u32 %s604_s25, 4  ;;  %s5003_s24 = smov [#allocation14]   ;;  %s6466_s3 = int_to_ptr.vmem [resolvable:$true] %s3517_s3 }
 0xa91   : > { %s4878_s16 = scalar_lea.vmem %s6466_s3, 16  ;;  %s4882_s21 = sshll.u32 %s5003_s24, 4  ;;  %s4883_s21 = int_to_ptr.vmem [resolvable:$false] %s4882_s21 }
 0xa92   : > { %p4879_p12 = scmp.ne.s32.totalorder %s6466_s3, %s4878_s16  ;;  %s4884_s20 = scalar_lea.vmem %s4883_s21, 32 }
 0xa93   : > { %p4885_p3 = scmp.lt.s32.totalorder %s6466_s3, %s4883_s21  ;;  %p4886_p4 = scmp.lt.s32.totalorder %s4884_s20, %s4878_s16 }
 0xa94   : > { %p4880_p10 = pnand %p4879_p12, %p6925_p1 }
 0xa95   : > { %s6464_s19 = scalar_lea.hbm %s6929_s2, %s6374_s27  ;;  %p4887_p7 = por %p4886_p4, %p4885_p3 }
 0xa96   : > { %p4881_p2 = pneg %p4880_p10 }
 0xa98   : > { %p4888_p8 = pnand %p4887_p7, %p4881_p2 }
 0xaa1   : > { %v3417_v49 = vpop.permute.xlu0 %3416 }
 0xaa2   : > { %3419 = vst.msk [vmem:[%s604_s25] sm:$0x1] %vm3413_vm9, %v3417_v49 }
 0xaa3   : > { %4891 = shalt.err (!%p4888_p8)
}
 0xaa4   : > { %s4892_s1 = scalar_lea.hbm %s6464_s19, 16  ;;  %s4896_s29 = scalar_lea.hbm %s6929_s2, 32 }
 0xaa5   : > { %p4893_p11 = scmp.ne.s32.totalorder %s6464_s19, %s4892_s1  ;;  %p4897_p0 = scmp.lt.u32.totalorder %s6464_s19, %s6929_s2 }
 0xaa6   : > { %p4898_p6 = scmp.lt.u32.totalorder %s4896_s29, %s4892_s1  ;;  %p4900_p12 = scmp.lt.u32.totalorder %s4892_s1, %s6464_s19 }
 0xaa7   : > { %p4894_p13 = pnand %p4893_p11, %p6925_p1 }
 0xaa8   : > { %p4899_p9 = por %p4898_p6, %p4897_p0 }
 0xaa9   : > { %p4895_p5 = pneg %p4894_p13 }
 0xaaa   : > { %p4901_p10 = por %p4900_p12, %p4899_p9 }
 0xaac   : > { %p4902_p2 = pnand %p4901_p10, %p4895_p5 }
 0xaae   : > { %4905 = shalt.err (!%p4902_p2)
}
 0xaaf   : > { %4187 = dma.vmem_to_hbm [thread:$0]  (%p6925_p1), %s6466_s3, 16, %s6464_s19, %s6386_s30  }
 0xab0   : > { %s610_s28 = scalar_lea.vmem [#allocation15], %s6298_s11  ;;  %s6930_s21 = sld [smem:[#allocation69_spill]] }
 0xab1   : > { %s3530_s23 = sshll.u32 %s610_s28, 4  ;;  %s3452_s1 = scalar_lea.sflag [#allocation16], %s6298_s11  ;;  %s6498_s23 = int_to_ptr.vmem [resolvable:$true] %s3530_s23 }
 0xab2   : > { %s4906_s15 = scalar_lea.vmem %s6498_s23, 16  ;;  %s5004_s30 = smov [#allocation15]  }
 0xab3   : > { %p4907_p3 = scmp.ne.s32.totalorder %s6498_s23, %s4906_s15  ;;  %s4910_s3 = sshll.u32 %s5004_s30, 4  ;;  %s4911_s3 = int_to_ptr.vmem [resolvable:$false] %s4910_s3 }
 0xab4   : > { %s4912_s19 = scalar_lea.vmem %s4911_s3, 32  ;;  %p4913_p8 = scmp.lt.s32.totalorder %s6498_s23, %s4911_s3 }
 0xab5   : > { %p4908_p4 = pnand %p4907_p3, %p6925_p1  ;;  %p4914_p11 = scmp.lt.s32.totalorder %s4912_s19, %s4906_s15 }
 0xab6   : > { %s6931_s20 = smov %s6930_s21  ;;  %s6496_s17 = scalar_lea.hbm %s6930_s21, %s6374_s27 }
 0xab7   : > { %p4909_p7 = pneg %p4908_p4  ;;  %p4915_p13 = por %p4914_p11, %p4913_p8 }
 0xab9   : > { %p4916_p5 = pnand %p4915_p13, %p4909_p7 }
 0xaeb   : > { %v3425_v50 = vpop.permute.xlu0 %3424 }
 0xaec   : > { %3427 = vst.msk [vmem:[%s610_s28] sm:$0x1] %vm3413_vm9, %v3425_v50 }
 0xaed   : > { %4919 = shalt.err (!%p4916_p5)
}
 0xaee   : > { %s4920_s11 = scalar_lea.hbm %s6496_s17, 16  ;;  %s4924_s26 = scalar_lea.hbm %s6931_s20, 32 }
 0xaef   : > { %p4921_p0 = scmp.ne.s32.totalorder %s6496_s17, %s4920_s11  ;;  %p4925_p12 = scmp.lt.u32.totalorder %s6496_s17, %s6931_s20 }
 0xaf0   : > { %p4926_p10 = scmp.lt.u32.totalorder %s4924_s26, %s4920_s11  ;;  %p4928_p3 = scmp.lt.u32.totalorder %s4920_s11, %s6496_s17 }
 0xaf1   : > { %p4922_p6 = pnand %p4921_p0, %p6925_p1 }
 0xaf2   : > { %p4927_p2 = por %p4926_p10, %p4925_p12 }
 0xaf3   : > { %p4923_p9 = pneg %p4922_p6 }
 0xaf4   : > { %p4929_p4 = por %p4928_p3, %p4927_p2 }
 0xaf6   : > { %p4930_p7 = pnand %p4929_p4, %p4923_p9 }
 0xaf8   : > { %4933 = shalt.err (!%p4930_p7)
}
 0xaf9   : > { %4188 = dma.vmem_to_hbm [thread:$0]  (%p6925_p1), %s6498_s23, 16, %s6496_s17, %s3452_s1  }
 0xafa PF: > { %s6932_s16 = sld [smem:[#allocation25_spill]]  ;;  %s6933_s24 = sld [smem:[#allocation23_spill]] }
 0xafb   : > { %s6934_s21 = sld [smem:[#allocation28_spill]] }
 0xb00   : > { %p4225_p8 = scmp.ge.s32.totalorder %s6932_s16, 2  ;;  %s3542_s15 = sand.u32 1, %s6933_s24  }
 0xb01   : > { %p6935_p11 = scmp.ne.s32.totalorder %s6934_s21, 0  ;;  %s3543_s30 = scalar_lea.sflag [#allocation5], %s3542_s15 }
 0xb03   : > { %p4203_p13 = pnand %p4225_p8, %p6935_p11 }
 0xb05   : > { %4959 = dma.done.wait (!%p4203_p13), %s3543_s30, 256  }
 0xb06   : > { %4961 = vsyncadd (!%p4203_p13), %s3543_s30, 4294967040  ;;  %s6936_s3 = sadd.s32 4294967294, %s6932_s16  }
 0xb07   : > { %s3551_s19 = sand.u32 1, %s6936_s3  }
 0xb08   : > { %s3552_s11 = scalar_lea.sflag [#allocation10], %s3551_s19 }
 0xb09   : > { %4963 = dma.done.wait (!%p4203_p13), %s3552_s11, 64  }
 0xb0a   : > { %4965 = vsyncadd (!%p4203_p13), %s3552_s11, 4294967232  ;;  %s3570_s0 = scalar_lea.sflag [#allocation13], %s3551_s19 }
 0xb0b   : > { %4967 = dma.done.wait (!%p4203_p13), %s3570_s0, 32  }
 0xb0c   : > { %4969 = vsyncadd (!%p4203_p13), %s3570_s0, 4294967264  ;;  %s3586_s23 = scalar_lea.sflag [#allocation16], %s3542_s15 }
 0xb0d   : > { %4971 = dma.done.wait (!%p4203_p13), %s3586_s23, 16  }
 0xb0e   : > { %4973 = vsyncadd (!%p4203_p13), %s3586_s23, 4294967280  ;;  %s6937_s24 = sld [smem:[#allocation26_spill]]  ;;  %s6938_s17 = sld [smem:[#allocation24_spill]] }
 0xb0f   : > { %s6939_s23 = sld [smem:[#allocation27_spill]]  ;;  %s6940_s21 = smov %s4980_s22 }
 0xb14   : > { %p38_p1 = scmp.ge.s32.totalorder %s6937_s24, 4   ;;  %s6941_s22 = smov %s6938_s17 }
 0xb16   :  { %40 = sbr.rel (!%p38_p1) target bundleno = 19 (0x13), region = 195 }
 0xb1d   :  { %3590 = vsyncpa [#allocation4], 1 }
 0xb1e   :  { %3592 = vsyncpa [#allocation4 + $0x1], 1 }
 0xb1f   :  { %3593 = vsyncpa [#allocation7], 1 }
 0xb20   :  { %3594 = vsyncpa [#allocation5], 1 }
 0xb21   :  { %3596 = vsyncpa [#allocation5 + $0x1], 1 }
 0xb22   :  { %3597 = vsyncpa [#allocation10], 1 }
 0xb23   :  { %3599 = vsyncpa [#allocation10 + $0x1], 1 }
 0xb24   :  { %3600 = vsyncpa [#allocation13], 1 }
 0xb25   :  { %3602 = vsyncpa [#allocation13 + $0x1], 1 }
 0xb26   :  { %3603 = vsyncpa [#allocation16], 1 }
 0xb27   :  { %3605 = vsyncpa [#allocation16 + $0x1], 1 }

</bundles_post_ra>
